<compile_context>
chip_gen: v5e
topology: v5e:2x2
jax: 0.10.0
libtpu: 0.0.40
codegen_flags: <defaults>
</compile_context>

<pallas_src>
import math

import jax
import jax.numpy as jnp
from jax.experimental import pallas as pl
from jax.experimental.pallas import tpu as pltpu

# ---- env_params (small, deterministic, consistent with the module) ----
OBS = 10
GOAL = 3
ACT = 4
ACTION_MAX = 1.0
HIDDEN = 256
CLIP_MAX = 3.0
GAMMA = 0.98
INV_GAMMA = 1.0 / GAMMA
LN_GAMMA = math.log(GAMMA)
LN_EPS = 1e-5

X_DIM = OBS + 2 * GOAL          # input x feature dim (obs + achieved_goal + goal)
IN_DIM = X_DIM + ACT            # fc1 / norm1 input dim


def _layernorm(h, w, b):
    # PyTorch nn.LayerNorm over last dim, biased variance, eps=1e-5
    mu = jnp.mean(h, axis=-1, keepdims=True)
    var = jnp.mean((h - mu) ** 2, axis=-1, keepdims=True)
    return (h - mu) * jax.lax.rsqrt(var + LN_EPS) * w + b


def critic_kernel(x_ref, dist_ref,
                  n1w_ref, n1b_ref, w1_ref, b1_ref,
                  n2w_ref, n2b_ref, w2_ref, b2_ref,
                  n3w_ref, n3b_ref, w3_ref, b3_ref,
                  wh_ref, bh_ref,
                  q_ref,
                  m_scr, a_scr):
    # ---- MLP: only once per row tile (j == 0); m/a cached in scratch across j ----
    @pl.when(pl.program_id(1) == 0)
    def _mlp():
        h = _layernorm(x_ref[...], n1w_ref[...], n1b_ref[...])
        h = jnp.clip(h, -CLIP_MAX, CLIP_MAX)
        h = jnp.maximum(
            jnp.dot(h.astype(jnp.bfloat16), w1_ref[...],
                    preferred_element_type=jnp.float32) + b1_ref[...], 0.0)
        h = _layernorm(h, n2w_ref[...], n2b_ref[...])
        h = jnp.maximum(
            jnp.dot(h.astype(jnp.bfloat16), w2_ref[...],
                    preferred_element_type=jnp.float32) + b2_ref[...], 0.0)
        h = _layernorm(h, n3w_ref[...], n3b_ref[...])
        h = jnp.maximum(
            jnp.dot(h.astype(jnp.bfloat16), w3_ref[...],
                    preferred_element_type=jnp.float32) + b3_ref[...], 0.0)
        heads = jnp.dot(h.astype(jnp.bfloat16), wh_ref[...],
                        preferred_element_type=jnp.float32) + bh_ref[...]   # (TILE_I, 2)
        m_scr[...] = heads[:, 0:1]
        a_scr[...] = heads[:, 1:2]

    # ---- combine for this (i, j) output tile ----
    m = m_scr[...]                                   # (TILE_I, 1)
    a = a_scr[...]                                   # (TILE_I, 1)
    z = jnp.maximum(m * dist_ref[...], 0.0)          # (TILE_I, TILE_J) broadcast
    # gamma ** z == exp(z * ln(gamma)); one VPU mul + one EUP exp per element
    q_ref[...] = INV_GAMMA * (jnp.exp(z * LN_GAMMA) - 1.0) + a


def value_prior_critic_forward(x, actions, params):
    """x: (B, OBS+2*GOAL), actions: (B, ACT) -> q: (B, B) (matches PyTorch broadcast)."""
    (n1w, n1b, w1, b1, n2w, n2b, w2, b2, n3w, n3b, w3, b3, wm, bm, wa, ba) = params
    B = x.shape[0]

    # ---- XLA-side prep (done once, outside the kernel) ----
    g = x[:, -GOAL:]
    ag = x[:, -2 * GOAL:-GOAL]
    dist = jnp.sqrt(jnp.sum((g - ag) ** 2, axis=-1)) * 10.0          # (B,)
    x_cat = jnp.concatenate([x, actions * (1.0 / ACTION_MAX)], axis=1)  # (B, IN_DIM)

    # pad batch to a lane-dense multiple of 128 / 256
    if B <= 128:
        b_pad = 128
    else:
        b_pad = -(-B // 256) * 256
    tile_i = min(256, b_pad)
    tile_j = 512 if b_pad % 512 == 0 else tile_i
    if b_pad != B:
        x_cat = jnp.pad(x_cat, ((0, b_pad - B), (0, 0)))
        dist = jnp.pad(dist, (0, b_pad - B))
    dist_row = dist[None, :]                                          # (1, b_pad)

    # fuse the two 1-wide heads; cast matmul weights to bf16 (f32 accumulation in-kernel)
    w_heads = jnp.concatenate([wm, wa], axis=1).astype(jnp.bfloat16)  # (HIDDEN, 2)
    b_heads = jnp.concatenate([bm, ba], axis=1)                       # (1, 2) f32
    w1b = w1.astype(jnp.bfloat16)
    w2b = w2.astype(jnp.bfloat16)
    w3b = w3.astype(jnp.bfloat16)

    weight_args = (n1w, n1b, w1b, b1, n2w, n2b, w2b, b2,
                   n3w, n3b, w3b, b3, w_heads, b_heads)

    grid = (b_pad // tile_i, b_pad // tile_j)

    mlp_flops = 2 * (IN_DIM * HIDDEN + 2 * HIDDEN * HIDDEN + 2 * HIDDEN)
    weight_bytes = 2 * (IN_DIM * HIDDEN + 2 * HIDDEN * HIDDEN + 2 * HIDDEN) \
        + 4 * (2 * IN_DIM + 7 * HIDDEN + 2)
    cost = pl.CostEstimate(
        flops=int(b_pad * mlp_flops + 5 * b_pad * b_pad),
        transcendentals=int(b_pad * b_pad),
        bytes_accessed=int(4 * b_pad * b_pad + 4 * b_pad * (IN_DIM + 1) + weight_bytes),
    )

    q_pad = pl.pallas_call(
        critic_kernel,
        out_shape=jax.ShapeDtypeStruct((b_pad, b_pad), jnp.float32),
        grid_spec=pltpu.PrefetchScalarGridSpec(
            num_scalar_prefetch=0,
            grid=grid,
            in_specs=[
                pl.BlockSpec((tile_i, IN_DIM), lambda i, j: (i, 0)),   # x_cat: row tile
                pl.BlockSpec((1, tile_j), lambda i, j: (0, j)),        # dist: column tile
            ] + [
                pl.BlockSpec(a.shape, lambda i, j: (0, 0))             # weights: resident
                for a in weight_args
            ],
            out_specs=pl.BlockSpec((tile_i, tile_j), lambda i, j: (i, j)),
            scratch_shapes=[pltpu.VMEM((tile_i, 1), jnp.float32),      # m cache
                            pltpu.VMEM((tile_i, 1), jnp.float32)],     # a cache
        ),
        compiler_params=pltpu.CompilerParams(
            # i is independent (megacore-shardable on v7x); j carries the m/a scratch
            # dependency (MLP runs at j == 0), so it must stay "arbitrary".
            dimension_semantics=("parallel", "arbitrary"),
            vmem_limit_bytes=32 * 1024 * 1024,
        ),
        cost_estimate=cost,
    )(x_cat, dist_row, *weight_args)

    return q_pad[:B, :B]


def make_params(key):
    """Deterministic parameter init (shapes from value_prior_critic.__init__),
    with Linear weights pre-transposed to [in, out]."""
    ks = jax.random.split(key, 16)

    def lin(kw, kb, fan_in, fan_out):
        bound = 1.0 / jnp.sqrt(fan_in)
        w = jax.random.uniform(kw, (fan_in, fan_out), jnp.float32, -bound, bound)
        b = jax.random.uniform(kb, (1, fan_out), jnp.float32, -bound, bound)
        return w, b

    def ln(kw, kb, dim):
        w = 1.0 + 0.1 * jax.random.normal(kw, (1, dim), jnp.float32)
        b = 0.1 * jax.random.normal(kb, (1, dim), jnp.float32)
        return w, b

    n1w, n1b = ln(ks[0], ks[1], IN_DIM)
    w1, b1 = lin(ks[2], ks[3], IN_DIM, HIDDEN)
    n2w, n2b = ln(ks[4], ks[5], HIDDEN)
    w2, b2 = lin(ks[6], ks[7], HIDDEN, HIDDEN)
    n3w, n3b = ln(ks[8], ks[9], HIDDEN)
    w3, b3 = lin(ks[10], ks[11], HIDDEN, HIDDEN)
    wm, bm = lin(ks[12], ks[13], HIDDEN, 1)
    wa, ba = lin(ks[14], ks[15], HIDDEN, 1)
    return (n1w, n1b, w1, b1, n2w, n2b, w2, b2, n3w, n3b, w3, b3, wm, bm, wa, ba)


def reference_forward(x, actions, params, matmul_dtype=jnp.float32):
    """Pure-JAX reference. matmul_dtype=bfloat16 mirrors the kernel's precision policy."""
    (n1w, n1b, w1, b1, n2w, n2b, w2, b2, n3w, n3b, w3, b3, wm, bm, wa, ba) = params

    def dot(h, w):
        return jnp.dot(h.astype(matmul_dtype), w.astype(matmul_dtype),
                       preferred_element_type=jnp.float32)

    g = x[:, -GOAL:]
    ag = x[:, -2 * GOAL:-GOAL]
    dist = jnp.sqrt(jnp.sum((g - ag) ** 2, axis=-1)) * 10.0           # (B,)
    h = jnp.concatenate([x, actions / ACTION_MAX], axis=1)
    h = _layernorm(h, n1w, n1b)
    h = jnp.clip(h, -CLIP_MAX, CLIP_MAX)
    h = jax.nn.relu(dot(h, w1) + b1)
    h = _layernorm(h, n2w, n2b)
    h = jax.nn.relu(dot(h, w2) + b2)
    h = _layernorm(h, n3w, n3b)
    h = jax.nn.relu(dot(h, w3) + b3)
    m = dot(h, wm) + bm                                               # (B,1)
    a = dot(h, wa) + ba                                               # (B,1)
    z = jax.nn.relu(dist[None, :] * m)                                # (B,B)
    return (1.0 / GAMMA) * (GAMMA ** z - 1.0) + a


if __name__ == "__main__":
    key = jax.random.PRNGKey(0)
    k_x, k_a, k_p = jax.random.split(key, 3)

    B = 8
    x = jax.random.normal(k_x, (B, X_DIM), jnp.float32)
    actions = ACTION_MAX * jax.random.uniform(k_a, (B, ACT), jnp.float32, -1.0, 1.0)
    params = make_params(k_p)

    fwd = jax.jit(value_prior_critic_forward)
    q = jax.block_until_ready(fwd(x, actions, params))
    assert q.shape == (B, B)

    # Tight check vs a reference that mirrors the kernel's bf16-matmul / f32-accumulate policy.
    q_ref_bf16 = jax.block_until_ready(reference_forward(x, actions, params, jnp.bfloat16))
    assert bool(jnp.allclose(q, q_ref_bf16, atol=1e-3, rtol=1e-3))

    # Sanity check vs the pure-f32 reference (bounds the bf16 precision policy).
    q_ref_f32 = jax.block_until_ready(reference_forward(x, actions, params, jnp.float32))
    assert bool(jnp.allclose(q, q_ref_f32, atol=5e-2, rtol=5e-2))

    print("KERNEL_OK")
</pallas_src>

<mosaic_0001>
module attributes {stable_mosaic.version = 11 : i64} {
  func.func @critic_kernel(%arg0: i32, %arg1: i32, %arg2: memref<128x20xf32, #tpu.memory_space<vmem>>, %arg3: memref<1x128xf32, #tpu.memory_space<vmem>>, %arg4: memref<1x20xf32, #tpu.memory_space<vmem>>, %arg5: memref<1x20xf32, #tpu.memory_space<vmem>>, %arg6: memref<20x256xbf16, #tpu.memory_space<vmem>>, %arg7: memref<1x256xf32, #tpu.memory_space<vmem>>, %arg8: memref<1x256xf32, #tpu.memory_space<vmem>>, %arg9: memref<1x256xf32, #tpu.memory_space<vmem>>, %arg10: memref<256x256xbf16, #tpu.memory_space<vmem>>, %arg11: memref<1x256xf32, #tpu.memory_space<vmem>>, %arg12: memref<1x256xf32, #tpu.memory_space<vmem>>, %arg13: memref<1x256xf32, #tpu.memory_space<vmem>>, %arg14: memref<256x256xbf16, #tpu.memory_space<vmem>>, %arg15: memref<1x256xf32, #tpu.memory_space<vmem>>, %arg16: memref<256x2xbf16, #tpu.memory_space<vmem>>, %arg17: memref<1x2xf32, #tpu.memory_space<vmem>>, %arg18: memref<128x128xf32, #tpu.memory_space<vmem>>, %arg19: memref<128x1xf32, #tpu.memory_space<vmem>>, %arg20: memref<128x1xf32, #tpu.memory_space<vmem>>) attributes {dimension_semantics = [#tpu.dimension_semantics<parallel>, #tpu.dimension_semantics<arbitrary>], iteration_bounds = array<i64: 1, 1>, scalar_prefetch = 0 : i64, scratch_operands = 2 : i64, tpu.core_type = #tpu.core_type<tc>, window_params = [{transform_indices = @transform_0, window_bounds = array<i64: 128, 20>}, {transform_indices = @transform_1, window_bounds = array<i64: 1, 128>}, {pipeline_mode = #tpu.pipeline_mode<synchronous>, transform_indices = @transform_2, window_bounds = array<i64: 1, 20>}, {pipeline_mode = #tpu.pipeline_mode<synchronous>, transform_indices = @transform_3, window_bounds = array<i64: 1, 20>}, {pipeline_mode = #tpu.pipeline_mode<synchronous>, transform_indices = @transform_4, window_bounds = array<i64: 20, 256>}, {pipeline_mode = #tpu.pipeline_mode<synchronous>, transform_indices = @transform_5, window_bounds = array<i64: 1, 256>}, {pipeline_mode = #tpu.pipeline_mode<synchronous>, transform_indices = @transform_6, window_bounds = array<i64: 1, 256>}, {pipeline_mode = #tpu.pipeline_mode<synchronous>, transform_indices = @transform_7, window_bounds = array<i64: 1, 256>}, {pipeline_mode = #tpu.pipeline_mode<synchronous>, transform_indices = @transform_8, window_bounds = array<i64: 256, 256>}, {pipeline_mode = #tpu.pipeline_mode<synchronous>, transform_indices = @transform_9, window_bounds = array<i64: 1, 256>}, {pipeline_mode = #tpu.pipeline_mode<synchronous>, transform_indices = @transform_10, window_bounds = array<i64: 1, 256>}, {pipeline_mode = #tpu.pipeline_mode<synchronous>, transform_indices = @transform_11, window_bounds = array<i64: 1, 256>}, {pipeline_mode = #tpu.pipeline_mode<synchronous>, transform_indices = @transform_12, window_bounds = array<i64: 256, 256>}, {pipeline_mode = #tpu.pipeline_mode<synchronous>, transform_indices = @transform_13, window_bounds = array<i64: 1, 256>}, {pipeline_mode = #tpu.pipeline_mode<synchronous>, transform_indices = @transform_14, window_bounds = array<i64: 256, 2>}, {pipeline_mode = #tpu.pipeline_mode<synchronous>, transform_indices = @transform_15, window_bounds = array<i64: 1, 2>}, {transform_indices = @transform_16, window_bounds = array<i64: 128, 128>}]} {
    %c0_i32 = arith.constant 0 : i32
    %0 = arith.cmpi eq, %arg1, %c0_i32 : i32
    %1 = arith.extui %0 : i1 to i32
    %c0_i32_0 = arith.constant 0 : i32
    %2 = arith.cmpi ne, %1, %c0_i32_0 : i32
    scf.if %2 {
      %c0_11 = arith.constant 0 : index
      %c0_12 = arith.constant 0 : index
      %21 = vector.load %arg2[%c0_11, %c0_12] : memref<128x20xf32, #tpu.memory_space<vmem>>, vector<128x20xf32>
      %c0_13 = arith.constant 0 : index
      %c0_14 = arith.constant 0 : index
      %22 = vector.load %arg4[%c0_13, %c0_14] : memref<1x20xf32, #tpu.memory_space<vmem>>, vector<1x20xf32>
      %c0_15 = arith.constant 0 : index
      %c0_16 = arith.constant 0 : index
      %23 = vector.load %arg5[%c0_15, %c0_16] : memref<1x20xf32, #tpu.memory_space<vmem>>, vector<1x20xf32>
      %cst_17 = arith.constant dense<0.000000e+00> : vector<128xf32>
      %24 = vector.multi_reduction <add>, %21, %cst_17 [1] : vector<128x20xf32> to vector<128xf32>
      %25 = vector.shape_cast %24 : vector<128xf32> to vector<128x1xf32>
      %cst_18 = arith.constant 2.000000e+01 : f32
      %26 = vector.broadcast %cst_18 : f32 to vector<128x1xf32>
      %27 = arith.divf %25, %26 : vector<128x1xf32>
      %28 = vector.broadcast %27 : vector<128x1xf32> to vector<128x20xf32>
      %29 = arith.subf %21, %28 : vector<128x20xf32>
      %30 = arith.mulf %29, %29 : vector<128x20xf32>
      %cst_19 = arith.constant dense<0.000000e+00> : vector<128xf32>
      %31 = vector.multi_reduction <add>, %30, %cst_19 [1] : vector<128x20xf32> to vector<128xf32>
      %32 = vector.shape_cast %31 : vector<128xf32> to vector<128x1xf32>
      %cst_20 = arith.constant 2.000000e+01 : f32
      %33 = vector.broadcast %cst_20 : f32 to vector<128x1xf32>
      %34 = arith.divf %32, %33 : vector<128x1xf32>
      %35 = vector.broadcast %27 : vector<128x1xf32> to vector<128x20xf32>
      %36 = arith.subf %21, %35 : vector<128x20xf32>
      %cst_21 = arith.constant 9.99999974E-6 : f32
      %37 = vector.broadcast %cst_21 : f32 to vector<128x1xf32>
      %38 = arith.addf %34, %37 : vector<128x1xf32>
      %39 = math.rsqrt %38 : vector<128x1xf32>
      %40 = vector.broadcast %39 : vector<128x1xf32> to vector<128x20xf32>
      %41 = arith.mulf %36, %40 : vector<128x20xf32>
      %42 = vector.broadcast %22 : vector<1x20xf32> to vector<128x20xf32>
      %43 = arith.mulf %41, %42 : vector<128x20xf32>
      %44 = vector.broadcast %23 : vector<1x20xf32> to vector<128x20xf32>
      %45 = arith.addf %43, %44 : vector<128x20xf32>
      %cst_22 = arith.constant -3.000000e+00 : f32
      %cst_23 = arith.constant 3.000000e+00 : f32
      %46 = vector.broadcast %cst_22 : f32 to vector<128x20xf32>
      %47 = arith.maximumf %46, %45 : vector<128x20xf32>
      %48 = vector.broadcast %cst_23 : f32 to vector<128x20xf32>
      %49 = arith.minimumf %48, %47 : vector<128x20xf32>
      %50 = arith.truncf %49 : vector<128x20xf32> to vector<128x20xbf16>
      %c0_24 = arith.constant 0 : index
      %c0_25 = arith.constant 0 : index
      %51 = vector.load %arg6[%c0_24, %c0_25] : memref<20x256xbf16, #tpu.memory_space<vmem>>, vector<20x256xbf16>
      %cst_26 = arith.constant dense<0.000000e+00> : vector<128x256xf32>
      %52 = tpu.matmul %50, %51, %cst_26 {dimension_numbers = #tpu.dot_dimension_numbers<[1], [0], [0], [1], [0, 0, 1, 1], [], []>} : vector<128x20xbf16>, vector<20x256xbf16>, vector<128x256xf32> -> vector<128x256xf32>
      %c0_27 = arith.constant 0 : index
      %c0_28 = arith.constant 0 : index
      %53 = vector.load %arg7[%c0_27, %c0_28] : memref<1x256xf32, #tpu.memory_space<vmem>>, vector<1x256xf32>
      %54 = vector.broadcast %53 : vector<1x256xf32> to vector<128x256xf32>
      %55 = arith.addf %52, %54 : vector<128x256xf32>
      %cst_29 = arith.constant 0.000000e+00 : f32
      %56 = vector.broadcast %cst_29 : f32 to vector<128x256xf32>
      %57 = arith.maximumf %55, %56 : vector<128x256xf32>
      %c0_30 = arith.constant 0 : index
      %c0_31 = arith.constant 0 : index
      %58 = vector.load %arg8[%c0_30, %c0_31] : memref<1x256xf32, #tpu.memory_space<vmem>>, vector<1x256xf32>
      %c0_32 = arith.constant 0 : index
      %c0_33 = arith.constant 0 : index
      %59 = vector.load %arg9[%c0_32, %c0_33] : memref<1x256xf32, #tpu.memory_space<vmem>>, vector<1x256xf32>
      %cst_34 = arith.constant dense<0.000000e+00> : vector<128xf32>
      %60 = vector.multi_reduction <add>, %57, %cst_34 [1] : vector<128x256xf32> to vector<128xf32>
      %61 = vector.shape_cast %60 : vector<128xf32> to vector<128x1xf32>
      %cst_35 = arith.constant 2.560000e+02 : f32
      %62 = vector.broadcast %cst_35 : f32 to vector<128x1xf32>
      %63 = arith.divf %61, %62 : vector<128x1xf32>
      %64 = vector.broadcast %63 : vector<128x1xf32> to vector<128x256xf32>
      %65 = arith.subf %57, %64 : vector<128x256xf32>
      %66 = arith.mulf %65, %65 : vector<128x256xf32>
      %cst_36 = arith.constant dense<0.000000e+00> : vector<128xf32>
      %67 = vector.multi_reduction <add>, %66, %cst_36 [1] : vector<128x256xf32> to vector<128xf32>
      %68 = vector.shape_cast %67 : vector<128xf32> to vector<128x1xf32>
      %cst_37 = arith.constant 2.560000e+02 : f32
      %69 = vector.broadcast %cst_37 : f32 to vector<128x1xf32>
      %70 = arith.divf %68, %69 : vector<128x1xf32>
      %71 = vector.broadcast %63 : vector<128x1xf32> to vector<128x256xf32>
      %72 = arith.subf %57, %71 : vector<128x256xf32>
      %cst_38 = arith.constant 9.99999974E-6 : f32
      %73 = vector.broadcast %cst_38 : f32 to vector<128x1xf32>
      %74 = arith.addf %70, %73 : vector<128x1xf32>
      %75 = math.rsqrt %74 : vector<128x1xf32>
      %76 = vector.broadcast %75 : vector<128x1xf32> to vector<128x256xf32>
      %77 = arith.mulf %72, %76 : vector<128x256xf32>
      %78 = vector.broadcast %58 : vector<1x256xf32> to vector<128x256xf32>
      %79 = arith.mulf %77, %78 : vector<128x256xf32>
      %80 = vector.broadcast %59 : vector<1x256xf32> to vector<128x256xf32>
      %81 = arith.addf %79, %80 : vector<128x256xf32>
      %82 = arith.truncf %81 : vector<128x256xf32> to vector<128x256xbf16>
      %c0_39 = arith.constant 0 : index
      %c0_40 = arith.constant 0 : index
      %83 = vector.load %arg10[%c0_39, %c0_40] : memref<256x256xbf16, #tpu.memory_space<vmem>>, vector<256x256xbf16>
      %cst_41 = arith.constant dense<0.000000e+00> : vector<128x256xf32>
      %84 = tpu.matmul %82, %83, %cst_41 {dimension_numbers = #tpu.dot_dimension_numbers<[1], [0], [0], [1], [0, 0, 1, 1], [], []>} : vector<128x256xbf16>, vector<256x256xbf16>, vector<128x256xf32> -> vector<128x256xf32>
      %c0_42 = arith.constant 0 : index
      %c0_43 = arith.constant 0 : index
      %85 = vector.load %arg11[%c0_42, %c0_43] : memref<1x256xf32, #tpu.memory_space<vmem>>, vector<1x256xf32>
      %86 = vector.broadcast %85 : vector<1x256xf32> to vector<128x256xf32>
      %87 = arith.addf %84, %86 : vector<128x256xf32>
      %cst_44 = arith.constant 0.000000e+00 : f32
      %88 = vector.broadcast %cst_44 : f32 to vector<128x256xf32>
      %89 = arith.maximumf %87, %88 : vector<128x256xf32>
      %c0_45 = arith.constant 0 : index
      %c0_46 = arith.constant 0 : index
      %90 = vector.load %arg12[%c0_45, %c0_46] : memref<1x256xf32, #tpu.memory_space<vmem>>, vector<1x256xf32>
      %c0_47 = arith.constant 0 : index
      %c0_48 = arith.constant 0 : index
      %91 = vector.load %arg13[%c0_47, %c0_48] : memref<1x256xf32, #tpu.memory_space<vmem>>, vector<1x256xf32>
      %cst_49 = arith.constant dense<0.000000e+00> : vector<128xf32>
      %92 = vector.multi_reduction <add>, %89, %cst_49 [1] : vector<128x256xf32> to vector<128xf32>
      %93 = vector.shape_cast %92 : vector<128xf32> to vector<128x1xf32>
      %cst_50 = arith.constant 2.560000e+02 : f32
      %94 = vector.broadcast %cst_50 : f32 to vector<128x1xf32>
      %95 = arith.divf %93, %94 : vector<128x1xf32>
      %96 = vector.broadcast %95 : vector<128x1xf32> to vector<128x256xf32>
      %97 = arith.subf %89, %96 : vector<128x256xf32>
      %98 = arith.mulf %97, %97 : vector<128x256xf32>
      %cst_51 = arith.constant dense<0.000000e+00> : vector<128xf32>
      %99 = vector.multi_reduction <add>, %98, %cst_51 [1] : vector<128x256xf32> to vector<128xf32>
      %100 = vector.shape_cast %99 : vector<128xf32> to vector<128x1xf32>
      %cst_52 = arith.constant 2.560000e+02 : f32
      %101 = vector.broadcast %cst_52 : f32 to vector<128x1xf32>
      %102 = arith.divf %100, %101 : vector<128x1xf32>
      %103 = vector.broadcast %95 : vector<128x1xf32> to vector<128x256xf32>
      %104 = arith.subf %89, %103 : vector<128x256xf32>
      %cst_53 = arith.constant 9.99999974E-6 : f32
      %105 = vector.broadcast %cst_53 : f32 to vector<128x1xf32>
      %106 = arith.addf %102, %105 : vector<128x1xf32>
      %107 = math.rsqrt %106 : vector<128x1xf32>
      %108 = vector.broadcast %107 : vector<128x1xf32> to vector<128x256xf32>
      %109 = arith.mulf %104, %108 : vector<128x256xf32>
      %110 = vector.broadcast %90 : vector<1x256xf32> to vector<128x256xf32>
      %111 = arith.mulf %109, %110 : vector<128x256xf32>
      %112 = vector.broadcast %91 : vector<1x256xf32> to vector<128x256xf32>
      %113 = arith.addf %111, %112 : vector<128x256xf32>
      %114 = arith.truncf %113 : vector<128x256xf32> to vector<128x256xbf16>
      %c0_54 = arith.constant 0 : index
      %c0_55 = arith.constant 0 : index
      %115 = vector.load %arg14[%c0_54, %c0_55] : memref<256x256xbf16, #tpu.memory_space<vmem>>, vector<256x256xbf16>
      %cst_56 = arith.constant dense<0.000000e+00> : vector<128x256xf32>
      %116 = tpu.matmul %114, %115, %cst_56 {dimension_numbers = #tpu.dot_dimension_numbers<[1], [0], [0], [1], [0, 0, 1, 1], [], []>} : vector<128x256xbf16>, vector<256x256xbf16>, vector<128x256xf32> -> vector<128x256xf32>
      %c0_57 = arith.constant 0 : index
      %c0_58 = arith.constant 0 : index
      %117 = vector.load %arg15[%c0_57, %c0_58] : memref<1x256xf32, #tpu.memory_space<vmem>>, vector<1x256xf32>
      %118 = vector.broadcast %117 : vector<1x256xf32> to vector<128x256xf32>
      %119 = arith.addf %116, %118 : vector<128x256xf32>
      %cst_59 = arith.constant 0.000000e+00 : f32
      %120 = vector.broadcast %cst_59 : f32 to vector<128x256xf32>
      %121 = arith.maximumf %119, %120 : vector<128x256xf32>
      %122 = arith.truncf %121 : vector<128x256xf32> to vector<128x256xbf16>
      %c0_60 = arith.constant 0 : index
      %c0_61 = arith.constant 0 : index
      %123 = vector.load %arg16[%c0_60, %c0_61] : memref<256x2xbf16, #tpu.memory_space<vmem>>, vector<256x2xbf16>
      %cst_62 = arith.constant dense<0.000000e+00> : vector<128x2xf32>
      %124 = tpu.matmul %122, %123, %cst_62 {dimension_numbers = #tpu.dot_dimension_numbers<[1], [0], [0], [1], [0, 0, 1, 1], [], []>} : vector<128x256xbf16>, vector<256x2xbf16>, vector<128x2xf32> -> vector<128x2xf32>
      %c0_63 = arith.constant 0 : index
      %c0_64 = arith.constant 0 : index
      %125 = vector.load %arg17[%c0_63, %c0_64] : memref<1x2xf32, #tpu.memory_space<vmem>>, vector<1x2xf32>
      %126 = vector.broadcast %125 : vector<1x2xf32> to vector<128x2xf32>
      %127 = arith.addf %124, %126 : vector<128x2xf32>
      %128 = vector.extract_strided_slice %127 {offsets = [0, 0], sizes = [128, 1], strides = [1, 1]} : vector<128x2xf32> to vector<128x1xf32>
      %c0_65 = arith.constant 0 : index
      %c0_66 = arith.constant 0 : index
      %129 = vector.load %arg19[%c0_65, %c0_66] : memref<128x1xf32, #tpu.memory_space<vmem>>, vector<128x1xf32>
      tpu.vector_store %arg19[%c0_65, %c0_66], %128 {strides = array<i32>} : memref<128x1xf32, #tpu.memory_space<vmem>>, vector<128x1xf32>,
      %130 = vector.extract_strided_slice %127 {offsets = [0, 1], sizes = [128, 1], strides = [1, 1]} : vector<128x2xf32> to vector<128x1xf32>
      %c0_67 = arith.constant 0 : index
      %c0_68 = arith.constant 0 : index
      %131 = vector.load %arg20[%c0_67, %c0_68] : memref<128x1xf32, #tpu.memory_space<vmem>>, vector<128x1xf32>
      tpu.vector_store %arg20[%c0_67, %c0_68], %130 {strides = array<i32>} : memref<128x1xf32, #tpu.memory_space<vmem>>, vector<128x1xf32>,
    } else {
    }
    %c0 = arith.constant 0 : index
    %c0_1 = arith.constant 0 : index
    %3 = vector.load %arg19[%c0, %c0_1] : memref<128x1xf32, #tpu.memory_space<vmem>>, vector<128x1xf32>
    %c0_2 = arith.constant 0 : index
    %c0_3 = arith.constant 0 : index
    %4 = vector.load %arg20[%c0_2, %c0_3] : memref<128x1xf32, #tpu.memory_space<vmem>>, vector<128x1xf32>
    %c0_4 = arith.constant 0 : index
    %c0_5 = arith.constant 0 : index
    %5 = vector.load %arg3[%c0_4, %c0_5] : memref<1x128xf32, #tpu.memory_space<vmem>>, vector<1x128xf32>
    %6 = vector.broadcast %3 : vector<128x1xf32> to vector<128x128xf32>
    %7 = vector.broadcast %5 : vector<1x128xf32> to vector<128x128xf32>
    %8 = arith.mulf %6, %7 : vector<128x128xf32>
    %cst = arith.constant 0.000000e+00 : f32
    %9 = vector.broadcast %cst : f32 to vector<128x128xf32>
    %10 = arith.maximumf %8, %9 : vector<128x128xf32>
    %cst_6 = arith.constant -0.0202027075 : f32
    %11 = vector.broadcast %cst_6 : f32 to vector<128x128xf32>
    %12 = arith.mulf %10, %11 : vector<128x128xf32>
    %13 = math.exp %12 : vector<128x128xf32>
    %cst_7 = arith.constant 1.000000e+00 : f32
    %14 = vector.broadcast %cst_7 : f32 to vector<128x128xf32>
    %15 = arith.subf %13, %14 : vector<128x128xf32>
    %cst_8 = arith.constant 1.02040815 : f32
    %16 = vector.broadcast %cst_8 : f32 to vector<128x128xf32>
    %17 = arith.mulf %16, %15 : vector<128x128xf32>
    %18 = vector.broadcast %4 : vector<128x1xf32> to vector<128x128xf32>
    %19 = arith.addf %17, %18 : vector<128x128xf32>
    %c0_9 = arith.constant 0 : index
    %c0_10 = arith.constant 0 : index
    %20 = vector.load %arg18[%c0_9, %c0_10] : memref<128x128xf32, #tpu.memory_space<vmem>>, vector<128x128xf32>
    tpu.vector_store %arg18[%c0_9, %c0_10], %19 {strides = array<i32>} : memref<128x128xf32, #tpu.memory_space<vmem>>, vector<128x128xf32>,
    return
  }
  func.func @transform_0(%arg0: i32, %arg1: i32) -> (i32, i32) {
    %c0_i32 = arith.constant 0 : i32
    %c0_i32_0 = arith.constant 0 : i32
    return %arg0, %c0_i32 : i32, i32
  }
  func.func @transform_1(%arg0: i32, %arg1: i32) -> (i32, i32) {
    %c0_i32 = arith.constant 0 : i32
    %c0_i32_0 = arith.constant 0 : i32
    return %c0_i32, %arg1 : i32, i32
  }
  func.func @transform_2(%arg0: i32, %arg1: i32) -> (i32, i32) {
    %c0_i32 = arith.constant 0 : i32
    %c0_i32_0 = arith.constant 0 : i32
    %c0_i32_1 = arith.constant 0 : i32
    return %c0_i32, %c0_i32_0 : i32, i32
  }
  func.func @transform_3(%arg0: i32, %arg1: i32) -> (i32, i32) {
    %c0_i32 = arith.constant 0 : i32
    %c0_i32_0 = arith.constant 0 : i32
    %c0_i32_1 = arith.constant 0 : i32
    return %c0_i32, %c0_i32_0 : i32, i32
  }
  func.func @transform_4(%arg0: i32, %arg1: i32) -> (i32, i32) {
    %c0_i32 = arith.constant 0 : i32
    %c0_i32_0 = arith.constant 0 : i32
    %c0_i32_1 = arith.constant 0 : i32
    return %c0_i32, %c0_i32_0 : i32, i32
  }
  func.func @transform_5(%arg0: i32, %arg1: i32) -> (i32, i32) {
    %c0_i32 = arith.constant 0 : i32
    %c0_i32_0 = arith.constant 0 : i32
    %c0_i32_1 = arith.constant 0 : i32
    return %c0_i32, %c0_i32_0 : i32, i32
  }
  func.func @transform_6(%arg0: i32, %arg1: i32) -> (i32, i32) {
    %c0_i32 = arith.constant 0 : i32
    %c0_i32_0 = arith.constant 0 : i32
    %c0_i32_1 = arith.constant 0 : i32
    return %c0_i32, %c0_i32_0 : i32, i32
  }
  func.func @transform_7(%arg0: i32, %arg1: i32) -> (i32, i32) {
    %c0_i32 = arith.constant 0 : i32
    %c0_i32_0 = arith.constant 0 : i32
    %c0_i32_1 = arith.constant 0 : i32
    return %c0_i32, %c0_i32_0 : i32, i32
  }
  func.func @transform_8(%arg0: i32, %arg1: i32) -> (i32, i32) {
    %c0_i32 = arith.constant 0 : i32
    %c0_i32_0 = arith.constant 0 : i32
    %c0_i32_1 = arith.constant 0 : i32
    return %c0_i32, %c0_i32_0 : i32, i32
  }
  func.func @transform_9(%arg0: i32, %arg1: i32) -> (i32, i32) {
    %c0_i32 = arith.constant 0 : i32
    %c0_i32_0 = arith.constant 0 : i32
    %c0_i32_1 = arith.constant 0 : i32
    return %c0_i32, %c0_i32_0 : i32, i32
  }
  func.func @transform_10(%arg0: i32, %arg1: i32) -> (i32, i32) {
    %c0_i32 = arith.constant 0 : i32
    %c0_i32_0 = arith.constant 0 : i32
    %c0_i32_1 = arith.constant 0 : i32
    return %c0_i32, %c0_i32_0 : i32, i32
  }
  func.func @transform_11(%arg0: i32, %arg1: i32) -> (i32, i32) {
    %c0_i32 = arith.constant 0 : i32
    %c0_i32_0 = arith.constant 0 : i32
    %c0_i32_1 = arith.constant 0 : i32
    return %c0_i32, %c0_i32_0 : i32, i32
  }
  func.func @transform_12(%arg0: i32, %arg1: i32) -> (i32, i32) {
    %c0_i32 = arith.constant 0 : i32
    %c0_i32_0 = arith.constant 0 : i32
    %c0_i32_1 = arith.constant 0 : i32
    return %c0_i32, %c0_i32_0 : i32, i32
  }
  func.func @transform_13(%arg0: i32, %arg1: i32) -> (i32, i32) {
    %c0_i32 = arith.constant 0 : i32
    %c0_i32_0 = arith.constant 0 : i32
    %c0_i32_1 = arith.constant 0 : i32
    return %c0_i32, %c0_i32_0 : i32, i32
  }
  func.func @transform_14(%arg0: i32, %arg1: i32) -> (i32, i32) {
    %c0_i32 = arith.constant 0 : i32
    %c0_i32_0 = arith.constant 0 : i32
    %c0_i32_1 = arith.constant 0 : i32
    return %c0_i32, %c0_i32_0 : i32, i32
  }
  func.func @transform_15(%arg0: i32, %arg1: i32) -> (i32, i32) {
    %c0_i32 = arith.constant 0 : i32
    %c0_i32_0 = arith.constant 0 : i32
    %c0_i32_1 = arith.constant 0 : i32
    return %c0_i32, %c0_i32_0 : i32, i32
  }
  func.func @transform_16(%arg0: i32, %arg1: i32) -> (i32, i32) {
    %c0_i32 = arith.constant 0 : i32
    return %arg0, %arg1 : i32, i32
  }
}

</mosaic_0001>

<bundles_post_ra>
// kernel: value_prior_critic_forward.1
= control target key start
LH: loop header
LB: loop body
LE: loop exit
PB: predicated region body
PF: predicated region fallthrough
CT: control target
= control target key end

     0   :  { %vm76_vm0 = vcmask 162816   ;;  %v3830_v14 = vmov 20.0   ;;  %vm562_vm2 = vcmask 1041408   ;;  %s6136_s0 = inlined_call_operand.vmem [shape: f32[128,20], index: 0, kind: input, shape index: {}]   ;;  %s6137_s2 = inlined_call_operand.vmem [shape: f32[1,20], index: 2, kind: input, shape index: {}]   ;;  %s6138_s3 = inlined_call_operand.vmem [shape: f32[1,20], index: 3, kind: input, shape index: {}]   ;;  %s6139_s4 = inlined_call_operand.vmem [shape: bf16[20,256], index: 4, kind: input, shape index: {}]   ;;  %s6140_s5 = inlined_call_operand.vmem [shape: f32[1,256], index: 5, kind: input, shape index: {}]   ;;  %s6141_s8 = inlined_call_operand.vmem [shape: bf16[256,256], index: 8, kind: input, shape index: {}]   ;;  %s6142_s6 = inlined_call_operand.vmem [shape: f32[1,256], index: 6, kind: input, shape index: {}]   ;;  %s6143_s7 = inlined_call_operand.vmem [shape: f32[1,256], index: 7, kind: input, shape index: {}]   ;;  %s6144_s9 = inlined_call_operand.vmem [shape: f32[1,256], index: 9, kind: input, shape index: {}]   ;;  %s6145_s12 = inlined_call_operand.vmem [shape: bf16[256,256], index: 12, kind: input, shape index: {}]   ;;  %s6146_s10 = inlined_call_operand.vmem [shape: f32[1,256], index: 10, kind: input, shape index: {}]   ;;  %s6147_s11 = inlined_call_operand.vmem [shape: f32[1,256], index: 11, kind: input, shape index: {}]   ;;  %s6148_s14 = inlined_call_operand.vmem [shape: bf16[256,2], index: 14, kind: input, shape index: {}]   ;;  %s6149_s13 = inlined_call_operand.vmem [shape: f32[1,256], index: 13, kind: input, shape index: {}]   ;;  %s6150_s15 = inlined_call_operand.vmem [shape: f32[1,2], index: 15, kind: input, shape index: {}]   ;;  %s6151_s1 = inlined_call_operand.vmem [shape: f32[1,128], index: 1, kind: input, shape index: {}]   ;;  %s6152_s16 = inlined_call_operand.vmem [shape: f32[128,128], index: 16, kind: output, shape index: {}]  }
   0x1   :  { %6162 = sst [smem:[#allocation4_spill]] %s6136_s0  ;;  %3698 = vrcp.f32 %v3830_v14 }
   0x2   :  { %s6163_s23 = sld [smem:[#allocation4_spill]] }
   0x7   :  { %v3699_v15 = vpop.eup %3698 }
   0x8   :  { %v60_v0 = vld [vmem:[%s6163_s23 + $0x10] sm:$0xff]  ;;  %v58_v1 = vld [vmem:[%s6163_s23] sm:$0xff]  ;;  %v61_v6 = vld [vmem:[%s6163_s23 + $0x18] sm:$0xff]  ;;  %v126_v16 = vmul.f32 20.0, %v3699_v15  ;;  %vm130_vm1 = vweird.f32 %v3699_v15 }
   0x9   :  { %v83_v2 = vsel %vm76_vm0, %v60_v0, 0.0  ;;  %v77_v3 = vsel %vm76_vm0, %v58_v1, 0.0  ;;  %v62_v4 = vld [vmem:[%s6163_s23 + $0x20] sm:$0xff]  ;;  %v59_v7 = vld [vmem:[%s6163_s23 + $0x8] sm:$0xff]  ;;  %v86_v9 = vsel %vm76_vm0, %v61_v6, 0.0  ;;  %v64_v12 = vld [vmem:[%s6163_s23 + $0x30] sm:$0xff] }
   0xa   :  { %84 = vadd.xlane.f32.xlu1 %v83_v2  ;;  %78 = vadd.xlane.f32.xlu0 %v77_v3  ;;  %v89_v5 = vsel %vm76_vm0, %v62_v4, 0.0  ;;  %v63_v8 = vld [vmem:[%s6163_s23 + $0x28] sm:$0xff]  ;;  %v80_v10 = vsel %vm76_vm0, %v59_v7, 0.0  ;;  %v95_v13 = vsel %vm76_vm0, %v64_v12, 0.0  ;;  %v127_v17 = vsub.f32 1.0, %v126_v16  ;;  %v3962_v34 = vld [vmem:[%s6163_s23 + $0x38] sm:$0xff] }
   0xb   :  { %90 = vadd.xlane.f32.xlu2 %v89_v5  ;;  %v92_v11 = vsel %vm76_vm0, %v63_v8, 0.0  ;;  %v98_v40 = vsel %vm76_vm0, %v3962_v34, 0.0  ;;  %v3986_v47 = vld [vmem:[%s6163_s23 + $0x40] sm:$0xff]  ;;  %v4002_v56 = vld [vmem:[%s6163_s23 + $0x58] sm:$0xff]  ;;  %v4007_v57 = vld [vmem:[%s6163_s23 + $0x48] sm:$0xff] }
   0xc   :  { %v128_v18 = vmul.f32 %v3699_v15, %v127_v17  ;;  %v101_v51 = vsel %vm76_vm0, %v3986_v47, 0.0  ;;  %v110_v59 = vsel %vm76_vm0, %v4002_v56, 0.0  ;;  %v104_v61 = vsel %vm76_vm0, %v4007_v57, 0.0  ;;  %v4021_v63 = vld [vmem:[%s6163_s23 + $0x60] sm:$0xff] }
   0xe   :  { %v129_v19 = vadd.f32 %v3699_v15, %v128_v18  ;;  %v3247_v18 = vld [vmem:[%s6139_s4] sm:$0xf] }
  0x10   :  { %v3947_v20 = vsel %vm130_vm1, %v3699_v15, %v129_v19  ;;  %v3606_v19 = vld [vmem:[%s6139_s4 + $0x4] sm:$0xf0] }
  0x12   :  { %87 = vadd.xlane.f32.xlu1 %v86_v9  ;;  %81 = vadd.xlane.f32.xlu0 %v80_v10 }
  0x13   :  { %93 = vadd.xlane.f32.xlu2 %v92_v11 }
  0x1b   :  { %96 = vadd.xlane.f32.xlu2 %v95_v13 }
  0x7d   :  { %v85_v21 = vpop.xlane.xlu1 %84  ;;  %v79_v22 = vpop.xlane.xlu0 %78 }
  0x7e   :  { %v132_v23 = vmul.f32 %v3947_v20, %v79_v22  ;;  %v91_v24 = vpop.xlane.xlu2 %90  ;;  %v134_v33 = vmul.f32 %v3947_v20, %v85_v21  ;;  %v3605_v21 = vld [vmem:[%s6139_s4 + $0x4] sm:$0xf]  ;;  %v3248_v22 = vor.u32 %v3606_v19, %v3247_v18 }
  0x7f   :  { %v136_v32 = vmul.f32 %v3947_v20, %v91_v24 }
  0x80   :  { %v3950_v25 = vsub.f32 %v58_v1, %v132_v23  ;;  %v3976_v42 = vsub.f32 %v60_v0, %v134_v33  ;;  %v4026_v0 = vld [vmem:[%s6163_s23 + $0x50] sm:$0xff]  ;;  %v113_v1 = vsel %vm76_vm0, %v4021_v63, 0.0  ;;  %v3249_v23 = vld [vmem:[%s6139_s4 + $0x8] sm:$0xf0] }
  0x81   :  { %v3968_v38 = vsub.f32 %v62_v4, %v136_v32  ;;  %v107_v3 = vsel %vm76_vm0, %v4026_v0, 0.0  ;;  %v4036_v4 = vld [vmem:[%s6163_s23 + $0x68] sm:$0xff]  ;;  %v3252_v24 = vor.u32 %v3605_v21, %v3249_v23  ;;  %v4111_v21 = vld [vmem:[%s6163_s23 + $0x78] sm:$0xff] }
  0x82   :  { %v164_v26 = vmul.f32 %v3950_v25, %v3950_v25  ;;  %v166_v48 = vmul.f32 %v3976_v42, %v3976_v42  ;;  %v116_v5 = vsel %vm76_vm0, %v4036_v4, 0.0 }
  0x83   :  { %v168_v46 = vmul.f32 %v3968_v38, %v3968_v38 }
  0x84   :  { %v180_v27 = vsel %vm76_vm0, %v164_v26, 0.0  ;;  %v186_v52 = vsel %vm76_vm0, %v166_v48, 0.0 }
  0x85   :  { %v88_v28 = vpop.xlane.xlu1 %87  ;;  %181 = vadd.xlane.f32.xlu0 %v180_v27  ;;  %v82_v29 = vpop.xlane.xlu0 %81  ;;  %v192_v50 = vsel %vm76_vm0, %v168_v46, 0.0 }
  0x86   :  { %v135_v30 = vmul.f32 %v3947_v20, %v88_v28  ;;  %v133_v31 = vmul.f32 %v3947_v20, %v82_v29  ;;  %v94_v37 = vpop.xlane.xlu2 %93 }
  0x87   :  { %v137_v45 = vmul.f32 %v3947_v20, %v94_v37 }
  0x88   :  { %v3964_v35 = vsub.f32 %v61_v6, %v135_v30  ;;  %v3966_v36 = vsub.f32 %v59_v7, %v133_v31  ;;  %v4043_v6 = vld [vmem:[%s6163_s23 + $0x70] sm:$0xff]  ;;  %s3833_s23 = smov 127  }
  0x89   :  { %v3990_v49 = vsub.f32 %v63_v8, %v137_v45  ;;  %v119_v7 = vsel %vm76_vm0, %v4043_v6, 0.0  ;;  %v516_v8 = vld [vmem:[%s6139_s4 + $0x10] sm:$0x33] }
  0x8a   :  { %v167_v39 = vmul.f32 %v3964_v35, %v3964_v35  ;;  %v165_v41 = vmul.f32 %v3966_v36, %v3966_v36  ;;  %v530_v9 = vunpack.c.l.b16 %v516_v8  ;;  %v531_v10 = vunpack.c.h.b16 %v516_v8 }
  0x8b   :  { %v169_v55 = vmul.f32 %v3990_v49, %v3990_v49 }
  0x8c   :  { %v189_v43 = vsel %vm76_vm0, %v167_v39, 0.0  ;;  %v183_v44 = vsel %vm76_vm0, %v165_v41, 0.0  ;;  %v534_v13 = vpack.c.b16 %v530_v9, %v530_v9  ;;  %v535_v14 = vpack.c.b16 %v531_v10, %v531_v10 }
  0x8d   :  { %190 = vadd.xlane.f32.xlu2 %v189_v43  ;;  %99 = vadd.xlane.f32.xlu0 %v98_v40  ;;  %v195_v60 = vsel %vm76_vm0, %v169_v55, 0.0 }
  0x8e   :  { %184 = vadd.xlane.f32.xlu1 %v183_v44  ;;  %v97_v53 = vpop.xlane.xlu2 %96  ;;  %v564_v16 = vsel %vm562_vm2, %v534_v13, 0  ;;  %v567_v17 = vsel %vm562_vm2, %v535_v14, 0 }
  0x8f   :  { %v138_v54 = vmul.f32 %v3947_v20, %v97_v53  ;;  %575 = vmatpush.bf16.msra.mxu0 %v564_v16  ;;  %624 = vmatpush.bf16.msra.mxu1 %v567_v17 }
  0x91   :  { %v4009_v58 = vsub.f32 %v64_v12, %v138_v54 }
  0x93   :  { %v170_v62 = vmul.f32 %v4009_v58, %v4009_v58  ;;  %576 = vmatpush.bf16.msra.mxu0 %v3248_v22  ;;  %625 = vmatpush.bf16.msra.mxu1 %v3252_v24 }
  0x95   :  { %193 = vadd.xlane.f32.xlu2 %v192_v50  ;;  %102 = vadd.xlane.f32.xlu0 %v101_v51  ;;  %v198_v2 = vsel %vm76_vm0, %v170_v62, 0.0 }
  0x96   :  { %187 = vadd.xlane.f32.xlu1 %v186_v52 }
  0x9d   :  { %111 = vadd.xlane.f32.xlu2 %v110_v59  ;;  %196 = vadd.xlane.f32.xlu0 %v195_v60 }
  0x9e   :  { %105 = vadd.xlane.f32.xlu1 %v104_v61 }
  0xa5   :  { %114 = vadd.xlane.f32.xlu2 %v113_v1  ;;  %199 = vadd.xlane.f32.xlu0 %v198_v2 }
  0xa6   :  { %108 = vadd.xlane.f32.xlu1 %v107_v3 }
  0xad   :  { %117 = vadd.xlane.f32.xlu0 %v116_v5 }
  0xb5   :  { %120 = vadd.xlane.f32.xlu0 %v119_v7 }
  0xf8   :  { %v182_v11 = vpop.xlane.xlu0 %181 }
  0xf9   :  { %v228_v12 = vmul.f32 %v182_v11, %v3947_v20 }
  0xfb   :  { %v244_v15 = vadd.f32 1e-05, %v228_v12 }
  0xfd   :  { %3700 = vrsqrt.f32 %v244_v15  ;;  %vm266_vm4 = vweird.f32 %v244_v15 }
 0x100   :  { %v191_v26 = vpop.xlane.xlu2 %190  ;;  %v100_v27 = vpop.xlane.xlu0 %99 }
 0x101   :  { %v231_v28 = vmul.f32 %v191_v26, %v3947_v20  ;;  %v185_v29 = vpop.xlane.xlu1 %184  ;;  %v139_v30 = vmul.f32 %v3947_v20, %v100_v27 }
 0x102   :  { %v229_v31 = vmul.f32 %v185_v29, %v3947_v20  ;;  %v122_v29 = vsel %vm76_vm0, %v4111_v21, 0.0 }
 0x103   :  { %v3701_v32 = vpop.eup %3700  ;;  %v4066_v33 = vadd.f32 1e-05, %v231_v28  ;;  %v4069_v37 = vsub.f32 %v3962_v34, %v139_v30 }
 0x104   :  { %v261_v39 = vmul.f32 %v3701_v32, %v244_v15  ;;  %v245_v40 = vadd.f32 1e-05, %v229_v31  ;;  %vm267_vm3 = vweird.f32 %v3701_v32 }
 0x105   :  { %3702 = vrsqrt.f32 %v4066_v33  ;;  %v171_v41 = vmul.f32 %v4069_v37, %v4069_v37  ;;  %vm4088_vm5 = vmor %vm266_vm4, %vm267_vm3  ;;  %vm296_vm11 = vweird.f32 %v4066_v33 }
 0x106   :  { %v262_v43 = vmul.f32 %v3701_v32, %v261_v39  ;;  %3704 = vrsqrt.f32 %v245_v40  ;;  %vm276_vm6 = vweird.f32 %v245_v40 }
 0x107   :  { %v201_v44 = vsel %vm76_vm0, %v171_v41, 0.0 }
 0x108   :  { %v263_v45 = vmul.f32 0.5, %v262_v43  ;;  %v194_v46 = vpop.xlane.xlu2 %193  ;;  %202 = vadd.xlane.f32.xlu1 %v201_v44  ;;  %v103_v48 = vpop.xlane.xlu0 %102 }
 0x109   :  { %v188_v50 = vpop.xlane.xlu1 %187  ;;  %v140_v51 = vmul.f32 %v3947_v20, %v103_v48  ;;  %v232_v61 = vmul.f32 %v194_v46, %v3947_v20 }
 0x10a   :  { %v264_v34 = vsub.f32 1.5, %v263_v45  ;;  %v230_v52 = vmul.f32 %v188_v50, %v3947_v20  ;;  %v4142_v45 = vld [vmem:[%s6138_s3] ss:$0 sm:$0xff] }
 0x10b   :  { %v4077_v53 = vpop.eup %3702  ;;  %v4080_v54 = vsub.f32 %v3986_v47, %v140_v51  ;;  %v4097_v8 = vadd.f32 1e-05, %v232_v61 }
 0x10c   :  { %v3705_v55 = vpop.eup %3704  ;;  %v265_v59 = vmul.f32 %v3701_v32, %v264_v34  ;;  %v291_v60 = vmul.f32 %v4077_v53, %v4066_v33  ;;  %v4085_v62 = vadd.f32 1e-05, %v230_v52  ;;  %vm297_vm12 = vweird.f32 %v4077_v53 }
 0x10d   :  { %v271_v1 = vmul.f32 %v3705_v55, %v245_v40  ;;  %v172_v47 = vmul.f32 %v4080_v54, %v4080_v54  ;;  %vm277_vm7 = vweird.f32 %v3705_v55  ;;  %vm4175_vm14 = vmor %vm296_vm11, %vm297_vm12  ;;  %vm306_vm2 = vweird.f32 %v4097_v8 }
 0x10e   :  { %3706 = vrsqrt.f32 %v4085_v62  ;;  %v269_v5 = vsel %vm4088_vm5, %v3701_v32, %v265_v59  ;;  %v292_v7 = vmul.f32 %v4077_v53, %v291_v60  ;;  %vm278_vm8 = vmor %vm276_vm6, %vm277_vm7  ;;  %vm286_vm9 = vweird.f32 %v4085_v62 }
 0x10f   :  { %v272_v3 = vmul.f32 %v3705_v55, %v271_v1  ;;  %v204_v14 = vsel %vm76_vm0, %v172_v47, 0.0  ;;  %v420_v23 = vmul.f32 %v269_v5, %v3950_v25  ;;  %3708 = vrsqrt.f32 %v4097_v8 }
 0x110   :  { %v112_v9 = vpop.xlane.xlu2 %111  ;;  %v197_v10 = vpop.xlane.xlu0 %196  ;;  %205 = vadd.xlane.f32.xlu1 %v204_v14  ;;  %v293_v24 = vmul.f32 0.5, %v292_v7 }
 0x111   :  { %v273_v11 = vmul.f32 0.5, %v272_v3  ;;  %v143_v12 = vmul.f32 %v3947_v20, %v112_v9  ;;  %v106_v13 = vpop.xlane.xlu1 %105  ;;  %v233_v15 = vmul.f32 %v197_v10, %v3947_v20 }
 0x112   :  { %v141_v16 = vmul.f32 %v3947_v20, %v106_v13  ;;  %v294_v32 = vsub.f32 1.5, %v293_v24 }
 0x113   :  { %v274_v17 = vsub.f32 1.5, %v273_v11  ;;  %v4104_v18 = vsub.f32 %v4002_v56, %v143_v12  ;;  %v4106_v19 = vadd.f32 1e-05, %v233_v15  ;;  %v4123_v56 = vld [vmem:[%s6137_s2] ss:$0 sm:$0xff] }
 0x114   :  { %v3707_v22 = vpop.eup %3706  ;;  %v4118_v26 = vsub.f32 %v4007_v57, %v141_v16  ;;  %v439_v44 = vmul.f32 %v4123_v56, %v420_v23  ;;  %v295_v3 = vmul.f32 %v4077_v53, %v294_v32 }
 0x115   :  { %v275_v27 = vmul.f32 %v3705_v55, %v274_v17  ;;  %v281_v28 = vmul.f32 %v3707_v22, %v4085_v62  ;;  %3710 = vrsqrt.f32 %v4106_v19  ;;  %v175_v25 = vmul.f32 %v4104_v18, %v4104_v18  ;;  %v4146_v51 = vpop.eup %3708 }
 0x116   :  { %v173_v57 = vmul.f32 %v4118_v26, %v4118_v26  ;;  %vm287_vm10 = vweird.f32 %v3707_v22  ;;  %v458_v33 = vadd.f32 %v4142_v45, %v439_v44  ;;  %v299_v16 = vsel %vm4175_vm14, %v4077_v53, %v295_v3 }
 0x117   :  { %v279_v30 = vsel %vm278_vm8, %v3705_v55, %v275_v27  ;;  %v282_v31 = vmul.f32 %v3707_v22, %v281_v28  ;;  %v213_v41 = vsel %vm76_vm0, %v175_v25, 0.0  ;;  %vm4160_vm13 = vmor %vm286_vm9, %vm287_vm10  ;;  %v423_v25 = vmul.f32 %v299_v16, %v3964_v35 }
 0x118   :  { %v421_v39 = vmul.f32 %v279_v30, %v3966_v36  ;;  %v115_v40 = vpop.xlane.xlu2 %114  ;;  %v4136_v43 = vpop.xlane.xlu0 %199  ;;  %214 = vadd.xlane.f32.xlu0 %v213_v41  ;;  %v207_v50 = vsel %vm76_vm0, %v173_v57, 0.0  ;;  %123 = vadd.xlane.f32.xlu1 %v122_v29  ;;  %v3229_v14 = vclamps-f32 %v458_v33, 3.0  ;;  %vm316_vm15 = vweird.f32 %v4106_v19 }
 0x119   :  { %v283_v46 = vmul.f32 0.5, %v282_v31  ;;  %v144_v48 = vmul.f32 %v3947_v20, %v115_v40  ;;  %v109_v36 = vpop.xlane.xlu1 %108  ;;  %208 = vadd.xlane.f32.xlu2 %v207_v50  ;;  %v442_v32 = vmul.f32 %v4123_v56, %v423_v25  ;;  %vm307_vm3 = vweird.f32 %v4146_v51 }
 0x11a   :  { %v142_v34 = vmul.f32 %v3947_v20, %v109_v36  ;;  %v440_v52 = vmul.f32 %v4123_v56, %v421_v39  ;;  %vm308_vm5 = vmor %vm306_vm2, %vm307_vm3 }
 0x11b   :  { %v4150_v55 = vpop.eup %3710  ;;  %v284_v59 = vsub.f32 1.5, %v283_v46  ;;  %v4155_v60 = vsub.f32 %v4021_v63, %v144_v48  ;;  %v301_v63 = vmul.f32 %v4146_v51, %v4097_v8  ;;  %v461_v44 = vadd.f32 %v4142_v45, %v442_v32 }
 0x11c   :  { %v311_v1 = vmul.f32 %v4150_v55, %v4106_v19  ;;  %v4167_v2 = vsub.f32 %v4026_v0, %v142_v34  ;;  %v459_v0 = vadd.f32 %v4142_v45, %v440_v52  ;;  %vm317_vm1 = vweird.f32 %v4150_v55 }
 0x11d   :  { %v285_v47 = vmul.f32 %v3707_v22, %v284_v59  ;;  %v176_v62 = vmul.f32 %v4155_v60, %v4155_v60  ;;  %v302_v17 = vmul.f32 %v4146_v51, %v301_v63  ;;  %vm318_vm4 = vmor %vm316_vm15, %vm317_vm1  ;;  %v3232_v36 = vclamps-f32 %v461_v44, 3.0 }
 0x11e   :  { %v174_v7 = vmul.f32 %v4167_v2, %v4167_v2  ;;  %v312_v10 = vmul.f32 %v4150_v55, %v311_v1  ;;  %v3230_v15 = vclamps-f32 %v459_v0, 3.0 }
 0x11f   :  { %v289_v9 = vsel %vm4160_vm13, %v3707_v22, %v285_v47  ;;  %v216_v11 = vsel %vm76_vm0, %v176_v62, 0.0  ;;  %v303_v53 = vmul.f32 0.5, %v302_v17 }
 0x120   :  { %v210_v12 = vsel %vm76_vm0, %v174_v7, 0.0  ;;  %v118_v13 = vpop.xlane.xlu0 %117  ;;  %v422_v24 = vmul.f32 %v289_v9, %v3976_v42  ;;  %217 = vadd.xlane.f32.xlu1 %v216_v11  ;;  %v506_v22 = vpack.c.bf16 %v3230_v15, %v3229_v14  ;;  %v313_v27 = vmul.f32 0.5, %v312_v10 }
 0x121   :  { %v145_v23 = vmul.f32 %v3947_v20, %v118_v13  ;;  %211 = vadd.xlane.f32.xlu2 %v210_v12 }
 0x122   :  { %3253 = vmatmul.msk.bf16.vlgmr.msra.gmra.mxu0 %vm76_vm0, %v506_v22  ;;  %3261 = vmatmul.msk.bf16.vlgmr.msra.gmra.mxu1 %vm76_vm0, %v506_v22  ;;  %v441_v30 = vmul.f32 %v4123_v56, %v422_v24  ;;  %v314_v42 = vsub.f32 1.5, %v313_v27 }
 0x123   :  { %v4194_v28 = vsub.f32 %v4036_v4, %v145_v23  ;;  %v304_v4 = vsub.f32 1.5, %v303_v53 }
 0x124   :  { %v460_v39 = vadd.f32 %v4142_v45, %v441_v30  ;;  %v315_v40 = vmul.f32 %v4150_v55, %v314_v42 }
 0x125   :  { %v177_v29 = vmul.f32 %v4194_v28, %v4194_v28  ;;  %v305_v19 = vmul.f32 %v4146_v51, %v304_v4 }
 0x126   :  { %v3231_v48 = vclamps-f32 %v460_v39, 3.0  ;;  %v319_v50 = vsel %vm318_vm4, %v4150_v55, %v315_v40 }
 0x127   :  { %v219_v31 = vsel %vm76_vm0, %v177_v29, 0.0  ;;  %v309_v34 = vsel %vm308_vm5, %v4146_v51, %v305_v19 }
 0x128   :  { %v121_v57 = vpop.xlane.xlu0 %120  ;;  %v507_v52 = vpack.c.bf16 %v3232_v36, %v3231_v48  ;;  %v424_v59 = vmul.f32 %v309_v34, %v3968_v38  ;;  %v234_v38 = vmul.f32 %v4136_v43, %v3947_v20 }
 0x129   :  { %v146_v35 = vmul.f32 %v3947_v20, %v121_v57  ;;  %220 = vadd.xlane.f32.xlu2 %v219_v31 }
 0x12a   :  { %v443_v1 = vmul.f32 %v4123_v56, %v424_v59 }
 0x12b   :  { %v4212_v41 = vsub.f32 %v4043_v6, %v146_v35  ;;  %v425_v6 = vmul.f32 %v319_v50, %v3990_v49  ;;  %v250_v49 = vadd.f32 1e-05, %v234_v38 }
 0x12c   :  { %v462_v33 = vadd.f32 %v4142_v45, %v443_v1 }
 0x12d   :  { %v178_v46 = vmul.f32 %v4212_v41, %v4212_v41  ;;  %v444_v61 = vmul.f32 %v4123_v56, %v425_v6  ;;  %3712 = vrsqrt.f32 %v250_v49  ;;  %vm326_vm6 = vweird.f32 %v250_v49 }
 0x12e   :  { %v3233_v63 = vclamps-f32 %v462_v33, 3.0 }
 0x12f   :  { %v222_v8 = vsel %vm76_vm0, %v178_v46, 0.0  ;;  %v463_v55 = vadd.f32 %v4142_v45, %v444_v61 }
 0x130   :  { %223 = vadd.xlane.f32.xlu0 %v222_v8 }
 0x131   :  { %v3234_v3 = vclamps-f32 %v463_v55, 3.0 }
 0x132   :  { %3254 = vmatmul.msk.bf16.gmra.mxu0 %vm76_vm0, %v507_v52  ;;  %3262 = vmatmul.msk.bf16.gmra.mxu1 %vm76_vm0, %v507_v52 }
 0x133   :  { %v508_v51 = vpack.c.bf16 %v3234_v3, %v3233_v63  ;;  %v3713_v47 = vpop.eup %3712 }
 0x134   :  { %v321_v62 = vmul.f32 %v3713_v47, %v250_v49  ;;  %vm327_vm7 = vweird.f32 %v3713_v47 }
 0x135   :  { %vm328_vm8 = vmor %vm326_vm6, %vm327_vm7 }
 0x136   :  { %v322_v5 = vmul.f32 %v3713_v47, %v321_v62 }
 0x138   :  { %v323_v9 = vmul.f32 0.5, %v322_v5 }
 0x13a   :  { %v324_v11 = vsub.f32 1.5, %v323_v9 }
 0x13c   :  { %v325_v14 = vmul.f32 %v3713_v47, %v324_v11  ;;  %v517_v11 = vld [vmem:[%s6140_s5] sm:$0x3] }
 0x13e   :  { %v329_v23 = vsel %vm328_vm8, %v3713_v47, %v325_v14 }
 0x13f   :  { %v426_v27 = vmul.f32 %v329_v23, %v4009_v58  ;;  %v4274_v23 = vperm.slane %v517_v11, 1 }
 0x141   :  { %v445_v44 = vmul.f32 %v4123_v56, %v426_v27 }
 0x142   :  { %3255 = vmatmul.msk.bf16.gmra.mxu0 %vm76_vm0, %v508_v51  ;;  %3263 = vmatmul.msk.bf16.gmra.mxu1 %vm76_vm0, %v508_v51 }
 0x143   :  { %v464_v6 = vadd.f32 %v4142_v45, %v445_v44 }
 0x145   :  { %v3235_v38 = vclamps-f32 %v464_v6, 3.0 }
 0x17b   :  { %v203_v7 = vpop.xlane.xlu1 %202 }
 0x17c   :  { %v235_v0 = vmul.f32 %v203_v7, %v3947_v20 }
 0x17e   :  { %v251_v10 = vadd.f32 1e-05, %v235_v0 }
 0x180   :  { %3714 = vrsqrt.f32 %v251_v10  ;;  %vm336_vm10 = vweird.f32 %v251_v10 }
 0x183   :  { %v206_v12 = vpop.xlane.xlu1 %205 }
 0x184   :  { %v236_v15 = vmul.f32 %v206_v12, %v3947_v20 }
 0x186   :  { %v3715_v13 = vpop.eup %3714  ;;  %v252_v16 = vadd.f32 1e-05, %v236_v15 }
 0x187   :  { %v331_v43 = vmul.f32 %v3715_v13, %v251_v10  ;;  %vm337_vm9 = vweird.f32 %v3715_v13 }
 0x188   :  { %3716 = vrsqrt.f32 %v252_v16  ;;  %vm338_vm11 = vmor %vm336_vm10, %vm337_vm9  ;;  %vm346_vm13 = vweird.f32 %v252_v16 }
 0x189   :  { %v332_v17 = vmul.f32 %v3715_v13, %v331_v43 }
 0x18b   :  { %v333_v24 = vmul.f32 0.5, %v332_v17  ;;  %v215_v22 = vpop.xlane.xlu0 %214  ;;  %v124_v29 = vpop.xlane.xlu1 %123  ;;  %v4272_v17 = vperm.slane %v517_v11, 0 }
 0x18c   :  { %v209_v53 = vpop.xlane.xlu2 %208  ;;  %v239_v30 = vmul.f32 %v215_v22, %v3947_v20  ;;  %v147_v31 = vmul.f32 %v3947_v20, %v124_v29 }
 0x18d   :  { %v334_v25 = vsub.f32 1.5, %v333_v24  ;;  %v237_v42 = vmul.f32 %v209_v53, %v3947_v20 }
 0x18e   :  { %v4239_v32 = vadd.f32 1e-05, %v239_v30  ;;  %v3717_v4 = vpop.eup %3716  ;;  %v4242_v39 = vsub.f32 %v4111_v21, %v147_v31 }
 0x18f   :  { %v335_v57 = vmul.f32 %v3715_v13, %v334_v25  ;;  %v253_v35 = vadd.f32 1e-05, %v237_v42  ;;  %v341_v40 = vmul.f32 %v3717_v4, %v252_v16  ;;  %vm347_vm12 = vweird.f32 %v3717_v4 }
 0x190   :  { %3718 = vrsqrt.f32 %v4239_v32  ;;  %v179_v48 = vmul.f32 %v4242_v39, %v4242_v39  ;;  %vm348_vm14 = vmor %vm346_vm13, %vm347_vm12  ;;  %vm376_vm3 = vweird.f32 %v4239_v32 }
 0x191   :  { %v339_v58 = vsel %vm338_vm11, %v3715_v13, %v335_v57  ;;  %3720 = vrsqrt.f32 %v253_v35  ;;  %v342_v46 = vmul.f32 %v3717_v4, %v341_v40  ;;  %vm356_vm15 = vweird.f32 %v253_v35 }
 0x192   :  { %v427_v19 = vmul.f32 %v339_v58, %v4069_v37  ;;  %v225_v21 = vsel %vm76_vm0, %v179_v48, 0.0 }
 0x193   :  { %v343_v8 = vmul.f32 0.5, %v342_v46  ;;  %v218_v34 = vpop.xlane.xlu1 %217  ;;  %226 = vadd.xlane.f32.xlu1 %v225_v21 }
 0x194   :  { %v446_v50 = vmul.f32 %v4123_v56, %v427_v19  ;;  %v212_v36 = vpop.xlane.xlu2 %211  ;;  %v240_v1 = vmul.f32 %v218_v34, %v3947_v20 }
 0x195   :  { %v238_v52 = vmul.f32 %v212_v36, %v3947_v20  ;;  %v344_v61 = vsub.f32 1.5, %v343_v8 }
 0x196   :  { %v465_v59 = vadd.f32 %v4142_v45, %v446_v50  ;;  %v4254_v37 = vpop.eup %3718  ;;  %v4259_v62 = vadd.f32 1e-05, %v240_v1 }
 0x197   :  { %v3721_v55 = vpop.eup %3720  ;;  %v371_v33 = vmul.f32 %v4254_v37, %v4239_v32  ;;  %v254_v3 = vadd.f32 1e-05, %v238_v52  ;;  %v345_v63 = vmul.f32 %v3717_v4, %v344_v61  ;;  %vm377_vm6 = vweird.f32 %v4254_v37 }
 0x198   :  { %v351_v51 = vmul.f32 %v3721_v55, %v253_v35  ;;  %v3236_v49 = vclamps-f32 %v465_v59, 3.0  ;;  %vm357_vm1 = vweird.f32 %v3721_v55  ;;  %vm4309_vm8 = vmor %vm376_vm3, %vm377_vm6  ;;  %vm386_vm11 = vweird.f32 %v4259_v62 }
 0x199   :  { %3722 = vrsqrt.f32 %v254_v3  ;;  %v349_v7 = vsel %vm348_vm14, %v3717_v4, %v345_v63  ;;  %v372_v0 = vmul.f32 %v4254_v37, %v371_v33  ;;  %vm358_vm2 = vmor %vm356_vm15, %vm357_vm1  ;;  %vm366_vm4 = vweird.f32 %v254_v3 }
 0x19a   :  { %v352_v47 = vmul.f32 %v3721_v55, %v351_v51  ;;  %v509_v5 = vpack.c.bf16 %v3236_v49, %v3235_v38  ;;  %v428_v13 = vmul.f32 %v349_v7, %v4080_v54  ;;  %3724 = vrsqrt.f32 %v4259_v62 }
 0x19b   :  { %v373_v43 = vmul.f32 0.5, %v372_v0 }
 0x19c   :  { %v353_v9 = vmul.f32 0.5, %v352_v47  ;;  %v221_v10 = vpop.xlane.xlu2 %220  ;;  %3256 = vmatmul.msk.bf16.gmra.mxu0 %vm76_vm0, %v509_v5  ;;  %3264 = vmatmul.msk.bf16.gmra.mxu1 %vm76_vm0, %v509_v5  ;;  %v447_v29 = vmul.f32 %v4123_v56, %v428_v13 }
 0x19d   :  { %v241_v12 = vmul.f32 %v221_v10, %v3947_v20  ;;  %v374_v42 = vsub.f32 1.5, %v373_v43 }
 0x19e   :  { %v354_v14 = vsub.f32 1.5, %v353_v9  ;;  %v466_v19 = vadd.f32 %v4142_v45, %v447_v29 }
 0x19f   :  { %v3723_v15 = vpop.eup %3722  ;;  %v4270_v16 = vadd.f32 1e-05, %v241_v12  ;;  %v578_v27 = vpop.f32.mrf.mxu0  ;;  %v375_v48 = vmul.f32 %v4254_v37, %v374_v42 }
 0x1a0   :  { %v355_v24 = vmul.f32 %v3721_v55, %v354_v14  ;;  %v361_v22 = vmul.f32 %v3723_v15, %v254_v3  ;;  %v627_v25 = vpop.f32.mrf.mxu1  ;;  %v4280_v31 = vadd.f32 %v578_v27, %v4272_v17  ;;  %v4285_v4 = vpop.eup %3724  ;;  %vm367_vm5 = vweird.f32 %v3723_v15 }
 0x1a1   :  { %3726 = vrsqrt.f32 %v4270_v16  ;;  %v4283_v57 = vadd.f32 %v627_v25, %v4274_v23  ;;  %vm4296_vm7 = vmor %vm366_vm4, %vm367_vm5  ;;  %v381_v8 = vmul.f32 %v4285_v4, %v4259_v62  ;;  %v3237_v3 = vclamps-f32 %v466_v19, 3.0 }
 0x1a2   :  { %v359_v53 = vsel %vm358_vm2, %v3721_v55, %v355_v24  ;;  %v362_v54 = vmul.f32 %v3723_v15, %v361_v22  ;;  %v667_v58 = vmax.f32 %v4280_v31, 0.0  ;;  %v379_v51 = vsel %vm4309_vm8, %v4254_v37, %v375_v48 }
 0x1a3   :  { %v429_v30 = vmul.f32 %v359_v53, %v4118_v26  ;;  %v668_v26 = vmax.f32 %v4283_v57, 0.0  ;;  %v382_v38 = vmul.f32 %v4285_v4, %v381_v8  ;;  %v431_v10 = vmul.f32 %v379_v51, %v4104_v18 }
 0x1a4   :  { %v363_v35 = vmul.f32 0.5, %v362_v54  ;;  %vm396_vm9 = vweird.f32 %v4270_v16  ;;  %vm387_vm12 = vweird.f32 %v4285_v4 }
 0x1a5   :  { %v448_v40 = vmul.f32 %v4123_v56, %v429_v30  ;;  %v701_v36 = vadd.f32 %v668_v26, %v667_v58  ;;  %v383_v37 = vmul.f32 0.5, %v382_v38  ;;  %v450_v18 = vmul.f32 %v4123_v56, %v431_v10  ;;  %vm388_vm14 = vmor %vm386_vm11, %vm387_vm12 }
 0x1a6   :  { %v364_v44 = vsub.f32 1.5, %v363_v35 }
 0x1a7   :  { %v4293_v46 = vpop.eup %3726  ;;  %v467_v21 = vadd.f32 %v4142_v45, %v448_v40  ;;  %v580_v59 = vpop.f32.mrf.mxu0  ;;  %702 = vadd.xlane.f32.xlu2 %v701_v36  ;;  %v384_v43 = vsub.f32 1.5, %v383_v37  ;;  %v469_v53 = vadd.f32 %v4142_v45, %v450_v18 }
 0x1a8   :  { %v365_v6 = vmul.f32 %v3723_v15, %v364_v44  ;;  %v391_v52 = vmul.f32 %v4293_v46, %v4270_v16  ;;  %v629_v61 = vpop.f32.mrf.mxu1  ;;  %v4316_v1 = vadd.f32 %v580_v59, %v4272_v17  ;;  %vm397_vm10 = vweird.f32 %v4293_v46 }
 0x1a9   :  { %v4319_v55 = vadd.f32 %v629_v61, %v4274_v23  ;;  %v3238_v63 = vclamps-f32 %v467_v21, 3.0  ;;  %vm398_vm13 = vmor %vm396_vm9, %vm397_vm10  ;;  %v385_v54 = vmul.f32 %v4285_v4, %v384_v43  ;;  %v3240_v44 = vclamps-f32 %v469_v53, 3.0 }
 0x1aa   :  { %v369_v32 = vsel %vm4296_vm7, %v3723_v15, %v365_v6  ;;  %v392_v33 = vmul.f32 %v4293_v46, %v391_v52  ;;  %v669_v49 = vmax.f32 %v4316_v1, 0.0  ;;  %v3831_v43 = vmov 256.0  }
 0x1ab   :  { %v670_v47 = vmax.f32 %v4319_v55, 0.0  ;;  %v430_v5 = vmul.f32 %v369_v32, %v4167_v2  ;;  %v510_v7 = vpack.c.bf16 %v3238_v63, %v3237_v3  ;;  %v389_v19 = vsel %vm388_vm14, %v4285_v4, %v385_v54 }
 0x1ac   :  { %v393_v0 = vmul.f32 0.5, %v392_v33  ;;  %v432_v21 = vmul.f32 %v389_v19, %v4155_v60 }
 0x1ad   :  { %v704_v9 = vadd.f32 %v670_v47, %v669_v49  ;;  %3257 = vmatmul.msk.bf16.gmra.mxu0 %vm76_vm0, %v510_v7  ;;  %3265 = vmatmul.msk.bf16.gmra.mxu1 %vm76_vm0, %v510_v7  ;;  %v449_v13 = vmul.f32 %v4123_v56, %v430_v5 }
 0x1ae   :  { %v394_v2 = vsub.f32 1.5, %v393_v0  ;;  %v451_v59 = vmul.f32 %v4123_v56, %v432_v21 }
 0x1af   :  { %705 = vadd.xlane.f32.xlu0 %v704_v9  ;;  %v583_v11 = vpop.f32.mrf.mxu0  ;;  %v468_v27 = vadd.f32 %v4142_v45, %v449_v13 }
 0x1b0   :  { %v632_v12 = vpop.f32.mrf.mxu1  ;;  %v4340_v14 = vadd.f32 %v583_v11, %v4272_v17  ;;  %v395_v25 = vmul.f32 %v4293_v46, %v394_v2  ;;  %v470_v3 = vadd.f32 %v4142_v45, %v451_v59 }
 0x1b1   :  { %v4343_v15 = vadd.f32 %v632_v12, %v4274_v23  ;;  %v3239_v42 = vclamps-f32 %v468_v27, 3.0  ;;  %v224_v12 = vpop.xlane.xlu0 %223 }
 0x1b2   :  { %v671_v24 = vmax.f32 %v4340_v14, 0.0  ;;  %v399_v62 = vsel %vm398_vm13, %v4293_v46, %v395_v25  ;;  %v3241_v0 = vclamps-f32 %v470_v3, 3.0  ;;  %v242_v13 = vmul.f32 %v224_v12, %v3947_v20 }
 0x1b3   :  { %v672_v22 = vmax.f32 %v4343_v15, 0.0  ;;  %v433_v8 = vmul.f32 %v399_v62, %v4194_v28  ;;  %v511_v36 = vpack.c.bf16 %v3240_v44, %v3239_v42 }
 0x1b4   :  { %v258_v2 = vadd.f32 1e-05, %v242_v13 }
 0x1b5   :  { %v707_v16 = vadd.f32 %v672_v22, %v671_v24  ;;  %v452_v6 = vmul.f32 %v4123_v56, %v433_v8 }
 0x1b6   :  { %3728 = vrsqrt.f32 %v258_v2  ;;  %vm406_vm15 = vweird.f32 %v258_v2 }
 0x1b7   :  { %708 = vadd.xlane.f32.xlu1 %v707_v16  ;;  %v585_v29 = vpop.f32.mrf.mxu0  ;;  %v471_v32 = vadd.f32 %v4142_v45, %v452_v6  ;;  %3730 = vrcp.f32 %v3831_v43 }
 0x1b8   :  { %v634_v30 = vpop.f32.mrf.mxu1  ;;  %v4362_v35 = vadd.f32 %v585_v29, %v4272_v17 }
 0x1b9   :  { %v4365_v40 = vadd.f32 %v634_v30, %v4274_v23  ;;  %v3242_v38 = vclamps-f32 %v471_v32, 3.0 }
 0x1ba   :  { %v673_v48 = vmax.f32 %v4362_v35, 0.0 }
 0x1bb   :  { %v674_v50 = vmax.f32 %v4365_v40, 0.0  ;;  %v512_v37 = vpack.c.bf16 %v3242_v38, %v3241_v0 }
 0x1bc   :  { %v3729_v18 = vpop.eup %3728 }
 0x1bd   :  { %v710_v46 = vadd.f32 %v674_v50, %v673_v48  ;;  %3258 = vmatmul.msk.bf16.gmra.mxu0 %vm76_vm0, %v511_v36  ;;  %3266 = vmatmul.msk.bf16.gmra.mxu1 %vm76_vm0, %v511_v36  ;;  %v401_v27 = vmul.f32 %v3729_v18, %v258_v2  ;;  %v3731_v25 = vpop.eup %3730  ;;  %vm407_vm1 = vweird.f32 %v3729_v18 }
 0x1be   :  { %v750_v29 = vmul.f32 256.0, %v3731_v25  ;;  %vm408_vm2 = vmor %vm406_vm15, %vm407_vm1  ;;  %vm754_vm3 = vweird.f32 %v3731_v25 }
 0x1bf   :  { %711 = vadd.xlane.f32.xlu2 %v710_v46  ;;  %v588_v4 = vpop.f32.mrf.mxu0  ;;  %v402_v16 = vmul.f32 %v3729_v18, %v401_v27 }
 0x1c0   :  { %v637_v34 = vpop.f32.mrf.mxu1  ;;  %v4380_v52 = vadd.f32 %v588_v4, %v4272_v17  ;;  %v751_v62 = vsub.f32 1.0, %v750_v29 }
 0x1c1   :  { %v4383_v28 = vadd.f32 %v637_v34, %v4274_v23  ;;  %v403_v30 = vmul.f32 0.5, %v402_v16 }
 0x1c2   :  { %v675_v61 = vmax.f32 %v4380_v52, 0.0  ;;  %v752_v19 = vmul.f32 %v3731_v25, %v751_v62 }
 0x1c3   :  { %v676_v60 = vmax.f32 %v4383_v28, 0.0  ;;  %v404_v44 = vsub.f32 1.5, %v403_v30 }
 0x1c4   :  { %v753_v21 = vadd.f32 %v3731_v25, %v752_v19 }
 0x1c5   :  { %v713_v33 = vadd.f32 %v676_v60, %v675_v61  ;;  %v405_v8 = vmul.f32 %v3729_v18, %v404_v44 }
 0x1c6   :  { %v4411_v59 = vsel %vm754_vm3, %v3731_v25, %v753_v21 }
 0x1c7   :  { %714 = vadd.xlane.f32.xlu0 %v713_v33  ;;  %v590_v63 = vpop.f32.mrf.mxu0  ;;  %v409_v4 = vsel %vm408_vm2, %v3729_v18, %v405_v8 }
 0x1c8   :  { %v639_v51 = vpop.f32.mrf.mxu1  ;;  %v4395_v5 = vadd.f32 %v590_v63, %v4272_v17 }
 0x1c9   :  { %v4398_v7 = vadd.f32 %v639_v51, %v4274_v23 }
 0x1ca   :  { %v677_v9 = vmax.f32 %v4395_v5, 0.0 }
 0x1cb   :  { %v678_v10 = vmax.f32 %v4398_v7, 0.0 }
 0x1cd   :  { %v716_v11 = vadd.f32 %v678_v10, %v677_v9  ;;  %3259 = vmatmul.msk.bf16.gmra.mxu0 %vm76_vm0, %v512_v37  ;;  %3267 = vmatmul.msk.bf16.gmra.mxu1 %vm76_vm0, %v512_v37 }
 0x1cf   :  { %717 = vadd.xlane.f32.xlu1 %v716_v11 }
 0x206   :  { %v227_v53 = vpop.xlane.xlu1 %226 }
 0x207   :  { %v243_v54 = vmul.f32 %v227_v53, %v3947_v20  ;;  %v434_v20 = vmul.f32 %v409_v4, %v4212_v41 }
 0x209   :  { %v259_v42 = vadd.f32 1e-05, %v243_v54  ;;  %v453_v12 = vmul.f32 %v4123_v56, %v434_v20 }
 0x20b   :  { %3732 = vrsqrt.f32 %v259_v42  ;;  %vm416_vm5 = vweird.f32 %v259_v42 }
 0x211   :  { %v3733_v36 = vpop.eup %3732 }
 0x212   :  { %v411_v46 = vmul.f32 %v3733_v36, %v259_v42  ;;  %vm417_vm4 = vweird.f32 %v3733_v36 }
 0x213   :  { %vm418_vm6 = vmor %vm416_vm5, %vm417_vm4 }
 0x214   :  { %v412_v34 = vmul.f32 %v3733_v36, %v411_v46 }
 0x216   :  { %v413_v6 = vmul.f32 0.5, %v412_v34 }
 0x218   :  { %v414_v3 = vsub.f32 1.5, %v413_v6 }
 0x219   :  { %v593_v32 = vpop.f32.mrf.mxu0  ;;  %v642_v33 = vpop.f32.mrf.mxu1 }
 0x21a   :  { %v4414_v63 = vadd.f32 %v593_v32, %v4272_v17  ;;  %v4417_v51 = vadd.f32 %v642_v33, %v4274_v23  ;;  %v415_v38 = vmul.f32 %v3733_v36, %v414_v3  ;;  %v703_v0 = vpop.xlane.xlu2 %702 }
 0x21b   :  { %v756_v41 = vmul.f32 %v4411_v59, %v703_v0 }
 0x21c   :  { %v679_v37 = vmax.f32 %v4414_v63, 0.0  ;;  %v680_v11 = vmax.f32 %v4417_v51, 0.0  ;;  %v419_v13 = vsel %vm418_vm6, %v3733_v36, %v415_v38  ;;  %v3281_v63 = vld [vmem:[%s6141_s8 + $0x18] sm:$0xf0]  ;;  %v3625_v51 = vld [vmem:[%s6141_s8 + $0x94] sm:$0xf] }
 0x21d   :  { %v435_v18 = vmul.f32 %v419_v13, %v4242_v39  ;;  %v4430_v43 = vsub.f32 %v667_v58, %v756_v41  ;;  %v4434_v27 = vsub.f32 %v668_v26, %v756_v41  ;;  %v472_v39 = vadd.f32 %v4142_v45, %v453_v12 }
 0x21e   :  { %v719_v2 = vadd.f32 %v680_v11, %v679_v37 }
 0x21f   :  { %v804_v53 = vmul.f32 %v4430_v43, %v4430_v43  ;;  %v805_v54 = vmul.f32 %v4434_v27, %v4434_v27  ;;  %v454_v29 = vmul.f32 %v4123_v56, %v435_v18  ;;  %v3243_v8 = vclamps-f32 %v472_v39, 3.0 }
 0x220   :  { %720 = vadd.xlane.f32.xlu2 %v719_v2 }
 0x221   :  { %v595_v25 = vpop.f32.mrf.mxu0  ;;  %v644_v16 = vpop.f32.mrf.mxu1  ;;  %v836_v30 = vadd.f32 %v805_v54, %v804_v53  ;;  %v473_v42 = vadd.f32 %v4142_v45, %v454_v29 }
 0x222   :  { %v706_v31 = vpop.xlane.xlu0 %705  ;;  %v4443_v58 = vadd.f32 %v595_v25, %v4272_v17  ;;  %v4446_v57 = vadd.f32 %v644_v16, %v4274_v23 }
 0x223   :  { %v757_v26 = vmul.f32 %v4411_v59, %v706_v31  ;;  %837 = vadd.xlane.f32.xlu1 %v836_v30  ;;  %v3244_v36 = vclamps-f32 %v473_v42, 3.0 }
 0x224   :  { %v681_v62 = vmax.f32 %v4443_v58, 0.0  ;;  %v682_v44 = vmax.f32 %v4446_v57, 0.0 }
 0x225   :  { %v4454_v56 = vsub.f32 %v669_v49, %v757_v26  ;;  %v4458_v19 = vsub.f32 %v670_v47, %v757_v26  ;;  %v513_v46 = vpack.c.bf16 %v3244_v36, %v3243_v8 }
 0x226   :  { %v722_v45 = vadd.f32 %v682_v44, %v681_v62 }
 0x227   :  { %v806_v21 = vmul.f32 %v4454_v56, %v4454_v56  ;;  %v807_v1 = vmul.f32 %v4458_v19, %v4458_v19  ;;  %3260 = vmatmul.msk.bf16.gmra.mxu0 %vm76_vm0, %v513_v46  ;;  %3268 = vmatmul.msk.bf16.gmra.mxu1 %vm76_vm0, %v513_v46 }
 0x228   :  { %723 = vadd.xlane.f32.xlu0 %v722_v45 }
 0x229   :  { %v839_v55 = vadd.f32 %v807_v1, %v806_v21 }
 0x22a   :  { %v709_v49 = vpop.xlane.xlu1 %708  ;;  %v598_v4 = vpop.f32.mrf.mxu0 }
 0x22b   :  { %v758_v47 = vmul.f32 %v4411_v59, %v709_v49  ;;  %v647_v34 = vpop.f32.mrf.mxu1  ;;  %840 = vadd.xlane.f32.xlu2 %v839_v55  ;;  %v4472_v6 = vadd.f32 %v598_v4, %v4272_v17 }
 0x22c   :  { %v4475_v20 = vadd.f32 %v647_v34, %v4274_v23 }
 0x22d   :  { %v4479_v32 = vsub.f32 %v671_v24, %v758_v47  ;;  %v4483_v33 = vsub.f32 %v672_v22, %v758_v47  ;;  %v683_v3 = vmax.f32 %v4472_v6, 0.0  ;;  %v699_v6 = vld [vmem:[%s6142_s6] sm:$0x3] }
 0x22e   :  { %v684_v38 = vmax.f32 %v4475_v20, 0.0 }
 0x22f   :  { %v808_v0 = vmul.f32 %v4479_v32, %v4479_v32  ;;  %v809_v41 = vmul.f32 %v4483_v33, %v4483_v33 }
 0x230   :  { %v725_v14 = vadd.f32 %v684_v38, %v683_v3 }
 0x231   :  { %v842_v24 = vadd.f32 %v809_v41, %v808_v0 }
 0x232   :  { %v712_v12 = vpop.xlane.xlu2 %711  ;;  %726 = vadd.xlane.f32.xlu0 %v725_v14  ;;  %v600_v22 = vpop.f32.mrf.mxu0 }
 0x233   :  { %v759_v15 = vmul.f32 %v4411_v59, %v712_v12  ;;  %v649_v13 = vpop.f32.mrf.mxu1  ;;  %843 = vadd.xlane.f32.xlu2 %v842_v24  ;;  %v4497_v2 = vadd.f32 %v600_v22, %v4272_v17 }
 0x234   :  { %v4500_v18 = vadd.f32 %v649_v13, %v4274_v23 }
 0x235   :  { %v4504_v25 = vsub.f32 %v673_v48, %v759_v15  ;;  %v4508_v16 = vsub.f32 %v674_v50, %v759_v15  ;;  %v685_v53 = vmax.f32 %v4497_v2, 0.0 }
 0x236   :  { %v686_v54 = vmax.f32 %v4500_v18, 0.0 }
 0x237   :  { %v810_v29 = vmul.f32 %v4504_v25, %v4504_v25  ;;  %v811_v39 = vmul.f32 %v4508_v16, %v4508_v16 }
 0x238   :  { %v728_v35 = vadd.f32 %v686_v54, %v685_v53 }
 0x239   :  { %v845_v48 = vadd.f32 %v811_v39, %v810_v29 }
 0x23a   :  { %729 = vadd.xlane.f32.xlu1 %v728_v35  ;;  %v715_v40 = vpop.xlane.xlu0 %714  ;;  %v603_v31 = vpop.f32.mrf.mxu0 }
 0x23b   :  { %v760_v50 = vmul.f32 %v4411_v59, %v715_v40  ;;  %846 = vadd.xlane.f32.xlu0 %v845_v48  ;;  %v652_v26 = vpop.f32.mrf.mxu1  ;;  %v4522_v30 = vadd.f32 %v603_v31, %v4272_v17 }
 0x23c   :  { %v4525_v42 = vadd.f32 %v652_v26, %v4274_v23 }
 0x23d   :  { %v4529_v8 = vsub.f32 %v675_v61, %v760_v50  ;;  %v4533_v36 = vsub.f32 %v676_v60, %v760_v50  ;;  %v687_v45 = vmax.f32 %v4522_v30, 0.0 }
 0x23e   :  { %v688_v46 = vmax.f32 %v4525_v42, 0.0 }
 0x23f   :  { %v812_v21 = vmul.f32 %v4529_v8, %v4529_v8  ;;  %v813_v1 = vmul.f32 %v4533_v36, %v4533_v36 }
 0x240   :  { %v731_v52 = vadd.f32 %v688_v46, %v687_v45 }
 0x241   :  { %v848_v61 = vadd.f32 %v813_v1, %v812_v21  ;;  %v3621_v1 = vld [vmem:[%s6141_s8 + $0x74] sm:$0xf] }
 0x242   :  { %v718_v55 = vpop.xlane.xlu1 %717  ;;  %732 = vadd.xlane.f32.xlu1 %v731_v52  ;;  %v605_v60 = vpop.f32.mrf.mxu0  ;;  %v3329_v52 = vld [vmem:[%s6141_s8 + $0x78] sm:$0xf0] }
 0x243   :  { %v761_v28 = vmul.f32 %v4411_v59, %v718_v55  ;;  %v654_v49 = vpop.f32.mrf.mxu1  ;;  %849 = vadd.xlane.f32.xlu0 %v848_v61  ;;  %v4547_v47 = vadd.f32 %v605_v60, %v4272_v17  ;;  %v3327_v61 = vld [vmem:[%s6141_s8 + $0x70] sm:$0xf]  ;;  %v3332_v55 = vor.u32 %v3621_v1, %v3329_v52  ;;  %v3619_v1 = vld [vmem:[%s6141_s8 + $0x64] sm:$0xf]  ;;  %v3321_v52 = vld [vmem:[%s6141_s8 + $0x68] sm:$0xf0] }
 0x244   :  { %v4550_v4 = vadd.f32 %v654_v49, %v4274_v23  ;;  %v3391_v60 = vld [vmem:[%s6141_s8 + $0xf0] sm:$0xf]  ;;  %v3638_v49 = vld [vmem:[%s6141_s8 + $0xf4] sm:$0xf0] }
 0x245   :  { %v4554_v34 = vsub.f32 %v677_v9, %v761_v28  ;;  %v4558_v0 = vsub.f32 %v678_v10, %v761_v28  ;;  %v689_v41 = vmax.f32 %v4547_v47, 0.0  ;;  %v3622_v28 = vld [vmem:[%s6141_s8 + $0x74] sm:$0xf0]  ;;  %1494 = vmatpush.bf16.msrb.mxu0 %v3332_v55  ;;  %v3324_v55 = vor.u32 %v3619_v1, %v3321_v52  ;;  %v3377_v1 = vld [vmem:[%s6141_s8 + $0xd8] sm:$0xf0] }
 0x246   :  { %v690_v14 = vmax.f32 %v4550_v4, 0.0 }
 0x247   :  { %v814_v24 = vmul.f32 %v4554_v34, %v4554_v34  ;;  %v815_v12 = vmul.f32 %v4558_v0, %v4558_v0 }
 0x248   :  { %v734_v5 = vadd.f32 %v690_v14, %v689_v41 }
 0x249   :  { %v851_v9 = vadd.f32 %v815_v12, %v814_v24  ;;  %v3328_v24 = vor.u32 %v3622_v28, %v3327_v61  ;;  %v3392_v12 = vor.u32 %v3638_v49, %v3391_v60  ;;  %v3635_v28 = vld [vmem:[%s6141_s8 + $0xe4] sm:$0xf]  ;;  %v3385_v60 = vld [vmem:[%s6141_s8 + $0xe8] sm:$0xf0]  ;;  %1495 = vmatpush.bf16.msrb.mxu0 %v3324_v55  ;;  %v3616_v55 = vld [vmem:[%s6141_s8 + $0x44] sm:$0xf0] }
 0x24a   :  { %735 = vadd.xlane.f32.xlu2 %v734_v5  ;;  %v608_v7 = vpop.f32.mrf.mxu0  ;;  %v3637_v5 = vld [vmem:[%s6141_s8 + $0xf4] sm:$0xf]  ;;  %v3388_v49 = vor.u32 %v3635_v28, %v3385_v60  ;;  %v3367_v28 = vld [vmem:[%s6141_s8 + $0xc0] sm:$0xf] }
 0x24b   :  { %v657_v10 = vpop.f32.mrf.mxu1  ;;  %852 = vadd.xlane.f32.xlu1 %v851_v9  ;;  %v4571_v15 = vadd.f32 %v608_v7, %v4272_v17  ;;  %v3393_v9 = vld [vmem:[%s6141_s8 + $0xf8] sm:$0xf0]  ;;  %1396 = vmatpush.bf16.msra.mxu2 %v3328_v24  ;;  %v3311_v24 = vld [vmem:[%s6141_s8 + $0x50] sm:$0xf] }
 0x24c   :  { %v4574_v22 = vadd.f32 %v657_v10, %v4274_v23  ;;  %v3396_v7 = vor.u32 %v3637_v5, %v3393_v9  ;;  %1445 = vmatpush.bf16.msra.mxu3 %v3392_v12  ;;  %v3319_v10 = vld [vmem:[%s6141_s8 + $0x60] sm:$0xf]  ;;  %v3618_v12 = vld [vmem:[%s6141_s8 + $0x54] sm:$0xf0]  ;;  %v3375_v5 = vld [vmem:[%s6141_s8 + $0xd0] sm:$0xf] }
 0x24d   :  { %v691_v13 = vmax.f32 %v4571_v15, 0.0  ;;  %v3312_v9 = vor.u32 %v3618_v12, %v3311_v24  ;;  %v3615_v24 = vld [vmem:[%s6141_s8 + $0x44] sm:$0xf]  ;;  %v3305_v12 = vld [vmem:[%s6141_s8 + $0x48] sm:$0xf0] }
 0x24e   :  { %v692_v29 = vmax.f32 %v4574_v22, 0.0  ;;  %1543 = vmatpush.bf16.msrb.mxu1 %v3396_v7  ;;  %v3634_v7 = vld [vmem:[%s6141_s8 + $0xd4] sm:$0xf0] }
 0x250   :  { %v737_v39 = vadd.f32 %v692_v29, %v691_v13 }
 0x252   :  { %738 = vadd.xlane.f32.xlu2 %v737_v39  ;;  %v610_v35 = vpop.f32.mrf.mxu0  ;;  %v3620_v39 = vld [vmem:[%s6141_s8 + $0x64] sm:$0xf0]  ;;  %1544 = vmatpush.bf16.msrb.mxu1 %v3388_v49 }
 0x253   :  { %v659_v48 = vpop.f32.mrf.mxu1  ;;  %v4583_v40 = vadd.f32 %v610_v35, %v4272_v17  ;;  %v3383_v35 = vld [vmem:[%s6141_s8 + $0xe0] sm:$0xf]  ;;  %v3632_v49 = vld [vmem:[%s6141_s8 + $0xc4] sm:$0xf0] }
 0x254   :  { %v4586_v50 = vadd.f32 %v659_v48, %v4274_v23  ;;  %v3320_v48 = vor.u32 %v3620_v39, %v3319_v10  ;;  %v3617_v10 = vld [vmem:[%s6141_s8 + $0x54] sm:$0xf]  ;;  %v3313_v39 = vld [vmem:[%s6141_s8 + $0x58] sm:$0xf0] }
 0x255   :  { %v693_v31 = vmax.f32 %v4583_v40, 0.0 }
 0x256   :  { %v6156_v26 = vmax.f32 %v4586_v50, 0.0  ;;  %1397 = vmatpush.bf16.msra.mxu2 %v3320_v48  ;;  %v3316_v48 = vor.u32 %v3617_v10, %v3313_v39  ;;  %v3369_v10 = vld [vmem:[%s6141_s8 + $0xc8] sm:$0xf0] }
 0x258   :  { %v740_v21 = vadd.f32 %v6156_v26, %v693_v31  ;;  %1496 = vmatpush.bf16.msrb.mxu0 %v3316_v48  ;;  %v3614_v48 = vld [vmem:[%s6141_s8 + $0x34] sm:$0xf0]  ;;  %v4853_v26 = vperm.slane %v699_v6, 1 }
 0x25a   :  { %741 = vadd.xlane.f32.xlu0 %v740_v21  ;;  %v3636_v21 = vld [vmem:[%s6141_s8 + $0xe4] sm:$0xf0]  ;;  %1398 = vmatpush.bf16.msra.mxu2 %v3312_v9  ;;  %v3308_v9 = vor.u32 %v3615_v24, %v3305_v12  ;;  %v3361_v24 = vld [vmem:[%s6141_s8 + $0xb8] sm:$0xf0] }
 0x25b   :  { %v3384_v61 = vor.u32 %v3636_v21, %v3383_v35  ;;  %v3376_v35 = vor.u32 %v3634_v7, %v3375_v5  ;;  %v3633_v21 = vld [vmem:[%s6141_s8 + $0xd4] sm:$0xf]  ;;  %v3368_v5 = vor.u32 %v3632_v49, %v3367_v28  ;;  %v3631_v7 = vld [vmem:[%s6141_s8 + $0xc4] sm:$0xf] }
 0x25c   :  { %v3380_v52 = vor.u32 %v3633_v21, %v3377_v1  ;;  %v3372_v39 = vor.u32 %v3631_v7, %v3369_v10  ;;  %v3359_v21 = vld [vmem:[%s6141_s8 + $0xb0] sm:$0xf]  ;;  %1497 = vmatpush.bf16.msrb.mxu0 %v3308_v9  ;;  %v3629_v49 = vld [vmem:[%s6141_s8 + $0xb4] sm:$0xf]  ;;  %v3612_v9 = vld [vmem:[%s6141_s8 + $0x24] sm:$0xf0] }
 0x25d   :  { %1446 = vmatpush.bf16.msra.mxu3 %v3384_v61  ;;  %v3303_v61 = vld [vmem:[%s6141_s8 + $0x40] sm:$0xf]  ;;  %v3364_v12 = vor.u32 %v3629_v49, %v3361_v24  ;;  %v3279_v49 = vld [vmem:[%s6141_s8 + $0x10] sm:$0xf]  ;;  %v3610_v24 = vld [vmem:[%s6141_s8 + $0x14] sm:$0xf0] }
 0x25e   :  { %1545 = vmatpush.bf16.msrb.mxu1 %v3380_v52  ;;  %v3304_v60 = vor.u32 %v3616_v55, %v3303_v61  ;;  %v3630_v52 = vld [vmem:[%s6141_s8 + $0xb4] sm:$0xf0]  ;;  %v3613_v61 = vld [vmem:[%s6141_s8 + $0x34] sm:$0xf]  ;;  %v3297_v55 = vld [vmem:[%s6141_s8 + $0x38] sm:$0xf0] }
 0x25f   :  { %v3360_v28 = vor.u32 %v3630_v52, %v3359_v21  ;;  %v3351_v7 = vld [vmem:[%s6141_s8 + $0xa0] sm:$0xf] }
 0x260   :  { %1399 = vmatpush.bf16.msra.mxu2 %v3304_v60  ;;  %v3300_v60 = vor.u32 %v3613_v61, %v3297_v55  ;;  %v3627_v61 = vld [vmem:[%s6141_s8 + $0xa4] sm:$0xf]  ;;  %v3353_v55 = vld [vmem:[%s6141_s8 + $0xa8] sm:$0xf0] }
 0x261   :  { %1447 = vmatpush.bf16.msra.mxu3 %v3376_v35  ;;  %v3295_v35 = vld [vmem:[%s6141_s8 + $0x30] sm:$0xf] }
 0x262   :  { %1546 = vmatpush.bf16.msrb.mxu1 %v3372_v39  ;;  %v3296_v1 = vor.u32 %v3614_v48, %v3295_v35  ;;  %1498 = vmatpush.bf16.msrb.mxu0 %v3300_v60  ;;  %v3628_v39 = vld [vmem:[%s6141_s8 + $0xa4] sm:$0xf0]  ;;  %v3611_v35 = vld [vmem:[%s6141_s8 + $0x24] sm:$0xf]  ;;  %v3289_v48 = vld [vmem:[%s6141_s8 + $0x28] sm:$0xf0]  ;;  %v3356_v60 = vor.u32 %v3627_v61, %v3353_v55 }
 0x263   :  { %v3292_v52 = vor.u32 %v3611_v35, %v3289_v48  ;;  %v3271_v55 = vld [vmem:[%s6141_s8] sm:$0xf] }
 0x264   :  { %1400 = vmatpush.bf16.msra.mxu2 %v3296_v1  ;;  %v3352_v1 = vor.u32 %v3628_v39, %v3351_v7  ;;  %v3280_v7 = vor.u32 %v3610_v24, %v3279_v49  ;;  %v3609_v39 = vld [vmem:[%s6141_s8 + $0x14] sm:$0xf] }
 0x265   :  { %1448 = vmatpush.bf16.msra.mxu3 %v3368_v5  ;;  %v3287_v5 = vld [vmem:[%s6141_s8 + $0x20] sm:$0xf]  ;;  %v3284_v35 = vor.u32 %v3609_v39, %v3281_v63 }
 0x266   :  { %1547 = vmatpush.bf16.msrb.mxu1 %v3364_v12  ;;  %v3288_v10 = vor.u32 %v3612_v9, %v3287_v5  ;;  %v3343_v12 = vld [vmem:[%s6141_s8 + $0x90] sm:$0xf]  ;;  %1499 = vmatpush.bf16.msrb.mxu0 %v3292_v52 }
 0x268   :  { %1401 = vmatpush.bf16.msra.mxu2 %v3288_v10  ;;  %v3626_v10 = vld [vmem:[%s6141_s8 + $0x94] sm:$0xf0] }
 0x269   :  { %1449 = vmatpush.bf16.msra.mxu3 %v3360_v28 }
 0x26a   :  { %1548 = vmatpush.bf16.msrb.mxu1 %v3356_v60  ;;  %v3335_v60 = vld [vmem:[%s6141_s8 + $0x80] sm:$0xf]  ;;  %1500 = vmatpush.bf16.msrb.mxu0 %v3284_v35  ;;  %v3623_v35 = vld [vmem:[%s6141_s8 + $0x84] sm:$0xf] }
 0x26c   :  { %1402 = vmatpush.bf16.msra.mxu2 %v3280_v7  ;;  %v3607_v7 = vld [vmem:[%s6141_s8 + $0x4] sm:$0xf] }
 0x26d   :  { %1450 = vmatpush.bf16.msra.mxu3 %v3352_v1 }
 0x293   :  { %v721_v21 = vpop.xlane.xlu2 %720 }
 0x294   :  { %v762_v28 = vmul.f32 %v4411_v59, %v721_v21 }
 0x296   :  { %v4750_v5 = vsub.f32 %v679_v37, %v762_v28  ;;  %v4754_v9 = vsub.f32 %v680_v11, %v762_v28  ;;  %v3344_v37 = vor.u32 %v3626_v10, %v3343_v12  ;;  %v3345_v11 = vld [vmem:[%s6141_s8 + $0x98] sm:$0xf0]  ;;  %v838_v48 = vpop.xlane.xlu1 %837  ;;  %v3608_v28 = vld [vmem:[%s6141_s8 + $0x4] sm:$0xf0]  ;;  %v3273_v10 = vld [vmem:[%s6141_s8 + $0x8] sm:$0xf0] }
 0x297   :  { %v3348_v52 = vor.u32 %v3625_v51, %v3345_v11  ;;  %v884_v61 = vmul.f32 %v838_v48, %v4411_v59  ;;  %v3272_v24 = vor.u32 %v3608_v28, %v3271_v55  ;;  %v3624_v12 = vld [vmem:[%s6141_s8 + $0x84] sm:$0xf0]  ;;  %v3276_v51 = vor.u32 %v3607_v7, %v3273_v10  ;;  %v3337_v11 = vld [vmem:[%s6141_s8 + $0x88] sm:$0xf0] }
 0x298   :  { %v816_v21 = vmul.f32 %v4750_v5, %v4750_v5  ;;  %v817_v1 = vmul.f32 %v4754_v9, %v4754_v9  ;;  %1451 = vmatpush.bf16.msra.mxu3 %v3344_v37  ;;  %v3336_v37 = vor.u32 %v3624_v12, %v3335_v60 }
 0x299   :  { %1549 = vmatpush.bf16.msrb.mxu1 %v3348_v52  ;;  %v900_v39 = vadd.f32 1e-05, %v884_v61  ;;  %1403 = vmatpush.bf16.msra.mxu2 %v3272_v24 }
 0x29a   :  { %v854_v49 = vadd.f32 %v817_v1, %v816_v21  ;;  %v3340_v21 = vor.u32 %v3623_v35, %v3337_v11  ;;  %1501 = vmatpush.bf16.msrb.mxu0 %v3276_v51 }
 0x29b   :  { %v724_v63 = vpop.xlane.xlu0 %723  ;;  %3734 = vrsqrt.f32 %v900_v39  ;;  %vm922_vm7 = vweird.f32 %v900_v39 }
 0x29c   :  { %v763_v48 = vmul.f32 %v4411_v59, %v724_v63  ;;  %855 = vadd.xlane.f32.xlu1 %v854_v49  ;;  %1452 = vmatpush.bf16.msra.mxu3 %v3336_v37 }
 0x29d   :  { %1550 = vmatpush.bf16.msrb.mxu1 %v3340_v21 }
 0x29e   :  { %v4803_v1 = vsub.f32 %v681_v62, %v763_v48  ;;  %v4807_v52 = vsub.f32 %v682_v44, %v763_v48  ;;  %v841_v61 = vpop.xlane.xlu2 %840 }
 0x29f   :  { %v885_v55 = vmul.f32 %v841_v61, %v4411_v59 }
 0x2a0   :  { %v818_v28 = vmul.f32 %v4803_v1, %v4803_v1  ;;  %v819_v60 = vmul.f32 %v4807_v52, %v4807_v52 }
 0x2a1   :  { %v4814_v49 = vadd.f32 1e-05, %v885_v55  ;;  %v3735_v62 = vpop.eup %3734 }
 0x2a2   :  { %v857_v58 = vadd.f32 %v819_v60, %v818_v28  ;;  %v917_v57 = vmul.f32 %v3735_v62, %v900_v39  ;;  %vm923_vm0 = vweird.f32 %v3735_v62 }
 0x2a3   :  { %3736 = vrsqrt.f32 %v4814_v49  ;;  %vm924_vm8 = vmor %vm922_vm7, %vm923_vm0  ;;  %vm932_vm9 = vweird.f32 %v4814_v49 }
 0x2a4   :  { %858 = vadd.xlane.f32.xlu2 %v857_v58  ;;  %v918_v24 = vmul.f32 %v3735_v62, %v917_v57  ;;  %v613_v7 = vpop.f32.mrf.mxu0  ;;  %v662_v10 = vpop.f32.mrf.mxu1 }
 0x2a5   :  { %v727_v44 = vpop.xlane.xlu0 %726  ;;  %v4819_v63 = vadd.f32 %v613_v7, %v4272_v17  ;;  %v4822_v37 = vadd.f32 %v662_v10, %v4274_v23  ;;  %v4850_v10 = vperm.slane %v699_v6, 0 }
 0x2a6   :  { %v764_v12 = vmul.f32 %v4411_v59, %v727_v44  ;;  %v844_v51 = vpop.xlane.xlu2 %843  ;;  %v919_v35 = vmul.f32 0.5, %v918_v24 }
 0x2a7   :  { %v886_v21 = vmul.f32 %v844_v51, %v4411_v59  ;;  %v6155_v55 = vmax.f32 %v4819_v63, 0.0  ;;  %v6154_v28 = vmax.f32 %v4822_v37, 0.0 }
 0x2a8   :  { %v4826_v11 = vsub.f32 %v683_v3, %v764_v12  ;;  %v4830_v48 = vsub.f32 %v684_v38, %v764_v12  ;;  %v920_v60 = vsub.f32 1.5, %v919_v35 }
 0x2a9   :  { %v3737_v61 = vpop.eup %3736  ;;  %v4836_v57 = vadd.f32 1e-05, %v886_v21  ;;  %v743_v20 = vadd.f32 %v6154_v28, %v6155_v55 }
 0x2aa   :  { %v927_v58 = vmul.f32 %v3737_v61, %v4814_v49  ;;  %v820_v3 = vmul.f32 %v4826_v11, %v4826_v11  ;;  %v821_v38 = vmul.f32 %v4830_v48, %v4830_v48  ;;  %v921_v44 = vmul.f32 %v3735_v62, %v920_v60 }
 0x2ab   :  { %3738 = vrsqrt.f32 %v4836_v57  ;;  %744 = vadd.xlane.f32.xlu0 %v743_v20  ;;  %vm933_vm10 = vweird.f32 %v3737_v61  ;;  %vm942_vm13 = vweird.f32 %v4836_v57 }
 0x2ac   :  { %v928_v24 = vmul.f32 %v3737_v61, %v927_v58  ;;  %v860_v7 = vadd.f32 %v821_v38, %v820_v3  ;;  %v615_v21 = vpop.f32.mrf.mxu0  ;;  %v664_v28 = vpop.f32.mrf.mxu1  ;;  %v925_v55 = vsel %vm924_vm8, %v3735_v62, %v921_v44  ;;  %vm934_vm11 = vmor %vm932_vm9, %vm933_vm10 }
 0x2ad   :  { %v730_v12 = vpop.xlane.xlu1 %729  ;;  %v4857_v39 = vadd.f32 %v615_v21, %v4272_v17  ;;  %v4860_v60 = vadd.f32 %v664_v28, %v4274_v23  ;;  %v700_v23 = vld [vmem:[%s6143_s7] sm:$0x3]  ;;  %v1076_v28 = vmul.f32 %v925_v55, %v4430_v43  ;;  %v1077_v2 = vmul.f32 %v925_v55, %v4434_v27 }
 0x2ae   :  { %v929_v51 = vmul.f32 0.5, %v928_v24  ;;  %v765_v35 = vmul.f32 %v4411_v59, %v730_v12  ;;  %861 = vadd.xlane.f32.xlu2 %v860_v7  ;;  %v847_v58 = vpop.xlane.xlu0 %846  ;;  %v4893_v7 = vperm.slane %v700_v23, 0 }
 0x2af   :  { %v887_v6 = vmul.f32 %v847_v58, %v4411_v59  ;;  %v697_v38 = vmax.f32 %v4857_v39, 0.0  ;;  %v6157_v17 = vmax.f32 %v4860_v60, 0.0  ;;  %v1113_v49 = vmul.f32 %v4850_v10, %v1076_v28 }
 0x2b0   :  { %v930_v20 = vsub.f32 1.5, %v929_v51  ;;  %v4864_v3 = vsub.f32 %v685_v53, %v765_v35  ;;  %v4868_v62 = vsub.f32 %v686_v54, %v765_v35 }
 0x2b1   :  { %v3739_v53 = vpop.eup %3738  ;;  %v4878_v24 = vadd.f32 1e-05, %v887_v6  ;;  %v746_v43 = vadd.f32 %v6157_v17, %v697_v38  ;;  %v1114_v6 = vmul.f32 %v4853_v26, %v1077_v2  ;;  %v4900_v17 = vperm.slane %v700_v23, 1 }
 0x2b2   :  { %v931_v44 = vmul.f32 %v3737_v61, %v930_v20  ;;  %v822_v18 = vmul.f32 %v4864_v3, %v4864_v3  ;;  %v823_v54 = vmul.f32 %v4868_v62, %v4868_v62  ;;  %v937_v12 = vmul.f32 %v3739_v53, %v4836_v57 }
 0x2b3   :  { %3740 = vrsqrt.f32 %v4878_v24  ;;  %747 = vadd.xlane.f32.xlu1 %v746_v43  ;;  %vm943_vm12 = vweird.f32 %v3739_v53  ;;  %v1150_v23 = vadd.f32 %v4893_v7, %v1113_v49  ;;  %v1151_v30 = vadd.f32 %v4900_v17, %v1114_v6 }
 0x2b4   :  { %v863_v27 = vadd.f32 %v823_v54, %v822_v18  ;;  %v935_v55 = vsel %vm934_vm11, %v3737_v61, %v931_v44  ;;  %v938_v51 = vmul.f32 %v3739_v53, %v937_v12  ;;  %vm944_vm14 = vmor %vm942_vm13, %vm943_vm12  ;;  %vm952_vm1 = vweird.f32 %v4878_v24 }
 0x2b5   :  { %v733_v35 = vpop.xlane.xlu1 %732  ;;  %v1078_v21 = vmul.f32 %v935_v55, %v4454_v56  ;;  %v1079_v58 = vmul.f32 %v935_v55, %v4458_v19 }
 0x2b6   :  { %v766_v20 = vmul.f32 %v4411_v59, %v733_v35  ;;  %864 = vadd.xlane.f32.xlu0 %v863_v27  ;;  %v939_v18 = vmul.f32 0.5, %v938_v51  ;;  %v850_v61 = vpop.xlane.xlu0 %849 }
 0x2b7   :  { %v1115_v44 = vmul.f32 %v4850_v10, %v1078_v21  ;;  %v1116_v54 = vmul.f32 %v4853_v26, %v1079_v58  ;;  %v888_v28 = vmul.f32 %v850_v61, %v4411_v59 }
 0x2b8   :  { %v4906_v56 = vsub.f32 %v687_v45, %v766_v20  ;;  %v4910_v19 = vsub.f32 %v688_v46, %v766_v20  ;;  %v940_v2 = vsub.f32 1.5, %v939_v18 }
 0x2b9   :  { %v1152_v12 = vadd.f32 %v4893_v7, %v1115_v44  ;;  %v1153_v43 = vadd.f32 %v4900_v17, %v1116_v54  ;;  %v3741_v27 = vpop.eup %3740  ;;  %v4916_v55 = vadd.f32 1e-05, %v888_v28 }
 0x2ba   :  { %v824_v45 = vmul.f32 %v4906_v56, %v4906_v56  ;;  %v825_v42 = vmul.f32 %v4910_v19, %v4910_v19  ;;  %v941_v46 = vmul.f32 %v3739_v53, %v940_v2  ;;  %v947_v51 = vmul.f32 %v3741_v27, %v4878_v24 }
 0x2bb   :  { %v1182_v35 = vpack.c.bf16 %v1152_v12, %v1150_v23  ;;  %3742 = vrsqrt.f32 %v4916_v55  ;;  %v1183_v21 = vpack.c.bf16 %v1153_v43, %v1151_v30  ;;  %vm953_vm15 = vweird.f32 %v3741_v27 }
 0x2bc   :  { %v866_v49 = vadd.f32 %v825_v42, %v824_v45  ;;  %v948_v58 = vmul.f32 %v3741_v27, %v947_v51  ;;  %v945_v61 = vsel %vm944_vm14, %v3739_v53, %v941_v46  ;;  %vm954_vm2 = vmor %vm952_vm1, %vm953_vm15  ;;  %vm962_vm4 = vweird.f32 %v4916_v55 }
 0x2bd   :  { %1404 = vmatmul.bf16.vlgmr.msra.gmra.mxu2 %v1182_v35  ;;  %1502 = vmatmul.bf16.vlgmr.msrb.gmra.mxu0 %v1182_v35  ;;  %v736_v20 = vpop.xlane.xlu2 %735  ;;  %v1080_v12 = vmul.f32 %v945_v61, %v4479_v32  ;;  %v1081_v43 = vmul.f32 %v945_v61, %v4483_v33 }
 0x2be   :  { %1453 = vmatmul.bf16.vlgmr.msra.gmra.mxu3 %v1183_v21  ;;  %1551 = vmatmul.bf16.vlgmr.msrb.gmra.mxu1 %v1183_v21  ;;  %v767_v6 = vmul.f32 %v4411_v59, %v736_v20  ;;  %v853_v18 = vpop.xlane.xlu1 %852  ;;  %v949_v44 = vmul.f32 0.5, %v948_v58 }
 0x2bf   :  { %v889_v54 = vmul.f32 %v853_v18, %v4411_v59  ;;  %867 = vadd.xlane.f32.xlu1 %v866_v49  ;;  %v1117_v33 = vmul.f32 %v4850_v10, %v1080_v12  ;;  %v1118_v46 = vmul.f32 %v4853_v26, %v1081_v43 }
 0x2c0   :  { %v4931_v57 = vsub.f32 %v689_v41, %v767_v6  ;;  %v4935_v28 = vsub.f32 %v690_v14, %v767_v6  ;;  %v950_v2 = vsub.f32 1.5, %v949_v44 }
 0x2c1   :  { %v905_v23 = vadd.f32 1e-05, %v889_v54  ;;  %v3743_v53 = vpop.eup %3742  ;;  %v1154_v61 = vadd.f32 %v4893_v7, %v1117_v33 }
 0x2c2   :  { %v826_v30 = vmul.f32 %v4931_v57, %v4931_v57  ;;  %v827_v45 = vmul.f32 %v4935_v28, %v4935_v28  ;;  %v951_v47 = vmul.f32 %v3741_v27, %v950_v2  ;;  %v957_v4 = vmul.f32 %v3743_v53, %v4916_v55 }
 0x2c3   :  { %3744 = vrsqrt.f32 %v905_v23  ;;  %vm963_vm3 = vweird.f32 %v3743_v53  ;;  %v6174_v55 = vmax.f32 %v4586_v50, 0.0  ;;  %vm972_vm0 = vweird.f32 %v905_v23 }
 0x2c4   :  { %v869_v41 = vadd.f32 %v827_v45, %v826_v30  ;;  %v958_v14 = vmul.f32 %v3743_v53, %v957_v4  ;;  %v955_v32 = vsel %vm954_vm2, %v3741_v27, %v951_v47  ;;  %vm964_vm5 = vmor %vm962_vm4, %vm963_vm3 }
 0x2c5   :  { %v739_v42 = vpop.xlane.xlu2 %738  ;;  %v1082_v35 = vmul.f32 %v955_v32, %v4504_v25  ;;  %v1083_v21 = vmul.f32 %v955_v32, %v4508_v16  ;;  %v1155_v25 = vadd.f32 %v4900_v17, %v1118_v46 }
 0x2c6   :  { %v768_v51 = vmul.f32 %v4411_v59, %v739_v42  ;;  %870 = vadd.xlane.f32.xlu2 %v869_v41  ;;  %v959_v24 = vmul.f32 0.5, %v958_v14 }
 0x2c7   :  { %v1119_v27 = vmul.f32 %v4850_v10, %v1082_v35  ;;  %v1120_v20 = vmul.f32 %v4853_v26, %v1083_v21 }
 0x2c8   :  { %v4952_v49 = vsub.f32 %v691_v13, %v768_v51  ;;  %v4956_v58 = vsub.f32 %v692_v29, %v768_v51  ;;  %v960_v18 = vsub.f32 1.5, %v959_v24 }
 0x2c9   :  { %v3745_v6 = vpop.eup %3744  ;;  %v1156_v15 = vadd.f32 %v4893_v7, %v1119_v27  ;;  %v1157_v13 = vadd.f32 %v4900_v17, %v1120_v20 }
 0x2ca   :  { %v967_v16 = vmul.f32 %v3745_v6, %v905_v23  ;;  %v961_v44 = vmul.f32 %v3743_v53, %v960_v18  ;;  %v828_v22 = vmul.f32 %v4952_v49, %v4952_v49  ;;  %v829_v29 = vmul.f32 %v4956_v58, %v4956_v58 }
 0x2cb   :  { %v1184_v2 = vpack.c.bf16 %v1156_v15, %v1154_v61  ;;  %v1185_v12 = vpack.c.bf16 %v1157_v13, %v1155_v25  ;;  %vm973_vm6 = vweird.f32 %v3745_v6 }
 0x2cc   :  { %v968_v54 = vmul.f32 %v3745_v6, %v967_v16  ;;  %v872_v30 = vadd.f32 %v829_v29, %v828_v22  ;;  %v965_v4 = vsel %vm964_vm5, %v3743_v53, %v961_v44  ;;  %vm974_vm7 = vmor %vm972_vm0, %vm973_vm6 }
 0x2cd   :  { %v742_v43 = vpop.xlane.xlu0 %741  ;;  %1409 = vmatmul.bf16.gmra.mxu2 %v1184_v2  ;;  %1507 = vmatmul.bf16.gmra.mxu0 %v1184_v2  ;;  %v1084_v32 = vmul.f32 %v965_v4, %v4529_v8  ;;  %v1085_v33 = vmul.f32 %v965_v4, %v4533_v36 }
 0x2ce   :  { %v969_v45 = vmul.f32 0.5, %v968_v54  ;;  %1458 = vmatmul.bf16.gmra.mxu3 %v1185_v12  ;;  %v769_v47 = vmul.f32 %v4411_v59, %v742_v43  ;;  %1556 = vmatmul.bf16.gmra.mxu1 %v1185_v12 }
 0x2cf   :  { %873 = vadd.xlane.f32.xlu0 %v872_v30  ;;  %v1121_v35 = vmul.f32 %v4850_v10, %v1084_v32  ;;  %v1122_v8 = vmul.f32 %v4853_v26, %v1085_v33  ;;  %v6176_v32 = vmax.f32 %v4822_v37, 0.0 }
 0x2d0   :  { %v970_v41 = vsub.f32 1.5, %v969_v45  ;;  %v4972_v14 = vsub.f32 %v693_v31, %v769_v47  ;;  %v4976_v42 = vsub.f32 %v6174_v55, %v769_v47 }
 0x2d1   :  { %v1158_v24 = vadd.f32 %v4893_v7, %v1121_v35  ;;  %v1159_v20 = vadd.f32 %v4900_v17, %v1122_v8 }
 0x2d2   :  { %v971_v46 = vmul.f32 %v3745_v6, %v970_v41  ;;  %v830_v53 = vmul.f32 %v4972_v14, %v4972_v14  ;;  %v831_v51 = vmul.f32 %v4976_v42, %v4976_v42  ;;  %v6175_v41 = vmax.f32 %v4819_v63, 0.0 }
 0x2d4   :  { %v875_v40 = vadd.f32 %v831_v51, %v830_v53  ;;  %v975_v31 = vsel %vm974_vm7, %v3745_v6, %v971_v46 }
 0x2d5   :  { %v1086_v50 = vmul.f32 %v975_v31, %v4554_v34  ;;  %v1087_v21 = vmul.f32 %v975_v31, %v4558_v0 }
 0x2d6   :  { %876 = vadd.xlane.f32.xlu1 %v875_v40 }
 0x2d7   :  { %v1123_v36 = vmul.f32 %v4850_v10, %v1086_v50  ;;  %v1124_v23 = vmul.f32 %v4853_v26, %v1087_v21 }
 0x2d9   :  { %v1160_v27 = vadd.f32 %v4893_v7, %v1123_v36  ;;  %v1161_v6 = vadd.f32 %v4900_v17, %v1124_v23 }
 0x2db   :  { %v1186_v34 = vpack.c.bf16 %v1160_v27, %v1158_v24  ;;  %v1187_v18 = vpack.c.bf16 %v1161_v6, %v1159_v20 }
 0x2dd   :  { %1414 = vmatmul.bf16.gmra.mxu2 %v1186_v34  ;;  %1512 = vmatmul.bf16.gmra.mxu0 %v1186_v34  ;;  %v6177_v34 = vmax.f32 %v4860_v60, 0.0 }
 0x2de   :  { %1463 = vmatmul.bf16.gmra.mxu3 %v1187_v18  ;;  %1561 = vmatmul.bf16.gmra.mxu1 %v1187_v18 }
 0x30f   :  { %v856_v0 = vpop.xlane.xlu1 %855 }
 0x310   :  { %v890_v61 = vmul.f32 %v856_v0, %v4411_v59 }
 0x312   :  { %v906_v25 = vadd.f32 1e-05, %v890_v61 }
 0x314   :  { %3746 = vrsqrt.f32 %v906_v25  ;;  %vm982_vm9 = vweird.f32 %v906_v25 }
 0x317   :  { %v859_v16 = vpop.xlane.xlu2 %858 }
 0x318   :  { %v891_v15 = vmul.f32 %v859_v16, %v4411_v59 }
 0x31a   :  { %v3747_v13 = vpop.eup %3746  ;;  %v907_v44 = vadd.f32 1e-05, %v891_v15 }
 0x31b   :  { %v977_v22 = vmul.f32 %v3747_v13, %v906_v25  ;;  %vm983_vm8 = vweird.f32 %v3747_v13 }
 0x31c   :  { %3748 = vrsqrt.f32 %v907_v44  ;;  %vm984_vm10 = vmor %vm982_vm9, %vm983_vm8  ;;  %vm992_vm12 = vweird.f32 %v907_v44 }
 0x31d   :  { %v978_v29 = vmul.f32 %v3747_v13, %v977_v22 }
 0x31e   :  { %v745_v2 = vpop.xlane.xlu0 %744 }
 0x31f   :  { %v979_v54 = vmul.f32 0.5, %v978_v29  ;;  %v770_v43 = vmul.f32 %v4411_v59, %v745_v2 }
 0x321   :  { %v980_v12 = vsub.f32 1.5, %v979_v54  ;;  %v862_v45 = vpop.xlane.xlu2 %861  ;;  %v4999_v55 = vsub.f32 %v6175_v41, %v770_v43  ;;  %v5003_v33 = vsub.f32 %v6176_v32, %v770_v43 }
 0x322   :  { %v3749_v30 = vpop.eup %3748  ;;  %v892_v46 = vmul.f32 %v862_v45, %v4411_v59 }
 0x323   :  { %v981_v47 = vmul.f32 %v3747_v13, %v980_v12  ;;  %v987_v4 = vmul.f32 %v3749_v30, %v907_v44  ;;  %v832_v51 = vmul.f32 %v4999_v55, %v4999_v55  ;;  %v833_v31 = vmul.f32 %v5003_v33, %v5003_v33 }
 0x324   :  { %v908_v40 = vadd.f32 1e-05, %v892_v46  ;;  %vm993_vm11 = vweird.f32 %v3749_v30 }
 0x325   :  { %v988_v53 = vmul.f32 %v3749_v30, %v987_v4  ;;  %v985_v50 = vsel %vm984_vm10, %v3747_v13, %v981_v47  ;;  %v878_v21 = vadd.f32 %v833_v31, %v832_v51  ;;  %vm994_vm13 = vmor %vm992_vm12, %vm993_vm11 }
 0x326   :  { %3750 = vrsqrt.f32 %v908_v40  ;;  %v748_v35 = vpop.xlane.xlu1 %747  ;;  %v1088_v23 = vmul.f32 %v985_v50, %v4750_v5  ;;  %v1089_v27 = vmul.f32 %v985_v50, %v4754_v9  ;;  %vm1002_vm15 = vweird.f32 %v908_v40 }
 0x327   :  { %v989_v63 = vmul.f32 0.5, %v988_v53  ;;  %v771_v37 = vmul.f32 %v4411_v59, %v748_v35  ;;  %879 = vadd.xlane.f32.xlu2 %v878_v21  ;;  %v1230_v53 = vld [vmem:[%s6144_s9] sm:$0x3] }
 0x328   :  { %v1125_v9 = vmul.f32 %v4850_v10, %v1088_v23  ;;  %v1126_v60 = vmul.f32 %v4853_v26, %v1089_v27  ;;  %v5043_v35 = vperm.slane %v1230_v53, 1 }
 0x329   :  { %v990_v8 = vsub.f32 1.5, %v989_v63  ;;  %v865_v36 = vpop.xlane.xlu0 %864  ;;  %v5016_v6 = vsub.f32 %v697_v38, %v771_v37  ;;  %v5020_v18 = vsub.f32 %v6177_v34, %v771_v37 }
 0x32a   :  { %v893_v24 = vmul.f32 %v865_v36, %v4411_v59  ;;  %v1162_v2 = vadd.f32 %v4893_v7, %v1125_v9  ;;  %v1163_v43 = vadd.f32 %v4900_v17, %v1126_v60 }
 0x32b   :  { %v991_v20 = vmul.f32 %v3749_v30, %v990_v8  ;;  %v834_v5 = vmul.f32 %v5016_v6, %v5016_v6  ;;  %v835_v61 = vmul.f32 %v5020_v18, %v5020_v18 }
 0x32c   :  { %v909_v0 = vadd.f32 1e-05, %v893_v24  ;;  %v3751_v16 = vpop.eup %3750 }
 0x32d   :  { %v995_v25 = vsel %vm994_vm13, %v3749_v30, %v991_v20  ;;  %v997_v15 = vmul.f32 %v3751_v16, %v908_v40  ;;  %v881_v13 = vadd.f32 %v835_v61, %v834_v5  ;;  %vm1003_vm14 = vweird.f32 %v3751_v16 }
 0x32e   :  { %3752 = vrsqrt.f32 %v909_v0  ;;  %v1090_v39 = vmul.f32 %v995_v25, %v4803_v1  ;;  %v1091_v38 = vmul.f32 %v995_v25, %v4807_v52  ;;  %vm1004_vm1 = vmor %vm1002_vm15, %vm1003_vm14  ;;  %vm1012_vm3 = vweird.f32 %v909_v0 }
 0x32f   :  { %v998_v29 = vmul.f32 %v3751_v16, %v997_v15  ;;  %882 = vadd.xlane.f32.xlu0 %v881_v13  ;;  %v5051_v61 = vperm.slane %v1230_v53, 0 }
 0x330   :  { %v1127_v44 = vmul.f32 %v4850_v10, %v1090_v39  ;;  %v1128_v22 = vmul.f32 %v4853_v26, %v1091_v38 }
 0x331   :  { %v999_v52 = vmul.f32 0.5, %v998_v29 }
 0x332   :  { %v868_v54 = vpop.xlane.xlu1 %867  ;;  %v1164_v12 = vadd.f32 %v4893_v7, %v1127_v44  ;;  %v1165_v1 = vadd.f32 %v4900_v17, %v1128_v22 }
 0x333   :  { %v894_v30 = vmul.f32 %v868_v54, %v4411_v59  ;;  %v1000_v41 = vsub.f32 1.5, %v999_v52 }
 0x334   :  { %v3753_v45 = vpop.eup %3752  ;;  %v1188_v47 = vpack.c.bf16 %v1164_v12, %v1162_v2  ;;  %v1189_v4 = vpack.c.bf16 %v1165_v1, %v1163_v43 }
 0x335   :  { %v1007_v32 = vmul.f32 %v3753_v45, %v909_v0  ;;  %v5037_v46 = vadd.f32 1e-05, %v894_v30  ;;  %v1001_v51 = vmul.f32 %v3751_v16, %v1000_v41  ;;  %vm1013_vm2 = vweird.f32 %v3753_v45 }
 0x336   :  { %1419 = vmatmul.bf16.gmra.mxu2 %v1188_v47  ;;  %1468 = vmatmul.bf16.gmra.mxu3 %v1189_v4  ;;  %vm1014_vm4 = vmor %vm1012_vm3, %vm1013_vm2 }
 0x337   :  { %v1008_v31 = vmul.f32 %v3753_v45, %v1007_v32  ;;  %3754 = vrsqrt.f32 %v5037_v46  ;;  %1517 = vmatmul.bf16.gmra.mxu0 %v1188_v47  ;;  %1566 = vmatmul.bf16.gmra.mxu1 %v1189_v4  ;;  %v1005_v21 = vsel %vm1004_vm1, %v3751_v16, %v1001_v51  ;;  %vm1022_vm6 = vweird.f32 %v5037_v46 }
 0x338   :  { %v1092_v24 = vmul.f32 %v1005_v21, %v4826_v11  ;;  %v1093_v40 = vmul.f32 %v1005_v21, %v4830_v48 }
 0x339   :  { %v1009_v50 = vmul.f32 0.5, %v1008_v31  ;;  %v871_v63 = vpop.xlane.xlu2 %870 }
 0x33a   :  { %v895_v8 = vmul.f32 %v871_v63, %v4411_v59  ;;  %v1503_v37 = vpop.f32.mrf.mxu0  ;;  %v1129_v16 = vmul.f32 %v4850_v10, %v1092_v24  ;;  %v1130_v11 = vmul.f32 %v4853_v26, %v1093_v40 }
 0x33b   :  { %v1010_v36 = vsub.f32 1.5, %v1009_v50  ;;  %v1552_v23 = vpop.f32.mrf.mxu1  ;;  %v1504_v5 = vadd.f32 %v1503_v37, %v5043_v35 }
 0x33c   :  { %v5048_v27 = vadd.f32 1e-05, %v895_v8 }
 0x33d   :  { %v3755_v20 = vpop.eup %3754  ;;  %v1011_v34 = vmul.f32 %v3753_v45, %v1010_v36  ;;  %v5059_v60 = vadd.f32 %v1552_v23, %v1504_v5 }
 0x33e   :  { %v1017_v25 = vmul.f32 %v3755_v20, %v5037_v46  ;;  %3756 = vrsqrt.f32 %v5048_v27  ;;  %vm1023_vm5 = vweird.f32 %v3755_v20  ;;  %vm1032_vm8 = vweird.f32 %v5048_v27 }
 0x33f   :  { %v1015_v9 = vsel %vm1014_vm4, %v3753_v45, %v1011_v34  ;;  %v1593_v41 = vmax.f32 %v5059_v60, 0.0  ;;  %vm1024_vm0 = vmor %vm1022_vm6, %vm1023_vm5 }
 0x340   :  { %v1018_v48 = vmul.f32 %v3755_v20, %v1017_v25  ;;  %v1405_v39 = vpop.f32.mrf.mxu2  ;;  %v1094_v38 = vmul.f32 %v1015_v9, %v4864_v3  ;;  %v1095_v0 = vmul.f32 %v1015_v9, %v4868_v62  ;;  %v1166_v3 = vadd.f32 %v4893_v7, %v1129_v16 }
 0x341   :  { %v1406_v15 = vadd.f32 %v1405_v39, %v5051_v61  ;;  %v1454_v13 = vpop.f32.mrf.mxu3  ;;  %v1167_v62 = vadd.f32 %v4900_v17, %v1130_v11 }
 0x342   :  { %v1019_v44 = vmul.f32 0.5, %v1018_v48  ;;  %v1505_v22 = vpop.f32.mrf.mxu0  ;;  %v1131_v29 = vmul.f32 %v4850_v10, %v1094_v38  ;;  %v1132_v54 = vmul.f32 %v4853_v26, %v1095_v0  ;;  %v874_v12 = vpop.xlane.xlu0 %873 }
 0x343   :  { %v5064_v2 = vadd.f32 %v1454_v13, %v1406_v15  ;;  %v1554_v43 = vpop.f32.mrf.mxu1  ;;  %v896_v30 = vmul.f32 %v874_v12, %v4411_v59  ;;  %v1506_v53 = vadd.f32 %v1505_v22, %v5043_v35 }
 0x344   :  { %v3757_v1 = vpop.eup %3756  ;;  %v1020_v52 = vsub.f32 1.5, %v1019_v44  ;;  %v1168_v45 = vadd.f32 %v4893_v7, %v1131_v29  ;;  %v1169_v47 = vadd.f32 %v4900_v17, %v1132_v54 }
 0x345   :  { %v1027_v4 = vmul.f32 %v3757_v1, %v5048_v27  ;;  %v1592_v32 = vmax.f32 %v5064_v2, 0.0  ;;  %v5075_v31 = vadd.f32 1e-05, %v896_v30  ;;  %v5084_v23 = vadd.f32 %v1554_v43, %v1506_v53 }
 0x346   :  { %v1021_v51 = vmul.f32 %v3755_v20, %v1020_v52  ;;  %v1190_v50 = vpack.c.bf16 %v1168_v45, %v1166_v3  ;;  %v1191_v63 = vpack.c.bf16 %v1169_v47, %v1167_v62  ;;  %vm1033_vm7 = vweird.f32 %v3757_v1 }
 0x347   :  { %v1028_v21 = vmul.f32 %v3757_v1, %v1027_v4  ;;  %v1626_v8 = vadd.f32 %v1593_v41, %v1592_v32  ;;  %3758 = vrsqrt.f32 %v5075_v31  ;;  %v1595_v15 = vmax.f32 %v5084_v23, 0.0  ;;  %vm1034_vm9 = vmor %vm1032_vm8, %vm1033_vm7 }
 0x348   :  { %v1407_v37 = vpop.f32.mrf.mxu2  ;;  %1424 = vmatmul.bf16.gmra.mxu2 %v1190_v50  ;;  %1473 = vmatmul.bf16.gmra.mxu3 %v1191_v63  ;;  %v1025_v34 = vsel %vm1024_vm0, %v3755_v20, %v1021_v51  ;;  %vm1042_vm11 = vweird.f32 %v5075_v31 }
 0x349   :  { %v1029_v36 = vmul.f32 0.5, %v1028_v21  ;;  %v1408_v24 = vadd.f32 %v1407_v37, %v5051_v61  ;;  %v1456_v40 = vpop.f32.mrf.mxu3  ;;  %1522 = vmatmul.bf16.gmra.mxu0 %v1190_v50  ;;  %1571 = vmatmul.bf16.gmra.mxu1 %v1191_v63  ;;  %v877_v46 = vpop.xlane.xlu1 %876  ;;  %v1096_v39 = vmul.f32 %v1025_v34, %v4906_v56  ;;  %v1097_v38 = vmul.f32 %v1025_v34, %v4910_v19 }
 0x34a   :  { %1627 = vadd.xlane.f32.xlu1 %v1626_v8  ;;  %v897_v5 = vmul.f32 %v877_v46, %v4411_v59  ;;  %v1508_v11 = vpop.f32.mrf.mxu0 }
 0x34b   :  { %v1030_v25 = vsub.f32 1.5, %v1029_v36  ;;  %v5088_v9 = vadd.f32 %v1456_v40, %v1408_v24  ;;  %v1557_v48 = vpop.f32.mrf.mxu1  ;;  %v1509_v13 = vadd.f32 %v1508_v11, %v5043_v35  ;;  %v1133_v29 = vmul.f32 %v4850_v10, %v1096_v39 }
 0x34c   :  { %v5090_v16 = vadd.f32 1e-05, %v897_v5  ;;  %v1134_v54 = vmul.f32 %v4853_v26, %v1097_v38 }
 0x34d   :  { %v1031_v0 = vmul.f32 %v3757_v1, %v1030_v25  ;;  %v1594_v20 = vmax.f32 %v5088_v9, 0.0  ;;  %v3759_v44 = vpop.eup %3758  ;;  %v5106_v43 = vadd.f32 %v1557_v48, %v1509_v13  ;;  %v1170_v50 = vadd.f32 %v4893_v7, %v1133_v29 }
 0x34e   :  { %3760 = vrsqrt.f32 %v5090_v16  ;;  %v1037_v22 = vmul.f32 %v3759_v44, %v5075_v31  ;;  %v1171_v63 = vadd.f32 %v4900_v17, %v1134_v54  ;;  %vm1043_vm10 = vweird.f32 %v3759_v44 }
 0x34f   :  { %v1629_v56 = vadd.f32 %v1595_v15, %v1594_v20  ;;  %v1035_v19 = vsel %vm1034_vm9, %v3757_v1, %v1031_v0  ;;  %vm1044_vm12 = vmor %vm1042_vm11, %vm1043_vm10  ;;  %vm1052_vm14 = vweird.f32 %v5090_v16 }
 0x350   :  { %v1038_v12 = vmul.f32 %v3759_v44, %v1037_v22  ;;  %v1410_v3 = vpop.f32.mrf.mxu2  ;;  %v1098_v62 = vmul.f32 %v1035_v19, %v4931_v57  ;;  %v1099_v52 = vmul.f32 %v1035_v19, %v4935_v28  ;;  %v1597_v28 = vmax.f32 %v5106_v43, 0.0 }
 0x351   :  { %v1459_v27 = vpop.f32.mrf.mxu3  ;;  %1630 = vadd.xlane.f32.xlu2 %v1629_v56  ;;  %v1411_v30 = vadd.f32 %v1410_v3, %v5051_v61 }
 0x352   :  { %v1039_v45 = vmul.f32 0.5, %v1038_v12  ;;  %v1135_v47 = vmul.f32 %v4850_v10, %v1098_v62  ;;  %v1136_v1 = vmul.f32 %v4853_v26, %v1099_v52  ;;  %v1510_v51 = vpop.f32.mrf.mxu0 }
 0x353   :  { %v5113_v53 = vadd.f32 %v1459_v27, %v1411_v30  ;;  %v1559_v8 = vpop.f32.mrf.mxu1  ;;  %v1511_v36 = vadd.f32 %v1510_v51, %v5043_v35 }
 0x354   :  { %v3761_v4 = vpop.eup %3760  ;;  %v1040_v21 = vsub.f32 1.5, %v1039_v45  ;;  %v1172_v24 = vadd.f32 %v4893_v7, %v1135_v47  ;;  %v1173_v40 = vadd.f32 %v4900_v17, %v1136_v1 }
 0x355   :  { %v1047_v57 = vmul.f32 %v3761_v4, %v5090_v16  ;;  %v1596_v37 = vmax.f32 %v5113_v53, 0.0  ;;  %v5128_v13 = vadd.f32 %v1559_v8, %v1511_v36  ;;  %vm1053_vm13 = vweird.f32 %v3761_v4 }
 0x356   :  { %v1041_v46 = vmul.f32 %v3759_v44, %v1040_v21  ;;  %v1192_v5 = vpack.c.bf16 %v1172_v24, %v1170_v50  ;;  %v1193_v25 = vpack.c.bf16 %v1173_v40, %v1171_v63  ;;  %vm1054_vm15 = vmor %vm1052_vm14, %vm1053_vm13 }
 0x357   :  { %v1048_v34 = vmul.f32 %v3761_v4, %v1047_v57  ;;  %v1632_v11 = vadd.f32 %v1597_v28, %v1596_v37  ;;  %v1599_v3 = vmax.f32 %v5128_v13, 0.0 }
 0x358   :  { %v1412_v39 = vpop.f32.mrf.mxu2  ;;  %v1045_v0 = vsel %vm1044_vm12, %v3759_v44, %v1041_v46  ;;  %1429 = vmatmul.bf16.gmra.mxu2 %v1192_v5  ;;  %1478 = vmatmul.bf16.gmra.mxu3 %v1193_v25 }
 0x359   :  { %v1049_v48 = vmul.f32 0.5, %v1048_v34  ;;  %v1461_v38 = vpop.f32.mrf.mxu3  ;;  %v1413_v22 = vadd.f32 %v1412_v39, %v5051_v61  ;;  %1527 = vmatmul.bf16.gmra.mxu0 %v1192_v5  ;;  %1576 = vmatmul.bf16.gmra.mxu1 %v1193_v25  ;;  %v1100_v56 = vmul.f32 %v1045_v0, %v4952_v49  ;;  %v1101_v54 = vmul.f32 %v1045_v0, %v4956_v58 }
 0x35a   :  { %1633 = vadd.xlane.f32.xlu0 %v1632_v11  ;;  %v1513_v29 = vpop.f32.mrf.mxu0 }
 0x35b   :  { %v1050_v31 = vsub.f32 1.5, %v1049_v48  ;;  %v5132_v19 = vadd.f32 %v1461_v38, %v1413_v22  ;;  %v1514_v44 = vadd.f32 %v1513_v29, %v5043_v35  ;;  %v1562_v62 = vpop.f32.mrf.mxu1  ;;  %v1137_v49 = vmul.f32 %v4850_v10, %v1100_v56 }
 0x35c   :  { %v1138_v45 = vmul.f32 %v4853_v26, %v1101_v54 }
 0x35d   :  { %v1051_v12 = vmul.f32 %v3761_v4, %v1050_v31  ;;  %v1598_v27 = vmax.f32 %v5132_v19, 0.0  ;;  %v5147_v47 = vadd.f32 %v1562_v62, %v1514_v44  ;;  %v1174_v21 = vadd.f32 %v4893_v7, %v1137_v49 }
 0x35e   :  { %v1175_v8 = vadd.f32 %v4900_v17, %v1138_v45 }
 0x35f   :  { %v1055_v52 = vsel %vm1054_vm15, %v3761_v4, %v1051_v12  ;;  %v1635_v30 = vadd.f32 %v1599_v3, %v1598_v27  ;;  %v1601_v24 = vmax.f32 %v5147_v47, 0.0 }
 0x360   :  { %v1102_v58 = vmul.f32 %v1055_v52, %v4972_v14  ;;  %v1103_v16 = vmul.f32 %v1055_v52, %v4976_v42  ;;  %v1415_v1 = vpop.f32.mrf.mxu2 }
 0x361   :  { %v1464_v51 = vpop.f32.mrf.mxu3  ;;  %v1416_v50 = vadd.f32 %v1415_v1, %v5051_v61  ;;  %1636 = vadd.xlane.f32.xlu1 %v1635_v30 }
 0x362   :  { %v1139_v4 = vmul.f32 %v4850_v10, %v1102_v58  ;;  %v1140_v63 = vmul.f32 %v4853_v26, %v1103_v16  ;;  %v1515_v14 = vpop.f32.mrf.mxu0 }
 0x363   :  { %v5153_v57 = vadd.f32 %v1464_v51, %v1416_v50  ;;  %v1516_v46 = vadd.f32 %v1515_v14, %v5043_v35  ;;  %v1564_v11 = vpop.f32.mrf.mxu1 }
 0x364   :  { %v1176_v42 = vadd.f32 %v4893_v7, %v1139_v4  ;;  %v1177_v36 = vadd.f32 %v4900_v17, %v1140_v63 }
 0x365   :  { %v1600_v40 = vmax.f32 %v5153_v57, 0.0  ;;  %v5165_v39 = vadd.f32 %v1564_v11, %v1516_v46 }
 0x366   :  { %v1194_v34 = vpack.c.bf16 %v1176_v42, %v1174_v21  ;;  %v1195_v5 = vpack.c.bf16 %v1177_v36, %v1175_v8 }
 0x367   :  { %v1638_v25 = vadd.f32 %v1601_v24, %v1600_v40  ;;  %v1603_v31 = vmax.f32 %v5165_v39, 0.0 }
 0x368   :  { %v1417_v48 = vpop.f32.mrf.mxu2  ;;  %1434 = vmatmul.bf16.gmra.mxu2 %v1194_v34  ;;  %1483 = vmatmul.bf16.gmra.mxu3 %v1195_v5 }
 0x369   :  { %v1418_v38 = vadd.f32 %v1417_v48, %v5051_v61  ;;  %v1466_v0 = vpop.f32.mrf.mxu3  ;;  %1532 = vmatmul.bf16.gmra.mxu0 %v1194_v34  ;;  %1581 = vmatmul.bf16.gmra.mxu1 %v1195_v5 }
 0x36a   :  { %1639 = vadd.xlane.f32.xlu2 %v1638_v25 }
 0x36b   :  { %v5168_v22 = vadd.f32 %v1466_v0, %v1418_v38 }
 0x36d   :  { %v1602_v56 = vmax.f32 %v5168_v22, 0.0 }
 0x36f   :  { %v1641_v29 = vadd.f32 %v1603_v31, %v1602_v56 }
 0x371   :  { %1642 = vadd.xlane.f32.xlu0 %v1641_v29 }
 0x39a   :  { %v880_v54 = vpop.xlane.xlu2 %879 }
 0x39b   :  { %v898_v12 = vmul.f32 %v880_v54, %v4411_v59 }
 0x39d   :  { %v914_v44 = vadd.f32 1e-05, %v898_v12 }
 0x39f   :  { %3762 = vrsqrt.f32 %v914_v44  ;;  %vm1062_vm2 = vweird.f32 %v914_v44 }
 0x3a2   :  { %v883_v62 = vpop.xlane.xlu0 %882 }
 0x3a3   :  { %v899_v52 = vmul.f32 %v883_v62, %v4411_v59 }
 0x3a5   :  { %v915_v49 = vadd.f32 1e-05, %v899_v52  ;;  %v3763_v30 = vpop.eup %3762 }
 0x3a6   :  { %v1057_v58 = vmul.f32 %v3763_v30, %v914_v44  ;;  %vm1063_vm1 = vweird.f32 %v3763_v30 }
 0x3a7   :  { %3764 = vrsqrt.f32 %v915_v49  ;;  %vm1064_vm3 = vmor %vm1062_vm2, %vm1063_vm1  ;;  %vm1072_vm5 = vweird.f32 %v915_v49 }
 0x3a8   :  { %v1058_v16 = vmul.f32 %v3763_v30, %v1057_v58 }
 0x3aa   :  { %v1059_v45 = vmul.f32 0.5, %v1058_v16 }
 0x3ac   :  { %v1060_v51 = vsub.f32 1.5, %v1059_v45 }
 0x3ad   :  { %v3765_v1 = vpop.eup %3764 }
 0x3ae   :  { %v1067_v50 = vmul.f32 %v3765_v1, %v915_v49  ;;  %v1061_v4 = vmul.f32 %v3763_v30, %v1060_v51  ;;  %vm1073_vm4 = vweird.f32 %v3765_v1 }
 0x3af   :  { %vm1074_vm6 = vmor %vm1072_vm5, %vm1073_vm4 }
 0x3b0   :  { %v1068_v63 = vmul.f32 %v3765_v1, %v1067_v50  ;;  %v1065_v8 = vsel %vm1064_vm3, %v3763_v30, %v1061_v4 }
 0x3b1   :  { %v1104_v34 = vmul.f32 %v1065_v8, %v4999_v55  ;;  %v1105_v5 = vmul.f32 %v1065_v8, %v5003_v33 }
 0x3b2   :  { %v1069_v21 = vmul.f32 0.5, %v1068_v63 }
 0x3b3   :  { %v1141_v12 = vmul.f32 %v4850_v10, %v1104_v34  ;;  %v1142_v55 = vmul.f32 %v4853_v26, %v1105_v5 }
 0x3b4   :  { %v1518_v14 = vpop.f32.mrf.mxu0  ;;  %v1567_v42 = vpop.f32.mrf.mxu1  ;;  %v1070_v36 = vsub.f32 1.5, %v1069_v21 }
 0x3b5   :  { %v1519_v46 = vadd.f32 %v1518_v14, %v5043_v35  ;;  %v1179_v50 = vadd.f32 %v4900_v17, %v1142_v55 }
 0x3b6   :  { %v1071_v25 = vmul.f32 %v3765_v1, %v1070_v36 }
 0x3b7   :  { %v5181_v38 = vadd.f32 %v1567_v42, %v1519_v46 }
 0x3b8   :  { %v1075_v29 = vsel %vm1074_vm6, %v3765_v1, %v1071_v25 }
 0x3b9   :  { %v1420_v11 = vpop.f32.mrf.mxu2  ;;  %v1469_v48 = vpop.f32.mrf.mxu3  ;;  %v1106_v54 = vmul.f32 %v1075_v29, %v5016_v6  ;;  %v1107_v44 = vmul.f32 %v1075_v29, %v5020_v18  ;;  %v1605_v16 = vmax.f32 %v5181_v38, 0.0  ;;  %v1178_v18 = vadd.f32 %v4893_v7, %v1141_v12 }
 0x3ba   :  { %v1421_v0 = vadd.f32 %v1420_v11, %v5051_v61 }
 0x3bb   :  { %v1143_v30 = vmul.f32 %v4850_v10, %v1106_v54  ;;  %v1144_v58 = vmul.f32 %v4853_v26, %v1107_v44 }
 0x3bc   :  { %v5188_v62 = vadd.f32 %v1469_v48, %v1421_v0  ;;  %v1520_v33 = vpop.f32.mrf.mxu0  ;;  %v1569_v52 = vpop.f32.mrf.mxu1 }
 0x3bd   :  { %v1628_v49 = vpop.xlane.xlu1 %1627  ;;  %v1521_v1 = vadd.f32 %v1520_v33, %v5043_v35  ;;  %v1180_v51 = vadd.f32 %v4893_v7, %v1143_v30  ;;  %v1181_v4 = vadd.f32 %v4900_v17, %v1144_v58 }
 0x3be   :  { %v1604_v45 = vmax.f32 %v5188_v62, 0.0  ;;  %v1674_v6 = vmul.f32 %v1628_v49, %v4411_v59  ;;  %v3471_v62 = vld [vmem:[%s6145_s12 + $0x90] sm:$0xf] }
 0x3bf   :  { %v1196_v14 = vpack.c.bf16 %v1180_v51, %v1178_v18  ;;  %v1197_v42 = vpack.c.bf16 %v1181_v4, %v1179_v50  ;;  %v5212_v8 = vadd.f32 %v1569_v52, %v1521_v1 }
 0x3c0   :  { %v5202_v10 = vsub.f32 %v1592_v32, %v1674_v6  ;;  %v5206_v26 = vsub.f32 %v1593_v41, %v1674_v6  ;;  %v1644_v63 = vadd.f32 %v1605_v16, %v1604_v45 }
 0x3c1   :  { %v1422_v21 = vpop.f32.mrf.mxu2  ;;  %v1471_v7 = vpop.f32.mrf.mxu3  ;;  %1439 = vmatmul.bf16.gmra.mxu2 %v1196_v14  ;;  %1488 = vmatmul.bf16.gmra.mxu3 %v1197_v42  ;;  %v1607_v34 = vmax.f32 %v5212_v8, 0.0 }
 0x3c2   :  { %v1423_v17 = vadd.f32 %v1422_v21, %v5051_v61  ;;  %1645 = vadd.xlane.f32.xlu1 %v1644_v63  ;;  %v1722_v2 = vmul.f32 %v5202_v10, %v5202_v10  ;;  %v1723_v60 = vmul.f32 %v5206_v26, %v5206_v26  ;;  %1537 = vmatmul.bf16.gmra.mxu0 %v1196_v14 }
 0x3c3   :  { %1586 = vmatmul.bf16.gmra.mxu1 %v1197_v42 }
 0x3c4   :  { %v5219_v41 = vadd.f32 %v1471_v7, %v1423_v17  ;;  %v1631_v32 = vpop.xlane.xlu2 %1630  ;;  %v1754_v36 = vadd.f32 %v1723_v60, %v1722_v2 }
 0x3c5   :  { %v1675_v46 = vmul.f32 %v1631_v32, %v4411_v59 }
 0x3c6   :  { %v1606_v5 = vmax.f32 %v5219_v41, 0.0  ;;  %1755 = vadd.xlane.f32.xlu0 %v1754_v36  ;;  %v1523_v25 = vpop.f32.mrf.mxu0  ;;  %v1572_v11 = vpop.f32.mrf.mxu1 }
 0x3c7   :  { %v5226_v48 = vsub.f32 %v1594_v20, %v1675_v46  ;;  %v5230_v0 = vsub.f32 %v1595_v15, %v1675_v46  ;;  %v1524_v29 = vadd.f32 %v1523_v25, %v5043_v35 }
 0x3c8   :  { %v1647_v54 = vadd.f32 %v1607_v34, %v1606_v5 }
 0x3c9   :  { %v1724_v12 = vmul.f32 %v5226_v48, %v5226_v48  ;;  %v1725_v44 = vmul.f32 %v5230_v0, %v5230_v0  ;;  %v5241_v23 = vadd.f32 %v1572_v11, %v1524_v29 }
 0x3ca   :  { %1648 = vadd.xlane.f32.xlu2 %v1647_v54 }
 0x3cb   :  { %v1425_v9 = vpop.f32.mrf.mxu2  ;;  %v1474_v20 = vpop.f32.mrf.mxu3  ;;  %v1757_v55 = vadd.f32 %v1725_v44, %v1724_v12  ;;  %v1609_v58 = vmax.f32 %v5241_v23, 0.0 }
 0x3cc   :  { %v1426_v15 = vadd.f32 %v1425_v9, %v5051_v61 }
 0x3cd   :  { %1758 = vadd.xlane.f32.xlu1 %v1757_v55  ;;  %v1634_v30 = vpop.xlane.xlu0 %1633 }
 0x3ce   :  { %v5244_v33 = vadd.f32 %v1474_v20, %v1426_v15  ;;  %v1525_v52 = vpop.f32.mrf.mxu0  ;;  %v1574_v49 = vpop.f32.mrf.mxu1  ;;  %v1676_v1 = vmul.f32 %v1634_v30, %v4411_v59 }
 0x3cf   :  { %v1526_v18 = vadd.f32 %v1525_v52, %v5043_v35 }
 0x3d0   :  { %v1608_v6 = vmax.f32 %v5244_v33, 0.0  ;;  %v5252_v51 = vsub.f32 %v1596_v37, %v1676_v1  ;;  %v5256_v50 = vsub.f32 %v1597_v28, %v1676_v1 }
 0x3d1   :  { %v5262_v14 = vadd.f32 %v1574_v49, %v1526_v18 }
 0x3d2   :  { %v1650_v4 = vadd.f32 %v1609_v58, %v1608_v6  ;;  %v1726_v53 = vmul.f32 %v5252_v51, %v5252_v51  ;;  %v1727_v43 = vmul.f32 %v5256_v50, %v5256_v50 }
 0x3d3   :  { %v1427_v63 = vpop.f32.mrf.mxu2  ;;  %v1476_v21 = vpop.f32.mrf.mxu3  ;;  %v1611_v2 = vmax.f32 %v5262_v14, 0.0 }
 0x3d4   :  { %v1428_v7 = vadd.f32 %v1427_v63, %v5051_v61  ;;  %1651 = vadd.xlane.f32.xlu2 %v1650_v4  ;;  %v1637_v28 = vpop.xlane.xlu1 %1636  ;;  %v1760_v17 = vadd.f32 %v1727_v43, %v1726_v53 }
 0x3d5   :  { %v1677_v42 = vmul.f32 %v1637_v28, %v4411_v59 }
 0x3d6   :  { %v5269_v37 = vadd.f32 %v1476_v21, %v1428_v7  ;;  %v1528_v46 = vpop.f32.mrf.mxu0  ;;  %v1577_v25 = vpop.f32.mrf.mxu1  ;;  %1761 = vadd.xlane.f32.xlu1 %v1760_v17 }
 0x3d7   :  { %v5276_v32 = vsub.f32 %v1598_v27, %v1677_v42  ;;  %v5280_v36 = vsub.f32 %v1599_v3, %v1677_v42  ;;  %v1529_v11 = vadd.f32 %v1528_v46, %v5043_v35 }
 0x3d8   :  { %v1610_v60 = vmax.f32 %v5269_v37, 0.0 }
 0x3d9   :  { %v1728_v54 = vmul.f32 %v5276_v32, %v5276_v32  ;;  %v1729_v19 = vmul.f32 %v5280_v36, %v5280_v36  ;;  %v5291_v3 = vadd.f32 %v1577_v25, %v1529_v11 }
 0x3da   :  { %v1653_v29 = vadd.f32 %v1611_v2, %v1610_v60 }
 0x3db   :  { %v1763_v13 = vadd.f32 %v1729_v19, %v1728_v54  ;;  %v1430_v27 = vpop.f32.mrf.mxu2  ;;  %v1479_v12 = vpop.f32.mrf.mxu3  ;;  %v1613_v52 = vmax.f32 %v5291_v3, 0.0 }
 0x3dc   :  { %1654 = vadd.xlane.f32.xlu0 %v1653_v29  ;;  %v1431_v44 = vadd.f32 %v1430_v27, %v5051_v61 }
 0x3dd   :  { %1764 = vadd.xlane.f32.xlu2 %v1763_v13  ;;  %v1640_v9 = vpop.xlane.xlu2 %1639 }
 0x3de   :  { %v5294_v20 = vadd.f32 %v1479_v12, %v1431_v44  ;;  %v1678_v55 = vmul.f32 %v1640_v9, %v4411_v59  ;;  %v1530_v15 = vpop.f32.mrf.mxu0  ;;  %v1579_v49 = vpop.f32.mrf.mxu1 }
 0x3df   :  { %v1531_v4 = vadd.f32 %v1530_v15, %v5043_v35 }
 0x3e0   :  { %v1612_v30 = vmax.f32 %v5294_v20, 0.0  ;;  %v5301_v1 = vsub.f32 %v1600_v40, %v1678_v55  ;;  %v5305_v18 = vsub.f32 %v1601_v24, %v1678_v55 }
 0x3e1   :  { %v5316_v53 = vadd.f32 %v1579_v49, %v1531_v4 }
 0x3e2   :  { %v1656_v63 = vadd.f32 %v1613_v52, %v1612_v30  ;;  %v1730_v21 = vmul.f32 %v5301_v1, %v5301_v1  ;;  %v1731_v7 = vmul.f32 %v5305_v18, %v5305_v18 }
 0x3e3   :  { %v1432_v57 = vpop.f32.mrf.mxu2  ;;  %v1481_v40 = vpop.f32.mrf.mxu3  ;;  %v1615_v11 = vmax.f32 %v5316_v53, 0.0 }
 0x3e4   :  { %v1433_v47 = vadd.f32 %v1432_v57, %v5051_v61  ;;  %1657 = vadd.xlane.f32.xlu0 %v1656_v63  ;;  %v1643_v24 = vpop.xlane.xlu0 %1642  ;;  %v1766_v43 = vadd.f32 %v1731_v7, %v1730_v21 }
 0x3e5   :  { %v1679_v28 = vmul.f32 %v1643_v24, %v4411_v59 }
 0x3e6   :  { %v5320_v42 = vadd.f32 %v1481_v40, %v1433_v47  ;;  %1767 = vadd.xlane.f32.xlu2 %v1766_v43  ;;  %v1533_v17 = vpop.f32.mrf.mxu0  ;;  %v1582_v19 = vpop.f32.mrf.mxu1 }
 0x3e7   :  { %v5324_v46 = vsub.f32 %v1602_v56, %v1679_v28  ;;  %v5328_v25 = vsub.f32 %v1603_v31, %v1679_v28  ;;  %v1534_v54 = vadd.f32 %v1533_v17, %v5043_v35 }
 0x3e8   :  { %v1614_v29 = vmax.f32 %v5320_v42, 0.0 }
 0x3e9   :  { %v1732_v13 = vmul.f32 %v5324_v46, %v5324_v46  ;;  %v1733_v27 = vmul.f32 %v5328_v25, %v5328_v25  ;;  %v5341_v12 = vadd.f32 %v1582_v19, %v1534_v54  ;;  %v3455_v54 = vld [vmem:[%s6145_s12 + $0x70] sm:$0xf]  ;;  %v3654_v19 = vld [vmem:[%s6145_s12 + $0x74] sm:$0xf0] }
 0x3ea   :  { %v1659_v39 = vadd.f32 %v1615_v11, %v1614_v29 }
 0x3eb   :  { %v1435_v22 = vpop.f32.mrf.mxu2  ;;  %v1484_v31 = vpop.f32.mrf.mxu3  ;;  %v1769_v56 = vadd.f32 %v1733_v27, %v1732_v13  ;;  %v1617_v15 = vmax.f32 %v5341_v12, 0.0  ;;  %v3519_v13 = vld [vmem:[%s6145_s12 + $0xf0] sm:$0xf]  ;;  %v3456_v27 = vor.u32 %v3654_v19, %v3455_v54  ;;  %v3651_v54 = vld [vmem:[%s6145_s12 + $0x64] sm:$0xf] }
 0x3ec   :  { %v1436_v44 = vadd.f32 %v1435_v22, %v5051_v61  ;;  %1660 = vadd.xlane.f32.xlu1 %v1659_v39  ;;  %v3670_v39 = vld [vmem:[%s6145_s12 + $0xf4] sm:$0xf0]  ;;  %v3653_v22 = vld [vmem:[%s6145_s12 + $0x74] sm:$0xf]  ;;  %v3449_v19 = vld [vmem:[%s6145_s12 + $0x68] sm:$0xf0] }
 0x3ed   :  { %1770 = vadd.xlane.f32.xlu0 %v1769_v56  ;;  %v3520_v56 = vor.u32 %v3670_v39, %v3519_v13  ;;  %2314 = vmatpush.bf16.msrb.mxu2 %v3456_v27  ;;  %v3452_v27 = vor.u32 %v3651_v54, %v3449_v19  ;;  %v3667_v39 = vld [vmem:[%s6145_s12 + $0xe4] sm:$0xf]  ;;  %v3505_v54 = vld [vmem:[%s6145_s12 + $0xd8] sm:$0xf0] }
 0x3ee   :  { %v5344_v9 = vadd.f32 %v1484_v31, %v1436_v44  ;;  %v1535_v55 = vpop.f32.mrf.mxu0  ;;  %v1584_v21 = vpop.f32.mrf.mxu1  ;;  %v3457_v31 = vld [vmem:[%s6145_s12 + $0x78] sm:$0xf0] }
 0x3ef   :  { %v1536_v4 = vadd.f32 %v1535_v55, %v5043_v35  ;;  %v3460_v44 = vor.u32 %v3653_v22, %v3457_v31  ;;  %v3669_v55 = vld [vmem:[%s6145_s12 + $0xf4] sm:$0xf]  ;;  %2363 = vmatpush.bf16.msrb.mxu3 %v3520_v56  ;;  %v3513_v22 = vld [vmem:[%s6145_s12 + $0xe8] sm:$0xf0]  ;;  %v3439_v56 = vld [vmem:[%s6145_s12 + $0x50] sm:$0xf] }
 0x3f0   :  { %v1616_v49 = vmax.f32 %v5344_v9, 0.0  ;;  %v3516_v31 = vor.u32 %v3667_v39, %v3513_v22  ;;  %v3495_v39 = vld [vmem:[%s6145_s12 + $0xc0] sm:$0xf] }
 0x3f1   :  { %v5353_v57 = vadd.f32 %v1584_v21, %v1536_v4  ;;  %v3521_v4 = vld [vmem:[%s6145_s12 + $0xf8] sm:$0xf0]  ;;  %2412 = vmatpush.bf16.msra.mxu0 %v3460_v44  ;;  %v3447_v21 = vld [vmem:[%s6145_s12 + $0x60] sm:$0xf]  ;;  %v3650_v44 = vld [vmem:[%s6145_s12 + $0x54] sm:$0xf0] }
 0x3f2   :  { %v1662_v63 = vadd.f32 %v1617_v15, %v1616_v49 }
 0x3f3   :  { %v1437_v7 = vpop.f32.mrf.mxu2  ;;  %v1486_v47 = vpop.f32.mrf.mxu3  ;;  %v6160_v43 = vmax.f32 %v5353_v57, 0.0 }
 0x3f4   :  { %v1438_v40 = vadd.f32 %v1437_v7, %v5051_v61  ;;  %1663 = vadd.xlane.f32.xlu1 %v1662_v63  ;;  %v3524_v63 = vor.u32 %v3669_v55, %v3521_v4  ;;  %v3652_v7 = vld [vmem:[%s6145_s12 + $0x64] sm:$0xf0]  ;;  %v3503_v55 = vld [vmem:[%s6145_s12 + $0xd0] sm:$0xf]  ;;  %v3440_v4 = vor.u32 %v3650_v44, %v3439_v56  ;;  %v3647_v56 = vld [vmem:[%s6145_s12 + $0x44] sm:$0xf] }
 0x3f5   :  { %2413 = vmatpush.bf16.msra.mxu0 %v3452_v27  ;;  %v3648_v27 = vld [vmem:[%s6145_s12 + $0x44] sm:$0xf0]  ;;  %v3433_v44 = vld [vmem:[%s6145_s12 + $0x48] sm:$0xf0] }
 0x3f6   :  { %v5356_v24 = vadd.f32 %v1486_v47, %v1438_v40  ;;  %v3511_v40 = vld [vmem:[%s6145_s12 + $0xe0] sm:$0xf]  ;;  %2461 = vmatpush.bf16.msra.mxu1 %v3524_v63  ;;  %v3448_v47 = vor.u32 %v3652_v7, %v3447_v21  ;;  %v3666_v63 = vld [vmem:[%s6145_s12 + $0xd4] sm:$0xf0]  ;;  %v3649_v21 = vld [vmem:[%s6145_s12 + $0x54] sm:$0xf] }
 0x3f7   :  { %v3441_v7 = vld [vmem:[%s6145_s12 + $0x58] sm:$0xf0] }
 0x3f8   :  { %v6161_v28 = vmax.f32 %v5356_v24, 0.0  ;;  %2315 = vmatpush.bf16.msrb.mxu2 %v3448_v47  ;;  %v3444_v47 = vor.u32 %v3649_v21, %v3441_v7  ;;  %v3497_v21 = vld [vmem:[%s6145_s12 + $0xc8] sm:$0xf0] }
 0x3fa   :  { %v1665_v17 = vadd.f32 %v6160_v43, %v6161_v28  ;;  %2462 = vmatpush.bf16.msra.mxu1 %v3516_v31  ;;  %2414 = vmatpush.bf16.msra.mxu0 %v3444_v47  ;;  %v3664_v31 = vld [vmem:[%s6145_s12 + $0xc4] sm:$0xf0]  ;;  %v3646_v47 = vld [vmem:[%s6145_s12 + $0x34] sm:$0xf0] }
 0x3fc   :  { %1666 = vadd.xlane.f32.xlu2 %v1665_v17  ;;  %v3668_v17 = vld [vmem:[%s6145_s12 + $0xe4] sm:$0xf0]  ;;  %2316 = vmatpush.bf16.msrb.mxu2 %v3440_v4  ;;  %v3436_v4 = vor.u32 %v3647_v56, %v3433_v44  ;;  %v3489_v56 = vld [vmem:[%s6145_s12 + $0xb8] sm:$0xf0] }
 0x3fd   :  { %v3512_v13 = vor.u32 %v3668_v17, %v3511_v40  ;;  %v3504_v40 = vor.u32 %v3666_v63, %v3503_v55  ;;  %v3665_v17 = vld [vmem:[%s6145_s12 + $0xd4] sm:$0xf]  ;;  %v3496_v55 = vor.u32 %v3664_v31, %v3495_v39  ;;  %v3663_v63 = vld [vmem:[%s6145_s12 + $0xc4] sm:$0xf] }
 0x3fe   :  { %v3508_v19 = vor.u32 %v3665_v17, %v3505_v54  ;;  %v3500_v7 = vor.u32 %v3663_v63, %v3497_v21  ;;  %2415 = vmatpush.bf16.msra.mxu0 %v3436_v4  ;;  %v3487_v17 = vld [vmem:[%s6145_s12 + $0xb0] sm:$0xf]  ;;  %v3661_v31 = vld [vmem:[%s6145_s12 + $0xb4] sm:$0xf]  ;;  %v3415_v4 = vld [vmem:[%s6145_s12 + $0x20] sm:$0xf] }
 0x3ff   :  { %2364 = vmatpush.bf16.msrb.mxu3 %v3512_v13  ;;  %v3431_v13 = vld [vmem:[%s6145_s12 + $0x40] sm:$0xf]  ;;  %v3492_v44 = vor.u32 %v3661_v31, %v3489_v56  ;;  %v3644_v63 = vld [vmem:[%s6145_s12 + $0x24] sm:$0xf0] }
 0x400   :  { %2463 = vmatpush.bf16.msra.mxu1 %v3508_v19  ;;  %v3432_v22 = vor.u32 %v3648_v27, %v3431_v13  ;;  %v3662_v19 = vld [vmem:[%s6145_s12 + $0xb4] sm:$0xf0]  ;;  %v3645_v13 = vld [vmem:[%s6145_s12 + $0x34] sm:$0xf]  ;;  %v3425_v27 = vld [vmem:[%s6145_s12 + $0x38] sm:$0xf0] }
 0x401   :  { %v3488_v39 = vor.u32 %v3662_v19, %v3487_v17  ;;  %v3479_v21 = vld [vmem:[%s6145_s12 + $0xa0] sm:$0xf]  ;;  %v3643_v17 = vld [vmem:[%s6145_s12 + $0x24] sm:$0xf] }
 0x402   :  { %2317 = vmatpush.bf16.msrb.mxu2 %v3432_v22  ;;  %v3428_v22 = vor.u32 %v3645_v13, %v3425_v27  ;;  %v3659_v27 = vld [vmem:[%s6145_s12 + $0xa4] sm:$0xf] }
 0x403   :  { %2365 = vmatpush.bf16.msrb.mxu3 %v3504_v40  ;;  %v3423_v40 = vld [vmem:[%s6145_s12 + $0x30] sm:$0xf] }
 0x404   :  { %2464 = vmatpush.bf16.msra.mxu1 %v3500_v7  ;;  %v3424_v54 = vor.u32 %v3646_v47, %v3423_v40  ;;  %2416 = vmatpush.bf16.msra.mxu0 %v3428_v22  ;;  %v3416_v40 = vor.u32 %v3644_v63, %v3415_v4  ;;  %v3660_v47 = vld [vmem:[%s6145_s12 + $0xa4] sm:$0xf0]  ;;  %v3642_v4 = vld [vmem:[%s6145_s12 + $0x14] sm:$0xf0] }
 0x405   :  { %v3480_v19 = vor.u32 %v3660_v47, %v3479_v21  ;;  %v3658_v21 = vld [vmem:[%s6145_s12 + $0x94] sm:$0xf0] }
 0x406   :  { %2318 = vmatpush.bf16.msrb.mxu2 %v3424_v54  ;;  %v3417_v54 = vld [vmem:[%s6145_s12 + $0x28] sm:$0xf0]  ;;  %v3472_v47 = vor.u32 %v3658_v21, %v3471_v62 }
 0x407   :  { %2366 = vmatpush.bf16.msrb.mxu3 %v3496_v55  ;;  %v3420_v13 = vor.u32 %v3643_v17, %v3417_v54  ;;  %v3657_v54 = vld [vmem:[%s6145_s12 + $0x94] sm:$0xf] }
 0x408   :  { %2465 = vmatpush.bf16.msra.mxu1 %v3492_v44 }
 0x409   :  { %2417 = vmatpush.bf16.msra.mxu0 %v3420_v13 }
 0x40a   :  { %2319 = vmatpush.bf16.msrb.mxu2 %v3416_v40  ;;  %v3409_v40 = vld [vmem:[%s6145_s12 + $0x18] sm:$0xf0] }
 0x40b   :  { %2367 = vmatpush.bf16.msrb.mxu3 %v3488_v39  ;;  %v3481_v39 = vld [vmem:[%s6145_s12 + $0xa8] sm:$0xf0] }
 0x40c   :  { %v3484_v56 = vor.u32 %v3659_v27, %v3481_v39 }
 0x40e   :  { %2466 = vmatpush.bf16.msra.mxu1 %v3484_v56 }
 0x40f   :  { %2368 = vmatpush.bf16.msrb.mxu3 %v3480_v19  ;;  %v3473_v19 = vld [vmem:[%s6145_s12 + $0x98] sm:$0xf0] }
 0x410   :  { %v3476_v39 = vor.u32 %v3657_v54, %v3473_v19 }
 0x412   :  { %2467 = vmatpush.bf16.msra.mxu1 %v3476_v39 }
 0x413   :  { %2369 = vmatpush.bf16.msrb.mxu3 %v3472_v47  ;;  %v3465_v47 = vld [vmem:[%s6145_s12 + $0x88] sm:$0xf0] }
 0x435   :  { %v1646_v55 = vpop.xlane.xlu1 %1645 }
 0x436   :  { %v1680_v7 = vmul.f32 %v1646_v55, %v4411_v59  ;;  %v3407_v55 = vld [vmem:[%s6145_s12 + $0x10] sm:$0xf] }
 0x437   :  { %v3408_v63 = vor.u32 %v3642_v4, %v3407_v55  ;;  %v3640_v55 = vld [vmem:[%s6145_s12 + $0x4] sm:$0xf0]  ;;  %v3463_v4 = vld [vmem:[%s6145_s12 + $0x80] sm:$0xf] }
 0x438   :  { %v5511_v22 = vsub.f32 %v1604_v45, %v1680_v7  ;;  %v5515_v31 = vsub.f32 %v1605_v16, %v1680_v7  ;;  %v3641_v7 = vld [vmem:[%s6145_s12 + $0x14] sm:$0xf] }
 0x439   :  { %v1756_v44 = vpop.xlane.xlu0 %1755  ;;  %v3412_v17 = vor.u32 %v3641_v7, %v3409_v40  ;;  %2320 = vmatpush.bf16.msrb.mxu2 %v3408_v63  ;;  %v3401_v63 = vld [vmem:[%s6145_s12 + $0x8] sm:$0xf0]  ;;  %v3655_v40 = vld [vmem:[%s6145_s12 + $0x84] sm:$0xf] }
 0x43a   :  { %v1802_v38 = vmul.f32 %v1756_v44, %v4411_v59  ;;  %v1734_v16 = vmul.f32 %v5511_v22, %v5511_v22  ;;  %v1735_v45 = vmul.f32 %v5515_v31, %v5515_v31  ;;  %v3399_v44 = vld [vmem:[%s6145_s12] sm:$0xf] }
 0x43b   :  { %2418 = vmatpush.bf16.msra.mxu0 %v3412_v17 }
 0x43c   :  { %v5546_v13 = vadd.f32 1e-05, %v1802_v38  ;;  %v1772_v27 = vadd.f32 %v1735_v45, %v1734_v16  ;;  %v3400_v38 = vor.u32 %v3640_v55, %v3399_v44  ;;  %v3656_v16 = vld [vmem:[%s6145_s12 + $0x84] sm:$0xf0]  ;;  %v3639_v45 = vld [vmem:[%s6145_s12 + $0x4] sm:$0xf] }
 0x43d   :  { %v1649_v56 = vpop.xlane.xlu2 %1648  ;;  %v3464_v21 = vor.u32 %v3656_v16, %v3463_v4  ;;  %v3404_v7 = vor.u32 %v3639_v45, %v3401_v63 }
 0x43e   :  { %3766 = vrsqrt.f32 %v5546_v13  ;;  %v1681_v62 = vmul.f32 %v1649_v56, %v4411_v59  ;;  %1773 = vadd.xlane.f32.xlu0 %v1772_v27  ;;  %2321 = vmatpush.bf16.msrb.mxu2 %v3400_v38  ;;  %v3468_v27 = vor.u32 %v3655_v40, %v3465_v47  ;;  %vm1840_vm7 = vweird.f32 %v5546_v13 }
 0x43f   :  { %v1538_v56 = vpop.f32.mrf.mxu0  ;;  %2370 = vmatpush.bf16.msrb.mxu3 %v3464_v21  ;;  %2419 = vmatpush.bf16.msra.mxu0 %v3404_v7 }
 0x440   :  { %v5576_v17 = vsub.f32 %v1606_v5, %v1681_v62  ;;  %v5580_v54 = vsub.f32 %v1607_v34, %v1681_v62  ;;  %v1759_v19 = vpop.xlane.xlu1 %1758  ;;  %2468 = vmatpush.bf16.msra.mxu1 %v3468_v27  ;;  %v1539_v8 = vadd.f32 %v1538_v56, %v5043_v35  ;;  %v1587_v34 = vpop.f32.mrf.mxu1 }
 0x441   :  { %v1803_v39 = vmul.f32 %v1759_v19, %v4411_v59 }
 0x442   :  { %v1736_v44 = vmul.f32 %v5576_v17, %v5576_v17  ;;  %v1737_v41 = vmul.f32 %v5580_v54, %v5580_v54  ;;  %v5592_v63 = vadd.f32 %v1587_v34, %v1539_v8 }
 0x443   :  { %v5587_v5 = vadd.f32 1e-05, %v1803_v39 }
 0x444   :  { %v3767_v55 = vpop.eup %3766  ;;  %v1775_v4 = vadd.f32 %v1737_v41, %v1736_v44  ;;  %v1440_v38 = vpop.f32.mrf.mxu2  ;;  %v6158_v34 = vmax.f32 %v5592_v63, 0.0 }
 0x445   :  { %v1835_v62 = vmul.f32 %v3767_v55, %v5546_v13  ;;  %3768 = vrsqrt.f32 %v5587_v5  ;;  %v1489_v16 = vpop.f32.mrf.mxu3  ;;  %v1441_v21 = vadd.f32 %v1440_v38, %v5051_v61  ;;  %vm1841_vm0 = vweird.f32 %v3767_v55 }
 0x446   :  { %1776 = vadd.xlane.f32.xlu1 %v1775_v4  ;;  %vm1842_vm8 = vmor %vm1840_vm7, %vm1841_vm0  ;;  %vm1850_vm10 = vweird.f32 %v5587_v5 }
 0x447   :  { %v1836_v45 = vmul.f32 %v3767_v55, %v1835_v62  ;;  %v1652_v7 = vpop.xlane.xlu2 %1651  ;;  %v5596_v19 = vadd.f32 %v1489_v16, %v1441_v21  ;;  %v1540_v27 = vpop.f32.mrf.mxu0 }
 0x448   :  { %v1682_v40 = vmul.f32 %v1652_v7, %v4411_v59  ;;  %v1541_v44 = vadd.f32 %v1540_v27, %v5043_v35  ;;  %v1589_v16 = vpop.f32.mrf.mxu1 }
 0x449   :  { %v1837_v47 = vmul.f32 0.5, %v1836_v45  ;;  %v6159_v4 = vmax.f32 %v5596_v19, 0.0  ;;  %v1762_v62 = vpop.xlane.xlu1 %1761 }
 0x44a   :  { %v5600_v39 = vsub.f32 %v1608_v6, %v1682_v40  ;;  %v5604_v56 = vsub.f32 %v1609_v58, %v1682_v40  ;;  %v1804_v33 = vmul.f32 %v1762_v62, %v4411_v59  ;;  %v5620_v21 = vadd.f32 %v1589_v16, %v1541_v44 }
 0x44b   :  { %v3769_v41 = vpop.eup %3768  ;;  %v1838_v8 = vsub.f32 1.5, %v1837_v47  ;;  %v1668_v23 = vadd.f32 %v6158_v34, %v6159_v4  ;;  %v1624_v47 = vld [vmem:[%s6146_s10] sm:$0x3] }
 0x44c   :  { %v1845_v38 = vmul.f32 %v3769_v41, %v5587_v5  ;;  %v1738_v35 = vmul.f32 %v5600_v39, %v5600_v39  ;;  %v1739_v58 = vmul.f32 %v5604_v56, %v5604_v56  ;;  %v5622_v7 = vadd.f32 1e-05, %v1804_v33  ;;  %v1442_v40 = vpop.f32.mrf.mxu2 }
 0x44d   :  { %v1839_v6 = vmul.f32 %v3767_v55, %v1838_v8  ;;  %v1443_v27 = vadd.f32 %v1442_v40, %v5051_v61  ;;  %1669 = vadd.xlane.f32.xlu2 %v1668_v23  ;;  %v1491_v13 = vpop.f32.mrf.mxu3  ;;  %v5632_v16 = vperm.slane %v1624_v47, 0  ;;  %v5634_v43 = vperm.slane %v1624_v47, 1 }
 0x44e   :  { %v1846_v45 = vmul.f32 %v3769_v41, %v1845_v38  ;;  %v1778_v62 = vadd.f32 %v1739_v58, %v1738_v35  ;;  %3770 = vrsqrt.f32 %v5622_v7  ;;  %vm1851_vm9 = vweird.f32 %v3769_v41 }
 0x44f   :  { %v1655_v8 = vpop.xlane.xlu0 %1654  ;;  %v1843_v34 = vsel %vm1842_vm8, %v3767_v55, %v1839_v6  ;;  %v5629_v44 = vadd.f32 %v1491_v13, %v1443_v27  ;;  %v1623_v61 = vmax.f32 %v5620_v21, 0.0  ;;  %vm1852_vm11 = vmor %vm1850_vm10, %vm1851_vm9  ;;  %vm1860_vm13 = vweird.f32 %v5622_v7 }
 0x450   :  { %v1847_v4 = vmul.f32 0.5, %v1846_v45  ;;  %v1683_v38 = vmul.f32 %v1655_v8, %v4411_v59  ;;  %v1765_v33 = vpop.xlane.xlu2 %1764  ;;  %1779 = vadd.xlane.f32.xlu1 %v1778_v62  ;;  %v1994_v6 = vmul.f32 %v1843_v34, %v5202_v10  ;;  %v1995_v45 = vmul.f32 %v1843_v34, %v5206_v26 }
 0x451   :  { %v1805_v55 = vmul.f32 %v1765_v33, %v4411_v59  ;;  %v1622_v23 = vmax.f32 %v5629_v44, 0.0 }
 0x452   :  { %v1848_v28 = vsub.f32 1.5, %v1847_v4  ;;  %v5642_v35 = vsub.f32 %v1610_v60, %v1683_v38  ;;  %v5646_v58 = vsub.f32 %v1611_v2, %v1683_v38  ;;  %v1625_v4 = vld [vmem:[%s6147_s11] sm:$0x3]  ;;  %v2031_v27 = vmul.f32 %v5632_v16, %v1994_v6 }
 0x453   :  { %v5653_v10 = vadd.f32 1e-05, %v1805_v55  ;;  %v1671_v37 = vadd.f32 %v1623_v61, %v1622_v23  ;;  %v5664_v26 = vperm.slane %v1625_v4, 0  ;;  %v2032_v62 = vmul.f32 %v5634_v43, %v1995_v45 }
 0x454   :  { %v1849_v40 = vmul.f32 %v3769_v41, %v1848_v28  ;;  %v1740_v14 = vmul.f32 %v5642_v35, %v5642_v35  ;;  %v1741_v2 = vmul.f32 %v5646_v58, %v5646_v58  ;;  %v3771_v60 = vpop.eup %3770  ;;  %v5671_v13 = vperm.slane %v1625_v4, 1 }
 0x455   :  { %3772 = vrsqrt.f32 %v5653_v10  ;;  %v1855_v34 = vmul.f32 %v3771_v60, %v5622_v7  ;;  %1672 = vadd.xlane.f32.xlu0 %v1671_v37  ;;  %v2068_v37 = vadd.f32 %v5664_v26, %v2031_v27  ;;  %vm1861_vm12 = vweird.f32 %v3771_v60 }
 0x456   :  { %v1853_v47 = vsel %vm1852_vm11, %v3769_v41, %v1849_v40  ;;  %v1781_v8 = vadd.f32 %v1741_v2, %v1740_v14  ;;  %vm1862_vm14 = vmor %vm1860_vm13, %vm1861_vm12  ;;  %vm1870_vm1 = vweird.f32 %v5653_v10 }
 0x457   :  { %v1996_v28 = vmul.f32 %v1853_v47, %v5226_v48  ;;  %v1997_v5 = vmul.f32 %v1853_v47, %v5230_v0  ;;  %v1856_v38 = vmul.f32 %v3771_v60, %v1855_v34  ;;  %v1658_v41 = vpop.xlane.xlu0 %1657 }
 0x458   :  { %v1684_v48 = vmul.f32 %v1658_v41, %v4411_v59  ;;  %1782 = vadd.xlane.f32.xlu2 %v1781_v8 }
 0x459   :  { %v2033_v33 = vmul.f32 %v5632_v16, %v1996_v28  ;;  %v2034_v55 = vmul.f32 %v5634_v43, %v1997_v5  ;;  %v1857_v0 = vmul.f32 0.5, %v1856_v38  ;;  %v1768_v40 = vpop.xlane.xlu2 %1767  ;;  %v2069_v28 = vadd.f32 %v5671_v13, %v2032_v62 }
 0x45a   :  { %v5681_v4 = vsub.f32 %v1612_v30, %v1684_v48  ;;  %v5685_v2 = vsub.f32 %v1613_v52, %v1684_v48  ;;  %v1806_v47 = vmul.f32 %v1768_v40, %v4411_v59 }
 0x45b   :  { %v2070_v6 = vadd.f32 %v5664_v26, %v2033_v33  ;;  %v2071_v14 = vadd.f32 %v5671_v13, %v2034_v55  ;;  %v3773_v45 = vpop.eup %3772  ;;  %v1858_v5 = vsub.f32 1.5, %v1857_v0 }
 0x45c   :  { %v1865_v34 = vmul.f32 %v3773_v45, %v5653_v10  ;;  %v5690_v8 = vadd.f32 1e-05, %v1806_v47  ;;  %v1742_v20 = vmul.f32 %v5681_v4, %v5681_v4  ;;  %v1743_v3 = vmul.f32 %v5685_v2, %v5685_v2 }
 0x45d   :  { %v2100_v27 = vpack.c.bf16 %v2070_v6, %v2068_v37  ;;  %v2101_v38 = vpack.c.bf16 %v2071_v14, %v2069_v28  ;;  %v1859_v52 = vmul.f32 %v3771_v60, %v1858_v5  ;;  %vm1871_vm15 = vweird.f32 %v3773_v45 }
 0x45e   :  { %v1866_v30 = vmul.f32 %v3773_v45, %v1865_v34  ;;  %3774 = vrsqrt.f32 %v5690_v8  ;;  %v1784_v62 = vadd.f32 %v1743_v3, %v1742_v20  ;;  %vm1872_vm2 = vmor %vm1870_vm1, %vm1871_vm15  ;;  %vm1880_vm4 = vweird.f32 %v5690_v8 }
 0x45f   :  { %2322 = vmatmul.bf16.vlgmr.msrb.gmra.mxu2 %v2100_v27  ;;  %2420 = vmatmul.bf16.vlgmr.msra.gmra.mxu0 %v2100_v27  ;;  %v1661_v33 = vpop.xlane.xlu1 %1660  ;;  %v1863_v55 = vsel %vm1862_vm14, %v3771_v60, %v1859_v52 }
 0x460   :  { %2371 = vmatmul.bf16.vlgmr.msrb.gmra.mxu3 %v2101_v38  ;;  %2469 = vmatmul.bf16.vlgmr.msra.gmra.mxu1 %v2101_v38  ;;  %v1867_v41 = vmul.f32 0.5, %v1866_v30  ;;  %v1685_v48 = vmul.f32 %v1661_v33, %v4411_v59  ;;  %v1771_v0 = vpop.xlane.xlu0 %1770  ;;  %v1998_v14 = vmul.f32 %v1863_v55, %v5252_v51  ;;  %v1999_v28 = vmul.f32 %v1863_v55, %v5256_v50 }
 0x461   :  { %1785 = vadd.xlane.f32.xlu0 %v1784_v62  ;;  %v1807_v37 = vmul.f32 %v1771_v0, %v4411_v59 }
 0x462   :  { %v1868_v40 = vsub.f32 1.5, %v1867_v41  ;;  %v5702_v7 = vsub.f32 %v1614_v29, %v1685_v48  ;;  %v5706_v6 = vsub.f32 %v1615_v11, %v1685_v48  ;;  %v2035_v51 = vmul.f32 %v5632_v16, %v1998_v14 }
 0x463   :  { %v1823_v60 = vadd.f32 1e-05, %v1807_v37  ;;  %v2036_v20 = vmul.f32 %v5634_v43, %v1999_v28 }
 0x464   :  { %v1869_v47 = vmul.f32 %v3773_v45, %v1868_v40  ;;  %v3775_v5 = vpop.eup %3774  ;;  %v1744_v34 = vmul.f32 %v5702_v7, %v5702_v7  ;;  %v1745_v42 = vmul.f32 %v5706_v6, %v5706_v6 }
 0x465   :  { %v1875_v53 = vmul.f32 %v3775_v5, %v5690_v8  ;;  %3776 = vrsqrt.f32 %v1823_v60  ;;  %v2073_v48 = vadd.f32 %v5671_v13, %v2036_v20  ;;  %vm1881_vm3 = vweird.f32 %v3775_v5 }
 0x466   :  { %v1787_v11 = vadd.f32 %v1745_v42, %v1744_v34  ;;  %v1873_v29 = vsel %vm1872_vm2, %v3773_v45, %v1869_v47  ;;  %vm1882_vm5 = vmor %vm1880_vm4, %vm1881_vm3  ;;  %v6179_v8 = vmax.f32 %v5353_v57, 0.0  ;;  %vm1890_vm0 = vweird.f32 %v1823_v60 }
 0x467   :  { %v1876_v27 = vmul.f32 %v3775_v5, %v1875_v53  ;;  %v1664_v38 = vpop.xlane.xlu1 %1663  ;;  %v2000_v50 = vmul.f32 %v1873_v29, %v5276_v32  ;;  %v2001_v10 = vmul.f32 %v1873_v29, %v5280_v36  ;;  %v2072_v32 = vadd.f32 %v5664_v26, %v2035_v51 }
 0x468   :  { %v1686_v3 = vmul.f32 %v1664_v38, %v4411_v59  ;;  %1788 = vadd.xlane.f32.xlu1 %v1787_v11  ;;  %v6178_v29 = vmax.f32 %v5356_v24, 0.0 }
 0x469   :  { %v1877_v52 = vmul.f32 0.5, %v1876_v27  ;;  %v2037_v30 = vmul.f32 %v5632_v16, %v2000_v50  ;;  %v2038_v62 = vmul.f32 %v5634_v43, %v2001_v10 }
 0x46a   :  { %v5725_v45 = vsub.f32 %v1616_v49, %v1686_v3  ;;  %v5729_v41 = vsub.f32 %v1617_v15, %v1686_v3 }
 0x46b   :  { %v3777_v36 = vpop.eup %3776  ;;  %v1878_v33 = vsub.f32 1.5, %v1877_v52  ;;  %v2074_v55 = vadd.f32 %v5664_v26, %v2037_v30  ;;  %v2075_v0 = vadd.f32 %v5671_v13, %v2038_v62 }
 0x46c   :  { %v1885_v40 = vmul.f32 %v3777_v36, %v1823_v60  ;;  %v1746_v9 = vmul.f32 %v5725_v45, %v5725_v45  ;;  %v1747_v12 = vmul.f32 %v5729_v41, %v5729_v41  ;;  %vm1891_vm6 = vweird.f32 %v3777_v36 }
 0x46d   :  { %v1879_v15 = vmul.f32 %v3775_v5, %v1878_v33  ;;  %v2102_v49 = vpack.c.bf16 %v2074_v55, %v2072_v32  ;;  %v2103_v37 = vpack.c.bf16 %v2075_v0, %v2073_v48  ;;  %vm1892_vm7 = vmor %vm1890_vm0, %vm1891_vm6 }
 0x46e   :  { %v1886_v14 = vmul.f32 %v3777_v36, %v1885_v40  ;;  %v1790_v47 = vadd.f32 %v1747_v12, %v1746_v9 }
 0x46f   :  { %v1667_v28 = vpop.xlane.xlu2 %1666  ;;  %2327 = vmatmul.bf16.gmra.mxu2 %v2102_v49  ;;  %2425 = vmatmul.bf16.gmra.mxu0 %v2102_v49  ;;  %v1883_v53 = vsel %vm1882_vm5, %v3775_v5, %v1879_v15 }
 0x470   :  { %2376 = vmatmul.bf16.gmra.mxu3 %v2103_v37  ;;  %v1887_v34 = vmul.f32 0.5, %v1886_v14  ;;  %v1687_v42 = vmul.f32 %v1667_v28, %v4411_v59  ;;  %2474 = vmatmul.bf16.gmra.mxu1 %v2103_v37  ;;  %v2002_v38 = vmul.f32 %v1883_v53, %v5301_v1  ;;  %v2003_v50 = vmul.f32 %v1883_v53, %v5305_v18 }
 0x471   :  { %1791 = vadd.xlane.f32.xlu2 %v1790_v47 }
 0x472   :  { %v1888_v11 = vsub.f32 1.5, %v1887_v34  ;;  %v5743_v51 = vsub.f32 %v6178_v29, %v1687_v42  ;;  %v5747_v27 = vsub.f32 %v6179_v8, %v1687_v42  ;;  %v2039_v57 = vmul.f32 %v5632_v16, %v2002_v38 }
 0x473   :  { %v2040_v1 = vmul.f32 %v5634_v43, %v2003_v50  ;;  %v6180_v8 = vmax.f32 %v5596_v19, 0.0  ;;  %v6181_v50 = vmax.f32 %v5592_v63, 0.0 }
 0x474   :  { %v1889_v10 = vmul.f32 %v3777_v36, %v1888_v11  ;;  %v1748_v5 = vmul.f32 %v5743_v51, %v5743_v51  ;;  %v1749_v20 = vmul.f32 %v5747_v27, %v5747_v27  ;;  %v2076_v62 = vadd.f32 %v5664_v26, %v2039_v57 }
 0x475   :  { %v2077_v33 = vadd.f32 %v5671_v13, %v2040_v1 }
 0x476   :  { %v1793_v24 = vadd.f32 %v1749_v20, %v1748_v5  ;;  %v1893_v3 = vsel %vm1892_vm7, %v3777_v36, %v1889_v10 }
 0x477   :  { %v2004_v52 = vmul.f32 %v1893_v3, %v5324_v46  ;;  %v2005_v30 = vmul.f32 %v1893_v3, %v5328_v25 }
 0x478   :  { %1794 = vadd.xlane.f32.xlu0 %v1793_v24 }
 0x479   :  { %v2041_v18 = vmul.f32 %v5632_v16, %v2004_v52  ;;  %v2042_v60 = vmul.f32 %v5634_v43, %v2005_v30 }
 0x47b   :  { %v2078_v32 = vadd.f32 %v5664_v26, %v2041_v18  ;;  %v2079_v36 = vadd.f32 %v5671_v13, %v2042_v60 }
 0x47d   :  { %v2104_v46 = vpack.c.bf16 %v2078_v32, %v2076_v62  ;;  %v2105_v55 = vpack.c.bf16 %v2079_v36, %v2077_v33 }
 0x47f   :  { %2332 = vmatmul.bf16.gmra.mxu2 %v2104_v46  ;;  %2430 = vmatmul.bf16.gmra.mxu0 %v2104_v46 }
 0x480   :  { %2381 = vmatmul.bf16.gmra.mxu3 %v2105_v55  ;;  %2479 = vmatmul.bf16.gmra.mxu1 %v2105_v55 }
 0x4b1   :  { %v1774_v25 = vpop.xlane.xlu0 %1773 }
 0x4b2   :  { %v1808_v48 = vmul.f32 %v1774_v25, %v4411_v59 }
 0x4b4   :  { %v1824_v0 = vadd.f32 1e-05, %v1808_v48 }
 0x4b6   :  { %3778 = vrsqrt.f32 %v1824_v0  ;;  %vm1900_vm9 = vweird.f32 %v1824_v0 }
 0x4b9   :  { %v1777_v40 = vpop.xlane.xlu1 %1776 }
 0x4ba   :  { %v1809_v9 = vmul.f32 %v1777_v40, %v4411_v59 }
 0x4bc   :  { %v3779_v12 = vpop.eup %3778  ;;  %v1825_v15 = vadd.f32 1e-05, %v1809_v9 }
 0x4bd   :  { %v1895_v49 = vmul.f32 %v3779_v12, %v1824_v0  ;;  %vm1901_vm8 = vweird.f32 %v3779_v12 }
 0x4be   :  { %3780 = vrsqrt.f32 %v1825_v15  ;;  %vm1902_vm10 = vmor %vm1900_vm9, %vm1901_vm8  ;;  %vm1910_vm12 = vweird.f32 %v1825_v15 }
 0x4bf   :  { %v1896_v37 = vmul.f32 %v3779_v12, %v1895_v49 }
 0x4c0   :  { %v1670_v47 = vpop.xlane.xlu2 %1669 }
 0x4c1   :  { %v1897_v14 = vmul.f32 0.5, %v1896_v37  ;;  %v1688_v34 = vmul.f32 %v1670_v47, %v4411_v59 }
 0x4c3   :  { %v1898_v28 = vsub.f32 1.5, %v1897_v14  ;;  %v1780_v53 = vpop.xlane.xlu1 %1779  ;;  %v5770_v38 = vsub.f32 %v6180_v8, %v1688_v34  ;;  %v5774_v10 = vsub.f32 %v6181_v50, %v1688_v34 }
 0x4c4   :  { %v3781_v42 = vpop.eup %3780  ;;  %v1810_v5 = vmul.f32 %v1780_v53, %v4411_v59 }
 0x4c5   :  { %v1899_v11 = vmul.f32 %v3779_v12, %v1898_v28  ;;  %v1905_v29 = vmul.f32 %v3781_v42, %v1825_v15  ;;  %v1750_v24 = vmul.f32 %v5770_v38, %v5770_v38  ;;  %v1751_v52 = vmul.f32 %v5774_v10, %v5774_v10 }
 0x4c6   :  { %v1826_v3 = vadd.f32 1e-05, %v1810_v5  ;;  %vm1911_vm11 = vweird.f32 %v3781_v42 }
 0x4c7   :  { %v1906_v20 = vmul.f32 %v3781_v42, %v1905_v29  ;;  %v1903_v57 = vsel %vm1902_vm10, %v3779_v12, %v1899_v11  ;;  %v1796_v1 = vadd.f32 %v1751_v52, %v1750_v24  ;;  %vm1912_vm13 = vmor %vm1910_vm12, %vm1911_vm11 }
 0x4c8   :  { %3782 = vrsqrt.f32 %v1826_v3  ;;  %v1673_v30 = vpop.xlane.xlu0 %1672  ;;  %v2006_v60 = vmul.f32 %v1903_v57, %v5511_v22  ;;  %v2007_v62 = vmul.f32 %v1903_v57, %v5515_v31  ;;  %vm1920_vm15 = vweird.f32 %v1826_v3 }
 0x4c9   :  { %v1907_v19 = vmul.f32 0.5, %v1906_v20  ;;  %v1689_v63 = vmul.f32 %v1673_v30, %v4411_v59  ;;  %1797 = vadd.xlane.f32.xlu1 %v1796_v1 }
 0x4ca   :  { %v2043_v48 = vmul.f32 %v5632_v16, %v2006_v60 }
 0x4cb   :  { %v1908_v18 = vsub.f32 1.5, %v1907_v19  ;;  %v5786_v33 = vsub.f32 %v1622_v23, %v1689_v63  ;;  %v5790_v36 = vsub.f32 %v1623_v61, %v1689_v63  ;;  %v1783_v46 = vpop.xlane.xlu2 %1782  ;;  %v2044_v61 = vmul.f32 %v5634_v43, %v2007_v62 }
 0x4cc   :  { %v1811_v55 = vmul.f32 %v1783_v46, %v4411_v59  ;;  %v2080_v37 = vadd.f32 %v5664_v26, %v2043_v48 }
 0x4cd   :  { %v1909_v32 = vmul.f32 %v3781_v42, %v1908_v18  ;;  %v1752_v22 = vmul.f32 %v5786_v33, %v5786_v33  ;;  %v1753_v31 = vmul.f32 %v5790_v36, %v5790_v36  ;;  %v2081_v47 = vadd.f32 %v5671_v13, %v2044_v61 }
 0x4ce   :  { %v3783_v44 = vpop.eup %3782  ;;  %v1827_v23 = vadd.f32 1e-05, %v1811_v55 }
 0x4cf   :  { %v1913_v25 = vsel %vm1912_vm13, %v3781_v42, %v1909_v32  ;;  %v1915_v40 = vmul.f32 %v3783_v44, %v1826_v3  ;;  %v1799_v9 = vadd.f32 %v1753_v31, %v1752_v22  ;;  %vm1921_vm14 = vweird.f32 %v3783_v44 }
 0x4d0   :  { %v2008_v0 = vmul.f32 %v1913_v25, %v5576_v17  ;;  %v2009_v21 = vmul.f32 %v1913_v25, %v5580_v54  ;;  %3784 = vrsqrt.f32 %v1827_v23  ;;  %vm1922_vm1 = vmor %vm1920_vm15, %vm1921_vm14  ;;  %vm1930_vm3 = vweird.f32 %v1827_v23 }
 0x4d1   :  { %v1916_v49 = vmul.f32 %v3783_v44, %v1915_v40  ;;  %1800 = vadd.xlane.f32.xlu2 %v1799_v9 }
 0x4d2   :  { %v2045_v12 = vmul.f32 %v5632_v16, %v2008_v0  ;;  %v2046_v15 = vmul.f32 %v5634_v43, %v2009_v21 }
 0x4d3   :  { %v1917_v54 = vmul.f32 0.5, %v1916_v49 }
 0x4d4   :  { %v2082_v14 = vadd.f32 %v5664_v26, %v2045_v12  ;;  %v2083_v17 = vadd.f32 %v5671_v13, %v2046_v15  ;;  %v1786_v28 = vpop.xlane.xlu0 %1785 }
 0x4d5   :  { %v1812_v34 = vmul.f32 %v1786_v28, %v4411_v59  ;;  %v1918_v11 = vsub.f32 1.5, %v1917_v54 }
 0x4d6   :  { %v2106_v42 = vpack.c.bf16 %v2082_v14, %v2080_v37  ;;  %v2107_v53 = vpack.c.bf16 %v2083_v17, %v2081_v47  ;;  %v3785_v29 = vpop.eup %3784 }
 0x4d7   :  { %v1828_v8 = vadd.f32 1e-05, %v1812_v34  ;;  %v1919_v50 = vmul.f32 %v3783_v44, %v1918_v11  ;;  %v1925_v5 = vmul.f32 %v3785_v29, %v1827_v23  ;;  %vm1931_vm2 = vweird.f32 %v3785_v29  ;;  %v3678_v34 = vld [vmem:[%s6148_s14 + $0x38] sm:$0xff] }
 0x4d8   :  { %2337 = vmatmul.bf16.gmra.mxu2 %v2106_v42  ;;  %2386 = vmatmul.bf16.gmra.mxu3 %v2107_v53  ;;  %vm1932_vm4 = vmor %vm1930_vm3, %vm1931_vm2 }
 0x4d9   :  { %2435 = vmatmul.bf16.gmra.mxu0 %v2106_v42  ;;  %2484 = vmatmul.bf16.gmra.mxu1 %v2107_v53  ;;  %3786 = vrsqrt.f32 %v1828_v8  ;;  %v1926_v20 = vmul.f32 %v3785_v29, %v1925_v5  ;;  %v1923_v24 = vsel %vm1922_vm1, %v3783_v44, %v1919_v50  ;;  %vm1940_vm6 = vweird.f32 %v1828_v8  ;;  %v3686_v5 = vld [vmem:[%s6148_s14 + $0x78] sm:$0xff] }
 0x4da   :  { %v2010_v30 = vmul.f32 %v1923_v24, %v5600_v39  ;;  %v2011_v63 = vmul.f32 %v1923_v24, %v5604_v56  ;;  %2690 = vmatpush.bf16.msra.mxu2 %v3678_v34  ;;  %2739 = vmatpush.bf16.msra.mxu3 %v3686_v5  ;;  %v3682_v34 = vld [vmem:[%s6148_s14 + $0x58] sm:$0xff] }
 0x4db   :  { %v1927_v52 = vmul.f32 0.5, %v1926_v20  ;;  %v1789_v57 = vpop.xlane.xlu1 %1788  ;;  %v3677_v20 = vld [vmem:[%s6148_s14 + $0x30] sm:$0xff] }
 0x4dc   :  { %v1813_v19 = vmul.f32 %v1789_v57, %v4411_v59  ;;  %v2047_v55 = vmul.f32 %v5632_v16, %v2010_v30  ;;  %v2048_v39 = vmul.f32 %v5634_v43, %v2011_v63 }
 0x4dd   :  { %v1928_v1 = vsub.f32 1.5, %v1927_v52  ;;  %v3685_v52 = vld [vmem:[%s6148_s14 + $0x70] sm:$0xff] }
 0x4de   :  { %v1829_v60 = vadd.f32 1e-05, %v1813_v19  ;;  %v2084_v21 = vadd.f32 %v5664_v26, %v2047_v55  ;;  %2691 = vmatpush.bf16.msra.mxu2 %v3677_v20  ;;  %2740 = vmatpush.bf16.msra.mxu3 %v3685_v52  ;;  %v5894_v52 = vpop.f32.mrf.mxu1 }
 0x4df   :  { %v3787_v18 = vpop.eup %3786  ;;  %v1929_v62 = vmul.f32 %v3785_v29, %v1928_v1 }
 0x4e0   :  { %v1935_v32 = vmul.f32 %v3787_v18, %v1828_v8  ;;  %3788 = vrsqrt.f32 %v1829_v60  ;;  %vm1941_vm5 = vweird.f32 %v3787_v18  ;;  %vm1950_vm8 = vweird.f32 %v1829_v60 }
 0x4e1   :  { %v1933_v3 = vsel %vm1932_vm4, %v3785_v29, %v1929_v62  ;;  %vm1942_vm0 = vmor %vm1940_vm6, %vm1941_vm5 }
 0x4e2   :  { %v1936_v46 = vmul.f32 %v3787_v18, %v1935_v32  ;;  %v2012_v22 = vmul.f32 %v1933_v3, %v5642_v35  ;;  %v2013_v31 = vmul.f32 %v1933_v3, %v5646_v58  ;;  %v2085_v35 = vadd.f32 %v5671_v13, %v2048_v39  ;;  %v5891_v5 = vpop.f32.mrf.mxu2 }
 0x4e4   :  { %v1937_v25 = vmul.f32 0.5, %v1936_v46  ;;  %v1792_v48 = vpop.xlane.xlu2 %1791  ;;  %v2049_v56 = vmul.f32 %v5632_v16, %v2012_v22  ;;  %v2050_v44 = vmul.f32 %v5634_v43, %v2013_v31 }
 0x4e5   :  { %v1814_v0 = vmul.f32 %v1792_v48, %v4411_v59 }
 0x4e6   :  { %v1938_v23 = vsub.f32 1.5, %v1937_v25  ;;  %v3789_v61 = vpop.eup %3788  ;;  %v2086_v40 = vadd.f32 %v5664_v26, %v2049_v56  ;;  %v2087_v58 = vadd.f32 %v5671_v13, %v2050_v44  ;;  %v3675_v56 = vld [vmem:[%s6148_s14 + $0x20] sm:$0xff] }
 0x4e7   :  { %v1945_v12 = vmul.f32 %v3789_v61, %v1829_v60  ;;  %v5822_v15 = vadd.f32 1e-05, %v1814_v0  ;;  %vm1951_vm7 = vweird.f32 %v3789_v61 }
 0x4e8   :  { %v1939_v9 = vmul.f32 %v3787_v18, %v1938_v23  ;;  %v2108_v49 = vpack.c.bf16 %v2086_v40, %v2084_v21  ;;  %v2109_v37 = vpack.c.bf16 %v2087_v58, %v2085_v35  ;;  %vm1952_vm9 = vmor %vm1950_vm8, %vm1951_vm7  ;;  %v3683_v23 = vld [vmem:[%s6148_s14 + $0x60] sm:$0xff] }
 0x4e9   :  { %v1946_v14 = vmul.f32 %v3789_v61, %v1945_v12  ;;  %3790 = vrsqrt.f32 %v5822_v15  ;;  %vm1960_vm11 = vweird.f32 %v5822_v15 }
 0x4ea   :  { %v1943_v47 = vsel %vm1942_vm0, %v3787_v18, %v1939_v9  ;;  %2342 = vmatmul.bf16.gmra.mxu2 %v2108_v49  ;;  %2391 = vmatmul.bf16.gmra.mxu3 %v2109_v37  ;;  %v3676_v18 = vld [vmem:[%s6148_s14 + $0x28] sm:$0xff]  ;;  %vm2788_vm0 = vcmask 7168  }
 0x4eb   :  { %v1947_v17 = vmul.f32 0.5, %v1946_v14  ;;  %2440 = vmatmul.bf16.gmra.mxu0 %v2108_v49  ;;  %v1795_v54 = vpop.xlane.xlu0 %1794  ;;  %2489 = vmatmul.bf16.gmra.mxu1 %v2109_v37  ;;  %v2014_v42 = vmul.f32 %v1943_v47, %v5681_v4  ;;  %v2015_v11 = vmul.f32 %v1943_v47, %v5685_v2 }
 0x4ec   :  { %v1815_v28 = vmul.f32 %v1795_v54, %v4411_v59  ;;  %2692 = vmatpush.bf16.msra.mxu2 %v3676_v18  ;;  %v2325_v18 = vpop.f32.mrf.mxu2 }
 0x4ed   :  { %v1948_v53 = vsub.f32 1.5, %v1947_v17  ;;  %v2051_v2 = vmul.f32 %v5632_v16, %v2014_v42  ;;  %v2052_v1 = vmul.f32 %v5634_v43, %v2015_v11  ;;  %v3681_v11 = vld [vmem:[%s6148_s14 + $0x50] sm:$0xff] }
 0x4ee   :  { %v1831_v29 = vadd.f32 1e-05, %v1815_v28 }
 0x4ef   :  { %v3791_v8 = vpop.eup %3790  ;;  %v1949_v50 = vmul.f32 %v3789_v61, %v1948_v53  ;;  %v2088_v32 = vadd.f32 %v5664_v26, %v2051_v2  ;;  %v2089_v55 = vadd.f32 %v5671_v13, %v2052_v1  ;;  %v3673_v53 = vld [vmem:[%s6148_s14 + $0x10] sm:$0xff] }
 0x4f0   :  { %v1955_v4 = vmul.f32 %v3791_v8, %v5822_v15  ;;  %3792 = vrsqrt.f32 %v1831_v29  ;;  %vm1961_vm10 = vweird.f32 %v3791_v8  ;;  %2693 = vmatpush.bf16.msra.mxu2 %v3675_v56  ;;  %vm1970_vm14 = vweird.f32 %v1831_v29 }
 0x4f1   :  { %v1953_v24 = vsel %vm1952_vm9, %v3789_v61, %v1949_v50  ;;  %vm1962_vm12 = vmor %vm1960_vm11, %vm1961_vm10  ;;  %v5889_v50 = vpop.f32.mrf.mxu0 }
 0x4f2   :  { %v2016_v57 = vmul.f32 %v1953_v24, %v5702_v7  ;;  %v2017_v19 = vmul.f32 %v1953_v24, %v5706_v6  ;;  %v1956_v30 = vmul.f32 %v3791_v8, %v1955_v4  ;;  %v3684_v7 = vld [vmem:[%s6148_s14 + $0x68] sm:$0xff] }
 0x4f3   :  { %2741 = vmatpush.bf16.msra.mxu3 %v3684_v7 }
 0x4f4   :  { %v1957_v63 = vmul.f32 0.5, %v1956_v30  ;;  %v2053_v60 = vmul.f32 %v5632_v16, %v2016_v57  ;;  %v2054_v62 = vmul.f32 %v5634_v43, %v2017_v19  ;;  %v5896_v57 = vpop.f32.mrf.mxu3  ;;  %v2328_v56 = vpop.f32.mrf.mxu2 }
 0x4f6   :  { %v3793_v6 = vpop.eup %3792  ;;  %v1958_v3 = vsub.f32 1.5, %v1957_v63  ;;  %v2090_v46 = vadd.f32 %v5664_v26, %v2053_v60  ;;  %v2091_v22 = vadd.f32 %v5671_v13, %v2054_v62  ;;  %v3672_v60 = vld [vmem:[%s6148_s14 + $0x8] sm:$0xff] }
 0x4f7   :  { %v1965_v31 = vmul.f32 %v3793_v6, %v1831_v29  ;;  %vm1971_vm13 = vweird.f32 %v3793_v6  ;;  %2742 = vmatpush.bf16.msra.mxu3 %v3683_v23 }
 0x4f8   :  { %v1959_v39 = vmul.f32 %v3791_v8, %v1958_v3  ;;  %v2110_v25 = vpack.c.bf16 %v2090_v46, %v2088_v32  ;;  %v2111_v48 = vpack.c.bf16 %v2091_v22, %v2089_v55  ;;  %vm1972_vm15 = vmor %vm1970_vm14, %vm1971_vm13  ;;  %v2472_v3 = vpop.f32.mrf.mxu1  ;;  %v3671_v22 = vld [vmem:[%s6148_s14] sm:$0xff] }
 0x4f9   :  { %v1966_v44 = vmul.f32 %v3793_v6, %v1965_v31  ;;  %v2423_v1 = vpop.f32.mrf.mxu0  ;;  %v3679_v31 = vld [vmem:[%s6148_s14 + $0x40] sm:$0xff] }
 0x4fa   :  { %2347 = vmatmul.bf16.gmra.mxu2 %v2110_v25  ;;  %v1963_v0 = vsel %vm1962_vm12, %v3791_v8, %v1959_v39  ;;  %2396 = vmatmul.bf16.gmra.mxu3 %v2111_v48 }
 0x4fb   :  { %v1967_v21 = vmul.f32 0.5, %v1966_v44  ;;  %2445 = vmatmul.bf16.gmra.mxu0 %v2110_v25  ;;  %2494 = vmatmul.bf16.gmra.mxu1 %v2111_v48  ;;  %v2018_v40 = vmul.f32 %v1963_v0, %v5725_v45  ;;  %v2019_v35 = vmul.f32 %v1963_v0, %v5729_v41 }
 0x4fc   :  { %2743 = vmatpush.bf16.msra.mxu3 %v3682_v34  ;;  %v2374_v46 = vpop.f32.mrf.mxu3 }
 0x4fd   :  { %v1968_v61 = vsub.f32 1.5, %v1967_v21  ;;  %v2055_v49 = vmul.f32 %v5632_v16, %v2018_v40  ;;  %v2056_v37 = vmul.f32 %v5634_v43, %v2019_v35 }
 0x4ff   :  { %v1969_v58 = vmul.f32 %v3793_v6, %v1968_v61  ;;  %v2092_v45 = vadd.f32 %v5664_v26, %v2055_v49  ;;  %v2093_v17 = vadd.f32 %v5671_v13, %v2056_v37 }
 0x500   :  { %2744 = vmatpush.bf16.msra.mxu3 %v3681_v11 }
 0x501   :  { %v1973_v9 = vsel %vm1972_vm15, %v3793_v6, %v1969_v58  ;;  %v2426_v48 = vpop.f32.mrf.mxu0 }
 0x502   :  { %v2020_v12 = vmul.f32 %v1973_v9, %v5743_v51  ;;  %v2021_v15 = vmul.f32 %v1973_v9, %v5747_v27  ;;  %v3674_v27 = vld [vmem:[%s6148_s14 + $0x18] sm:$0xff] }
 0x503   :  { %2694 = vmatpush.bf16.msra.mxu2 %v3674_v27 }
 0x504   :  { %v2057_v14 = vmul.f32 %v5632_v16, %v2020_v12  ;;  %v2058_v47 = vmul.f32 %v5634_v43, %v2021_v15  ;;  %v2475_v12 = vpop.f32.mrf.mxu1  ;;  %v2377_v15 = vpop.f32.mrf.mxu3 }
 0x506   :  { %v2094_v41 = vadd.f32 %v5664_v26, %v2057_v14  ;;  %v2095_v54 = vadd.f32 %v5671_v13, %v2058_v47 }
 0x507   :  { %2695 = vmatpush.bf16.msra.mxu2 %v3673_v53 }
 0x508   :  { %v2112_v28 = vpack.c.bf16 %v2094_v41, %v2092_v45  ;;  %v2113_v51 = vpack.c.bf16 %v2095_v54, %v2093_v17  ;;  %v2330_v45 = vpop.f32.mrf.mxu2 }
 0x509   :  { %v2428_v47 = vpop.f32.mrf.mxu0 }
 0x50a   :  { %2352 = vmatmul.bf16.gmra.mxu2 %v2112_v28  ;;  %2401 = vmatmul.bf16.gmra.mxu3 %v2113_v51 }
 0x50b   :  { %2450 = vmatmul.bf16.gmra.mxu0 %v2112_v28  ;;  %2499 = vmatmul.bf16.gmra.mxu1 %v2113_v51 }
 0x50c   :  { %2696 = vmatpush.bf16.msra.mxu2 %v3672_v60  ;;  %v2379_v28 = vpop.f32.mrf.mxu3 }
 0x510   :  { %2697 = vmatpush.bf16.msra.mxu2 %v3671_v22  ;;  %v2333_v11 = vpop.f32.mrf.mxu2 }
 0x511   :  { %v2431_v53 = vpop.f32.mrf.mxu0 }
 0x53c   :  { %v1798_v42 = vpop.xlane.xlu1 %1797 }
 0x53d   :  { %v1816_v29 = vmul.f32 %v1798_v42, %v4411_v59 }
 0x53f   :  { %v1832_v8 = vadd.f32 1e-05, %v1816_v29 }
 0x541   :  { %3794 = vrsqrt.f32 %v1832_v8  ;;  %vm1980_vm2 = vweird.f32 %v1832_v8 }
 0x544   :  { %v1801_v20 = vpop.xlane.xlu2 %1800 }
 0x545   :  { %v1817_v4 = vmul.f32 %v1801_v20, %v4411_v59  ;;  %v3680_v59 = vld [vmem:[%s6148_s14 + $0x48] sm:$0xff] }
 0x546   :  { %2745 = vmatpush.bf16.msra.mxu3 %v3680_v59 }
 0x547   :  { %v1833_v24 = vadd.f32 1e-05, %v1817_v4  ;;  %v3795_v2 = vpop.eup %3794 }
 0x548   :  { %v1975_v19 = vmul.f32 %v3795_v2, %v1832_v8  ;;  %vm1981_vm1 = vweird.f32 %v3795_v2 }
 0x549   :  { %3796 = vrsqrt.f32 %v1833_v24  ;;  %vm1982_vm3 = vmor %vm1980_vm2, %vm1981_vm1  ;;  %vm1990_vm5 = vweird.f32 %v1833_v24 }
 0x54a   :  { %v1976_v30 = vmul.f32 %v3795_v2, %v1975_v19  ;;  %2746 = vmatpush.bf16.msra.mxu3 %v3679_v31 }
 0x54c   :  { %v1977_v63 = vmul.f32 0.5, %v1976_v30  ;;  %v2382_v30 = vpop.f32.mrf.mxu3 }
 0x54e   :  { %v1978_v32 = vsub.f32 1.5, %v1977_v63 }
 0x54f   :  { %v3797_v62 = vpop.eup %3796 }
 0x550   :  { %v1985_v7 = vmul.f32 %v3797_v62, %v1833_v24  ;;  %v1979_v6 = vmul.f32 %v3795_v2, %v1978_v32  ;;  %vm1991_vm4 = vweird.f32 %v3797_v62 }
 0x551   :  { %vm1992_vm6 = vmor %vm1990_vm5, %vm1991_vm4 }
 0x552   :  { %v1986_v55 = vmul.f32 %v3797_v62, %v1985_v7  ;;  %v1983_v39 = vsel %vm1982_vm3, %v3795_v2, %v1979_v6 }
 0x553   :  { %v2022_v23 = vmul.f32 %v1983_v39, %v5770_v38  ;;  %v2023_v0 = vmul.f32 %v1983_v39, %v5774_v10 }
 0x554   :  { %v1987_v25 = vmul.f32 0.5, %v1986_v55  ;;  %v2384_v7 = vpop.f32.mrf.mxu3 }
 0x555   :  { %v2059_v58 = vmul.f32 %v5632_v16, %v2022_v23  ;;  %v2060_v9 = vmul.f32 %v5634_v43, %v2023_v0 }
 0x556   :  { %v1988_v44 = vsub.f32 1.5, %v1987_v25 }
 0x557   :  { %v2096_v10 = vadd.f32 %v5664_v26, %v2059_v58  ;;  %v2097_v14 = vadd.f32 %v5671_v13, %v2060_v9 }
 0x558   :  { %v1989_v21 = vmul.f32 %v3797_v62, %v1988_v44 }
 0x55a   :  { %v1993_v61 = vsel %vm1992_vm6, %v3797_v62, %v1989_v21 }
 0x55b   :  { %v2024_v40 = vmul.f32 %v1993_v61, %v5786_v33  ;;  %v2025_v35 = vmul.f32 %v1993_v61, %v5790_v36  ;;  %v2148_v36 = vld [vmem:[%s6149_s13] sm:$0x3] }
 0x55c   :  { %v5925_v54 = vperm.slane %v2148_v36, 1  ;;  %v2387_v21 = vpop.f32.mrf.mxu3 }
 0x55d   :  { %v2061_v49 = vmul.f32 %v5632_v16, %v2024_v40  ;;  %v2062_v38 = vmul.f32 %v5634_v43, %v2025_v35  ;;  %v5927_v16 = vperm.slane %v2148_v36, 0 }
 0x55e   :  { %v2424_v43 = vadd.f32 %v2423_v1, %v5925_v54  ;;  %v2422_v51 = vadd.f32 %v5889_v50, %v5925_v54  ;;  %v2433_v50 = vpop.f32.mrf.mxu0  ;;  %v2429_v63 = vadd.f32 %v2428_v47, %v5925_v54  ;;  %v2432_v35 = vadd.f32 %v2431_v53, %v5925_v54 }
 0x55f   :  { %v2098_v37 = vadd.f32 %v5664_v26, %v2061_v49  ;;  %v2099_v33 = vadd.f32 %v5671_v13, %v2062_v38  ;;  %v2326_v26 = vadd.f32 %v2325_v18, %v5927_v16  ;;  %v2477_v13 = vpop.f32.mrf.mxu1  ;;  %v2324_v27 = vadd.f32 %v5891_v5, %v5927_v16  ;;  %v2335_v5 = vpop.f32.mrf.mxu2 }
 0x560   :  { %v2473_v34 = vadd.f32 %v2472_v3, %v2424_v43  ;;  %v2471_v29 = vadd.f32 %v5894_v52, %v2422_v51  ;;  %v2331_v60 = vadd.f32 %v2330_v45, %v5927_v16  ;;  %v2427_v52 = vadd.f32 %v2426_v48, %v5925_v54 }
 0x561   :  { %v2114_v41 = vpack.c.bf16 %v2098_v37, %v2096_v10  ;;  %v2115_v17 = vpack.c.bf16 %v2099_v33, %v2097_v14  ;;  %v2375_v42 = vadd.f32 %v2374_v46, %v2326_v26  ;;  %v2373_v8 = vadd.f32 %v5896_v57, %v2324_v27 }
 0x562   :  { %v2513_v20 = vmax.f32 %v2473_v34, 0.0  ;;  %v2511_v24 = vmax.f32 %v2471_v29, 0.0  ;;  %v2329_v57 = vadd.f32 %v2328_v56, %v5927_v16  ;;  %v2478_v59 = vadd.f32 %v2477_v13, %v2429_v63 }
 0x563   :  { %2357 = vmatmul.bf16.gmra.mxu2 %v2114_v41  ;;  %2406 = vmatmul.bf16.gmra.mxu3 %v2115_v17  ;;  %v2512_v4 = vmax.f32 %v2375_v42, 0.0  ;;  %v2510_v2 = vmax.f32 %v2373_v8, 0.0  ;;  %v2380_v62 = vadd.f32 %v2379_v28, %v2331_v60  ;;  %v2476_v6 = vadd.f32 %v2475_v12, %v2427_v52 }
 0x564   :  { %2455 = vmatmul.bf16.gmra.mxu0 %v2114_v41  ;;  %2504 = vmatmul.bf16.gmra.mxu1 %v2115_v17  ;;  %v2543_v1 = vpack.c.bf16 %v2513_v20, %v2511_v24  ;;  %v2378_v3 = vadd.f32 %v2377_v15, %v2329_v57  ;;  %v2517_v22 = vmax.f32 %v2478_v59, 0.0  ;;  %v2434_v48 = vadd.f32 %v2433_v50, %v5925_v54  ;;  %v2389_v10 = vpop.f32.mrf.mxu3 }
 0x565   :  { %v2542_v18 = vpack.c.bf16 %v2512_v4, %v2510_v2  ;;  %v2516_v31 = vmax.f32 %v2380_v62, 0.0  ;;  %v2515_v39 = vmax.f32 %v2476_v6, 0.0  ;;  %v2336_v56 = vadd.f32 %v2335_v5, %v5927_v16 }
 0x566   :  { %v2436_v46 = vpop.f32.mrf.mxu0  ;;  %v2514_v25 = vmax.f32 %v2378_v3, 0.0  ;;  %v2334_v58 = vadd.f32 %v2333_v11, %v5927_v16 }
 0x567   :  { %v2480_v19 = vpop.f32.mrf.mxu1  ;;  %v2338_v55 = vpop.f32.mrf.mxu2  ;;  %v2545_v44 = vpack.c.bf16 %v2517_v22, %v2515_v39  ;;  %v2385_v12 = vadd.f32 %v2384_v7, %v2336_v56  ;;  %v2437_v51 = vadd.f32 %v2436_v46, %v5925_v54 }
 0x568   :  { %v2544_v23 = vpack.c.bf16 %v2516_v31, %v2514_v25  ;;  %v2481_v15 = vadd.f32 %v2480_v19, %v2432_v35  ;;  %v2383_v49 = vadd.f32 %v2382_v30, %v2334_v58  ;;  %v2339_v27 = vadd.f32 %v2338_v55, %v5927_v16 }
 0x569   :  { %v2520_v14 = vmax.f32 %v2385_v12, 0.0 }
 0x56a   :  { %v2519_v33 = vmax.f32 %v2481_v15, 0.0  ;;  %v2518_v36 = vmax.f32 %v2383_v49, 0.0  ;;  %v2388_v8 = vadd.f32 %v2387_v21, %v2339_v27 }
 0x56c   :  { %v2546_v17 = vpack.c.bf16 %v2520_v14, %v2518_v36  ;;  %v2522_v2 = vmax.f32 %v2388_v8, 0.0 }
 0x56d   :  { %v2392_v28 = vpop.f32.mrf.mxu3 }
 0x56e   :  { %v2438_v61 = vpop.f32.mrf.mxu0 }
 0x56f   :  { %v2482_v32 = vpop.f32.mrf.mxu1  ;;  %v2340_v40 = vpop.f32.mrf.mxu2  ;;  %v2439_v43 = vadd.f32 %v2438_v61, %v5925_v54 }
 0x570   :  { %v2483_v9 = vadd.f32 %v2482_v32, %v2434_v48  ;;  %v2341_v26 = vadd.f32 %v2340_v40, %v5927_v16 }
 0x572   :  { %v2521_v37 = vmax.f32 %v2483_v9, 0.0  ;;  %v2390_v42 = vadd.f32 %v2389_v10, %v2341_v26 }
 0x573   :  { %2698 = vmatmul.bf16.vlgmr.msra.gmra.mxu2 %v2542_v18  ;;  %2747 = vmatmul.bf16.vlgmr.msra.gmra.mxu3 %v2543_v1 }
 0x574   :  { %v2547_v41 = vpack.c.bf16 %v2521_v37, %v2519_v33  ;;  %v2524_v4 = vmax.f32 %v2390_v42, 0.0 }
 0x575   :  { %v2394_v30 = vpop.f32.mrf.mxu3 }
 0x576   :  { %v2441_v47 = vpop.f32.mrf.mxu0  ;;  %v2548_v18 = vpack.c.bf16 %v2524_v4, %v2522_v2 }
 0x577   :  { %v2485_v0 = vpop.f32.mrf.mxu1  ;;  %v2343_v45 = vpop.f32.mrf.mxu2  ;;  %v2442_v52 = vadd.f32 %v2441_v47, %v5925_v54 }
 0x578   :  { %v2486_v29 = vadd.f32 %v2485_v0, %v2437_v51  ;;  %v2344_v57 = vadd.f32 %v2343_v45, %v5927_v16 }
 0x57a   :  { %v2523_v24 = vmax.f32 %v2486_v29, 0.0  ;;  %v2393_v3 = vadd.f32 %v2392_v28, %v2344_v57 }
 0x57c   :  { %v2526_v25 = vmax.f32 %v2393_v3, 0.0 }
 0x57d   :  { %v2397_v7 = vpop.f32.mrf.mxu3 }
 0x57e   :  { %v2443_v53 = vpop.f32.mrf.mxu0 }
 0x57f   :  { %v2487_v38 = vpop.f32.mrf.mxu1  ;;  %v2345_v11 = vpop.f32.mrf.mxu2  ;;  %v2444_v63 = vadd.f32 %v2443_v53, %v5925_v54 }
 0x580   :  { %v2488_v34 = vadd.f32 %v2487_v38, %v2439_v43  ;;  %v2346_v60 = vadd.f32 %v2345_v11, %v5927_v16 }
 0x582   :  { %v2525_v20 = vmax.f32 %v2488_v34, 0.0  ;;  %v2395_v62 = vadd.f32 %v2394_v30, %v2346_v60 }
 0x583   :  { %2703 = vmatmul.bf16.gmra.mxu2 %v2544_v23  ;;  %2752 = vmatmul.bf16.gmra.mxu3 %v2545_v44 }
 0x584   :  { %v2549_v1 = vpack.c.bf16 %v2525_v20, %v2523_v24  ;;  %v2528_v55 = vmax.f32 %v2395_v62, 0.0 }
 0x585   :  { %v2399_v21 = vpop.f32.mrf.mxu3 }
 0x586   :  { %v2446_v50 = vpop.f32.mrf.mxu0  ;;  %v2550_v23 = vpack.c.bf16 %v2528_v55, %v2526_v25 }
 0x587   :  { %v2490_v13 = vpop.f32.mrf.mxu1  ;;  %v2348_v5 = vpop.f32.mrf.mxu2  ;;  %v2447_v61 = vadd.f32 %v2446_v50, %v5925_v54 }
 0x588   :  { %v2491_v6 = vadd.f32 %v2490_v13, %v2442_v52  ;;  %v2349_v40 = vadd.f32 %v2348_v5, %v5927_v16 }
 0x58a   :  { %v2527_v39 = vmax.f32 %v2491_v6, 0.0  ;;  %v2398_v49 = vadd.f32 %v2397_v7, %v2349_v40 }
 0x58c   :  { %v2530_v36 = vmax.f32 %v2398_v49, 0.0 }
 0x58d   :  { %v2402_v14 = vpop.f32.mrf.mxu3 }
 0x58e   :  { %v2448_v22 = vpop.f32.mrf.mxu0 }
 0x58f   :  { %v2492_v19 = vpop.f32.mrf.mxu1  ;;  %v2350_v31 = vpop.f32.mrf.mxu2  ;;  %v2449_v48 = vadd.f32 %v2448_v22, %v5925_v54 }
 0x590   :  { %v2493_v59 = vadd.f32 %v2492_v19, %v2444_v63  ;;  %v2351_v56 = vadd.f32 %v2350_v31, %v5927_v16 }
 0x592   :  { %v2529_v46 = vmax.f32 %v2493_v59, 0.0  ;;  %v2400_v12 = vadd.f32 %v2399_v21, %v2351_v56 }
 0x593   :  { %2708 = vmatmul.bf16.gmra.mxu2 %v2546_v17  ;;  %2757 = vmatmul.bf16.gmra.mxu3 %v2547_v41 }
 0x594   :  { %v2551_v44 = vpack.c.bf16 %v2529_v46, %v2527_v39  ;;  %v2532_v10 = vmax.f32 %v2400_v12, 0.0 }
 0x595   :  { %v2404_v27 = vpop.f32.mrf.mxu3 }
 0x596   :  { %v2451_v35 = vpop.f32.mrf.mxu0  ;;  %v2552_v45 = vpack.c.bf16 %v2532_v10, %v2530_v36 }
 0x597   :  { %v2495_v32 = vpop.f32.mrf.mxu1  ;;  %v2353_v58 = vpop.f32.mrf.mxu2  ;;  %v2452_v13 = vadd.f32 %v2451_v35, %v5925_v54 }
 0x598   :  { %v2496_v15 = vadd.f32 %v2495_v32, %v2447_v61  ;;  %v2354_v28 = vadd.f32 %v2353_v58, %v5927_v16 }
 0x59a   :  { %v2531_v33 = vmax.f32 %v2496_v15, 0.0  ;;  %v2403_v11 = vadd.f32 %v2402_v14, %v2354_v28 }
 0x59c   :  { %v2534_v4 = vmax.f32 %v2403_v11, 0.0 }
 0x59e   :  { %v2453_v41 = vpop.f32.mrf.mxu0 }
 0x59f   :  { %v2497_v0 = vpop.f32.mrf.mxu1  ;;  %v2355_v17 = vpop.f32.mrf.mxu2  ;;  %v2454_v43 = vadd.f32 %v2453_v41, %v5925_v54 }
 0x5a0   :  { %v2498_v9 = vadd.f32 %v2497_v0, %v2449_v48  ;;  %v2356_v26 = vadd.f32 %v2355_v17, %v5927_v16 }
 0x5a2   :  { %v2533_v38 = vmax.f32 %v2498_v9, 0.0  ;;  %v2405_v42 = vadd.f32 %v2404_v27, %v2356_v26 }
 0x5a3   :  { %2713 = vmatmul.bf16.gmra.mxu2 %v2548_v18  ;;  %2762 = vmatmul.bf16.gmra.mxu3 %v2549_v1  ;;  %v3832_v1 = vmov 0  }
 0x5a4   :  { %v2553_v47 = vpack.c.bf16 %v2533_v38, %v2531_v33  ;;  %v2536_v8 = vmax.f32 %v2405_v42, 0.0  ;;  %3691 = vset.pattern.permute.xlu2 %v3832_v1  ;;  %3692 = vset.pattern.permute.xlu1 %v3832_v1 }
 0x5a5   :  { %3693 = vset.pattern.permute.xlu0 %v3832_v1 }
 0x5a6   :  { %v2554_v2 = vpack.c.bf16 %v2536_v8, %v2534_v4 }
 0x5a7   :  { %v2500_v37 = vpop.f32.mrf.mxu1 }
 0x5a8   :  { %v2501_v53 = vadd.f32 %v2500_v37, %v2452_v13 }
 0x5aa   :  { %v2535_v20 = vmax.f32 %v2501_v53, 0.0 }
 0x5af   :  { %v2502_v51 = vpop.f32.mrf.mxu1 }
 0x5b0   :  { %v2503_v34 = vadd.f32 %v2502_v51, %v2454_v43 }
 0x5b2   :  { %v2537_v29 = vmax.f32 %v2503_v34, 0.0 }
 0x5b3   :  { %2718 = vmatmul.bf16.gmra.mxu2 %v2550_v23  ;;  %2767 = vmatmul.bf16.gmra.mxu3 %v2551_v44 }
 0x5b4   :  { %v2555_v24 = vpack.c.bf16 %v2537_v29, %v2535_v20 }
 0x5c3   :  { %2723 = vmatmul.bf16.gmra.mxu2 %v2552_v45  ;;  %2772 = vmatmul.bf16.gmra.mxu3 %v2553_v47 }
 0x5d3   :  { %2728 = vmatmul.bf16.gmra.mxu2 %v2554_v2  ;;  %2777 = vmatmul.bf16.gmra.mxu3 %v2555_v24 }
 0x5e1   :  { %v2456_v19 = vpop.f32.mrf.mxu0  ;;  %v2505_v30 = vpop.f32.mrf.mxu1 }
 0x5e2   :  { %v2457_v18 = vadd.f32 %v2456_v19, %v5925_v54 }
 0x5e4   :  { %v2506_v60 = vadd.f32 %v2505_v30, %v2457_v18 }
 0x5e6   :  { %v2358_v50 = vpop.f32.mrf.mxu2  ;;  %v2407_v5 = vpop.f32.mrf.mxu3  ;;  %v2539_v32 = vmax.f32 %v2506_v60, 0.0 }
 0x5e7   :  { %v2359_v57 = vadd.f32 %v2358_v50, %v5927_v16 }
 0x5e9   :  { %v2458_v63 = vpop.f32.mrf.mxu0  ;;  %v2507_v59 = vpop.f32.mrf.mxu1  ;;  %v2408_v46 = vadd.f32 %v2407_v5, %v2359_v57 }
 0x5ea   :  { %v2459_v52 = vadd.f32 %v2458_v63, %v5925_v54  ;;  %v5968_v54 = vld [vmem:[%s6150_s15] ss:$0 sm:$0xff] }
 0x5eb   :  { %v2538_v39 = vmax.f32 %v2408_v46, 0.0 }
 0x5ec   :  { %v2508_v62 = vadd.f32 %v2507_v59, %v2459_v52 }
 0x5ee   :  { %v2541_v7 = vmax.f32 %v2508_v62, 0.0  ;;  %v2360_v6 = vpop.f32.mrf.mxu2  ;;  %v2409_v3 = vpop.f32.mrf.mxu3 }
 0x5ef   :  { %v2361_v55 = vadd.f32 %v2360_v6, %v5927_v16 }
 0x5f0   :  { %v2557_v22 = vpack.c.bf16 %v2541_v7, %v2539_v32 }
 0x5f1   :  { %v2410_v31 = vadd.f32 %v2409_v3, %v2361_v55 }
 0x5f2   :  { %2782 = vmatmul.bf16.gmra.mxu3 %v2557_v22 }
 0x5f3   :  { %v2540_v25 = vmax.f32 %v2410_v31, 0.0 }
 0x5f5   :  { %v2556_v44 = vpack.c.bf16 %v2540_v25, %v2538_v39 }
 0x5f6   :  { %v2699_v23 = vpop.f32.mrf.mxu2  ;;  %v2748_v0 = vpop.f32.mrf.mxu3 }
 0x5f7   :  { %v2700_v21 = vadd.f32 %v5968_v54, %v2699_v23  ;;  %2733 = vmatmul.bf16.gmra.mxu2 %v2556_v44 }
 0x5f9   :  { %v2749_v48 = vadd.f32 %v2748_v0, %v2700_v21 }
 0x5fb   :  { %2789 = vst.msk [vmem:[#allocation2] sm:$0xff] %vm2788_vm0, %v2749_v48  ;;  %2821 = vrot.lane.b32.xlu0 %v2749_v48, %s3833_s23 }
 0x5fe   :  { %v2701_v16 = vpop.f32.mrf.mxu2  ;;  %v2750_v56 = vpop.f32.mrf.mxu3 }
 0x5ff   :  { %v2702_v61 = vadd.f32 %v5968_v54, %v2701_v16 }
 0x601   :  { %v2751_v40 = vadd.f32 %v2750_v56, %v2702_v61 }
 0x602   :  { %v2885_v35 = vld [vmem:[#allocation2] sm:$0xff] }
 0x603   :  { %2790 = vst.msk [vmem:[#allocation2 + $0x8] sm:$0xff] %vm2788_vm0, %v2751_v40  ;;  %2823 = vrot.lane.b32.xlu1 %v2751_v40, %s3833_s23  ;;  %2920 = vperm.xlu2 %3691, %v2885_v35  }
 0x606   :  { %v2704_v58 = vpop.f32.mrf.mxu2  ;;  %v2753_v9 = vpop.f32.mrf.mxu3 }
 0x607   :  { %v2705_v12 = vadd.f32 %v5968_v54, %v2704_v58 }
 0x609   :  { %v2754_v15 = vadd.f32 %v2753_v9, %v2705_v12 }
 0x60a   :  { %v2886_v49 = vld [vmem:[#allocation2 + $0x8] sm:$0xff] }
 0x60b   :  { %2791 = vst.msk [vmem:[#allocation2 + $0x10] sm:$0xff] %vm2788_vm0, %v2754_v15  ;;  %2925 = vperm.xlu1 %3692, %v2886_v49   ;;  %2825 = vrot.lane.b32.xlu2 %v2754_v15, %s3833_s23 }
 0x60e   :  { %v2706_v38 = vpop.f32.mrf.mxu2  ;;  %v2755_v10 = vpop.f32.mrf.mxu3 }
 0x60f   :  { %v2707_v37 = vadd.f32 %v5968_v54, %v2706_v38 }
 0x611   :  { %v2756_v14 = vadd.f32 %v2755_v10, %v2707_v37 }
 0x612   :  { %v2887_v41 = vld [vmem:[#allocation2 + $0x10] sm:$0xff] }
 0x613   :  { %2792 = vst.msk [vmem:[#allocation2 + $0x18] sm:$0xff] %vm2788_vm0, %v2756_v14  ;;  %2827 = vrot.lane.b32.xlu0 %v2756_v14, %s3833_s23 }
 0x616   :  { %v2709_v33 = vpop.f32.mrf.mxu2  ;;  %v2758_v36 = vpop.f32.mrf.mxu3 }
 0x617   :  { %v2710_v47 = vadd.f32 %v5968_v54, %v2709_v33 }
 0x619   :  { %v2759_v45 = vadd.f32 %v2758_v36, %v2710_v47 }
 0x61a   :  { %v2888_v28 = vld [vmem:[#allocation2 + $0x18] sm:$0xff] }
 0x61b   :  { %2793 = vst.msk [vmem:[#allocation2 + $0x20] sm:$0xff] %vm2788_vm0, %v2759_v45  ;;  %2930 = vperm.xlu0 %3693, %v2887_v41   ;;  %2829 = vrot.lane.b32.xlu2 %v2759_v45, %s3833_s23 }
 0x61e   :  { %v2711_v17 = vpop.f32.mrf.mxu2  ;;  %v2760_v43 = vpop.f32.mrf.mxu3 }
 0x61f   :  { %v2712_v26 = vadd.f32 %v5968_v54, %v2711_v17 }
 0x621   :  { %v2761_v13 = vadd.f32 %v2760_v43, %v2712_v26 }
 0x622   :  { %v2889_v53 = vld [vmem:[#allocation2 + $0x20] sm:$0xff] }
 0x623   :  { %2794 = vst.msk [vmem:[#allocation2 + $0x28] sm:$0xff] %vm2788_vm0, %v2761_v13  ;;  %2831 = vrot.lane.b32.xlu1 %v2761_v13, %s3833_s23  ;;  %2935 = vperm.xlu2 %3691, %v2888_v28  }
 0x626   :  { %v2714_v51 = vpop.f32.mrf.mxu2  ;;  %v2763_v27 = vpop.f32.mrf.mxu3 }
 0x627   :  { %v2715_v34 = vadd.f32 %v5968_v54, %v2714_v51 }
 0x629   :  { %v2764_v42 = vadd.f32 %v2763_v27, %v2715_v34 }
 0x62a   :  { %v2890_v11 = vld [vmem:[#allocation2 + $0x28] sm:$0xff] }
 0x62b   :  { %2795 = vst.msk [vmem:[#allocation2 + $0x30] sm:$0xff] %vm2788_vm0, %v2764_v42  ;;  %2940 = vperm.xlu1 %3692, %v2889_v53   ;;  %2833 = vrot.lane.b32.xlu0 %v2764_v42, %s3833_s23 }
 0x62c   :  { %2945 = vperm.xlu2 %3691, %v2890_v11  }
 0x62e   :  { %v2716_v29 = vpop.f32.mrf.mxu2  ;;  %v2765_v8 = vpop.f32.mrf.mxu3 }
 0x62f   :  { %v2717_v20 = vadd.f32 %v5968_v54, %v2716_v29 }
 0x631   :  { %v2766_v4 = vadd.f32 %v2765_v8, %v2717_v20 }
 0x632   :  { %v2891_v24 = vld [vmem:[#allocation2 + $0x30] sm:$0xff] }
 0x633   :  { %2796 = vst.msk [vmem:[#allocation2 + $0x38] sm:$0xff] %vm2788_vm0, %v2766_v4  ;;  %2950 = vperm.xlu1 %3692, %v2891_v24  }
 0x634   :  { %2835 = vrot.lane.b32.xlu2 %v2766_v4, %s3833_s23 }
 0x636   :  { %v2719_v2 = vpop.f32.mrf.mxu2  ;;  %v2768_v19 = vpop.f32.mrf.mxu3 }
 0x637   :  { %v2720_v30 = vadd.f32 %v5968_v54, %v2719_v2 }
 0x639   :  { %v2769_v1 = vadd.f32 %v2768_v19, %v2720_v30 }
 0x63a   :  { %v2892_v18 = vld [vmem:[#allocation2 + $0x38] sm:$0xff] }
 0x63b   :  { %2797 = vst.msk [vmem:[#allocation2 + $0x40] sm:$0xff] %vm2788_vm0, %v2769_v1  ;;  %2837 = vrot.lane.b32.xlu1 %v2769_v1, %s3833_s23  ;;  %2955 = vperm.xlu0 %3693, %v2892_v18  }
 0x63e   :  { %v2721_v50 = vpop.f32.mrf.mxu2  ;;  %v2770_v5 = vpop.f32.mrf.mxu3 }
 0x63f   :  { %v2722_v63 = vadd.f32 %v5968_v54, %v2721_v50 }
 0x641   :  { %v2771_v60 = vadd.f32 %v2770_v5, %v2722_v63 }
 0x642   :  { %v2893_v52 = vld [vmem:[#allocation2 + $0x40] sm:$0xff] }
 0x643   :  { %2798 = vst.msk [vmem:[#allocation2 + $0x48] sm:$0xff] %vm2788_vm0, %v2771_v60  ;;  %2839 = vrot.lane.b32.xlu0 %v2771_v60, %s3833_s23  ;;  %2960 = vperm.xlu2 %3691, %v2893_v52  }
 0x646   :  { %v2724_v57 = vpop.f32.mrf.mxu2  ;;  %v2773_v59 = vpop.f32.mrf.mxu3 }
 0x647   :  { %v2725_v62 = vadd.f32 %v5968_v54, %v2724_v57 }
 0x649   :  { %v2774_v32 = vadd.f32 %v2773_v59, %v2725_v62 }
 0x64a   :  { %v2894_v7 = vld [vmem:[#allocation2 + $0x48] sm:$0xff] }
 0x64b   :  { %2799 = vst.msk [vmem:[#allocation2 + $0x50] sm:$0xff] %vm2788_vm0, %v2774_v32  ;;  %2965 = vperm.xlu1 %3692, %v2894_v7   ;;  %2841 = vrot.lane.b32.xlu2 %v2774_v32, %s3833_s23  ;;  %v6050_v7 = vld [vmem:[%s6151_s1] ss:$0 sm:$0xff] }
 0x64e   :  { %v2726_v6 = vpop.f32.mrf.mxu2  ;;  %v2775_v3 = vpop.f32.mrf.mxu3 }
 0x64f   :  { %v2727_v46 = vadd.f32 %v5968_v54, %v2726_v6 }
 0x651   :  { %v2776_v55 = vadd.f32 %v2775_v3, %v2727_v46 }
 0x652   :  { %v2895_v22 = vld [vmem:[#allocation2 + $0x50] sm:$0xff] }
 0x653   :  { %2800 = vst.msk [vmem:[#allocation2 + $0x58] sm:$0xff] %vm2788_vm0, %v2776_v55  ;;  %2843 = vrot.lane.b32.xlu1 %v2776_v55, %s3833_s23  ;;  %2970 = vperm.xlu0 %3693, %v2895_v22  }
 0x656   :  { %v2729_v31 = vpop.f32.mrf.mxu2  ;;  %v2778_v39 = vpop.f32.mrf.mxu3 }
 0x657   :  { %v2730_v25 = vadd.f32 %v5968_v54, %v2729_v31 }
 0x659   :  { %v2779_v44 = vadd.f32 %v2778_v39, %v2730_v25 }
 0x65a   :  { %v2896_v23 = vld [vmem:[#allocation2 + $0x58] sm:$0xff] }
 0x65b   :  { %2801 = vst.msk [vmem:[#allocation2 + $0x60] sm:$0xff] %vm2788_vm0, %v2779_v44  ;;  %2975 = vperm.xlu2 %3691, %v2896_v23   ;;  %2845 = vrot.lane.b32.xlu0 %v2779_v44, %s3833_s23 }
 0x65d   :  { %v6009_v0 = vpop.permute.xlu2 %2920 }
 0x65e   :  { %v2731_v21 = vpop.f32.mrf.mxu2  ;;  %v2780_v16 = vpop.f32.mrf.mxu3 }
 0x65f   :  { %v2732_v48 = vadd.f32 %v5968_v54, %v2731_v21 }
 0x661   :  { %v2781_v56 = vadd.f32 %v2780_v16, %v2732_v48 }
 0x662   :  { %v2897_v61 = vld [vmem:[#allocation2 + $0x60] sm:$0xff] }
 0x663   :  { %2802 = vst.msk [vmem:[#allocation2 + $0x68] sm:$0xff] %vm2788_vm0, %v2781_v56  ;;  %2847 = vrot.lane.b32.xlu2 %v2781_v56, %s3833_s23  ;;  %2980 = vperm.xlu1 %3692, %v2897_v61  }
 0x665   :  { %v2826_v40 = vpop.permute.xlu2 %2825 }
 0x666   :  { %2871 = vst.msk [vmem:[#allocation3 + $0x10] sm:$0xff] %vm2788_vm0, %v2826_v40  ;;  %v3001_v40 = vmul.f32 %v6050_v7, %v6009_v0 }
 0x66a   :  { %v2898_v35 = vld [vmem:[#allocation2 + $0x68] sm:$0xff] }
 0x66b   :  { %2985 = vperm.xlu0 %3693, %v2898_v35  }
 0x66d   :  { %v2822_v58 = vpop.permute.xlu0 %2821  ;;  %v2903_v53 = vld [vmem:[#allocation3 + $0x10] sm:$0xff] }
 0x66e   :  { %2869 = vst.msk [vmem:[#allocation3] sm:$0xff] %vm2788_vm0, %v2822_v58 }
 0x675   :  { %v2824_v9 = vpop.permute.xlu1 %2823  ;;  %v2830_v12 = vpop.permute.xlu2 %2829  ;;  %v2901_v28 = vld [vmem:[#allocation3] sm:$0xff] }
 0x676   :  { %2870 = vst.msk [vmem:[#allocation3 + $0x8] sm:$0xff] %vm2788_vm0, %v2824_v9  ;;  %v2783_v15 = vpop.f32.mrf.mxu3  ;;  %v3017_v9 = vmax.f32 %v3001_v40, 0.0 }
 0x677   :  { %2873 = vst.msk [vmem:[#allocation3 + $0x20] sm:$0xff] %vm2788_vm0, %v2830_v12 }
 0x67a   :  { %v2734_v49 = vpop.f32.mrf.mxu2 }
 0x67b   :  { %v2735_v38 = vadd.f32 %v5968_v54, %v2734_v49 }
 0x67d   :  { %v2784_v10 = vadd.f32 %v2783_v15, %v2735_v38  ;;  %v6019_v37 = vpop.permute.xlu2 %2935  ;;  %v2926_v43 = vpop.permute.xlu1 %2925  ;;  %v2902_v13 = vld [vmem:[#allocation3 + $0x8] sm:$0xff] }
 0x67e   :  { %v2785_v36 = vpop.f32.mrf.mxu3  ;;  %v2905_v34 = vld [vmem:[#allocation3 + $0x20] sm:$0xff]  ;;  %v3002_v6 = vmul.f32 %v6050_v7, %v2926_v43 }
 0x67f   :  { %2803 = vst.msk [vmem:[#allocation2 + $0x70] sm:$0xff] %vm2788_vm0, %v2784_v10  ;;  %2849 = vrot.lane.b32.xlu1 %v2784_v10, %s3833_s23 }
 0x680   :  { %v3018_v55 = vmax.f32 %v3002_v6, 0.0 }
 0x682   :  { %v2736_v14 = vpop.f32.mrf.mxu2  ;;  %v3034_v22 = vmul.f32 -0.020202707, %v3018_v55 }
 0x683   :  { %v2737_v33 = vadd.f32 %v5968_v54, %v2736_v14  ;;  %v3004_v14 = vmul.f32 %v6050_v7, %v6019_v37 }
 0x684   :  { %v3051_v25 = vmul.f32 1.442695, %v3034_v22 }
 0x685   :  { %v2786_v47 = vadd.f32 %v2785_v36, %v2737_v33  ;;  %v2828_v45 = vpop.permute.xlu0 %2827  ;;  %v3033_v36 = vmul.f32 -0.020202707, %v3017_v9 }
 0x686   :  { %2872 = vst.msk [vmem:[#allocation3 + $0x18] sm:$0xff] %vm2788_vm0, %v2828_v45  ;;  %v6025_v41 = vpop.permute.xlu2 %2945  ;;  %v2899_v17 = vld [vmem:[#allocation2 + $0x70] sm:$0xff]  ;;  %3798 = vpow2.f32 %v3051_v25 }
 0x687   :  { %2804 = vst.msk [vmem:[#allocation2 + $0x78] sm:$0xff] %vm2788_vm0, %v2786_v47  ;;  %2990 = vperm.xlu2 %3691, %v2899_v17   ;;  %2851 = vrot.lane.b32.xlu0 %v2786_v47, %s3833_s23  ;;  %v3020_v17 = vmax.f32 %v3004_v14, 0.0  ;;  %v3049_v43 = vmul.f32 1.442695, %v3033_v36 }
 0x68c   :  { %v3799_v56 = vpop.eup %3798 }
 0x68d   :  { %v6030_v54 = vpop.permute.xlu0 %2930  ;;  %v2904_v42 = vld [vmem:[#allocation3 + $0x18] sm:$0xff]  ;;  %v3590_v58 = vadd.f32 -1.0, %v3799_v56 }
 0x68e   :  { %v2836_v26 = vpop.permute.xlu2 %2835  ;;  %v2900_v51 = vld [vmem:[#allocation2 + $0x78] sm:$0xff]  ;;  %v3003_v0 = vmul.f32 %v6050_v7, %v6030_v54 }
 0x68f   :  { %2876 = vst.msk [vmem:[#allocation3 + $0x38] sm:$0xff] %vm2788_vm0, %v2836_v26  ;;  %3120 = vperm.xlu2 %3691, %v2902_v13   ;;  %3115 = vperm.xlu0 %3693, %v2901_v28   ;;  %v3098_v15 = vmul.f32 1.0204082, %v3590_v58 }
 0x690   :  { %2995 = vperm.xlu1 %3692, %v2900_v51   ;;  %v3019_v13 = vmax.f32 %v3003_v0, 0.0 }
 0x695   :  { %v2832_v27 = vpop.permute.xlu1 %2831 }
 0x696   :  { %2874 = vst.msk [vmem:[#allocation3 + $0x28] sm:$0xff] %vm2788_vm0, %v2832_v27  ;;  %v2908_v4 = vld [vmem:[#allocation3 + $0x38] sm:$0xff] }
 0x697   :  { %3135 = vperm.xlu2 %3691, %v2905_v34   ;;  %3130 = vperm.xlu0 %3693, %v2904_v42   ;;  %v3036_v42 = vmul.f32 -0.020202707, %v3020_v17 }
 0x698   :  { %3125 = vperm.xlu1 %3692, %v2903_v53  }
 0x69d   :  { %v2941_v11 = vpop.permute.xlu1 %2940  ;;  %v2834_v29 = vpop.permute.xlu0 %2833  ;;  %v2906_v8 = vld [vmem:[#allocation3 + $0x28] sm:$0xff] }
 0x69e   :  { %2875 = vst.msk [vmem:[#allocation3 + $0x30] sm:$0xff] %vm2788_vm0, %v2834_v29  ;;  %v6034_v20 = vpop.permute.xlu2 %2960  ;;  %v3005_v31 = vmul.f32 %v6050_v7, %v2941_v11  ;;  %v3006_v11 = vmul.f32 %v6050_v7, %v6025_v41  ;;  %v3035_v29 = vmul.f32 -0.020202707, %v3019_v13 }
 0x69f   :  { %3150 = vperm.xlu2 %3691, %v2908_v4   ;;  %v3055_v4 = vmul.f32 1.442695, %v3036_v42  ;;  %v3009_v9 = vmul.f32 %v6050_v7, %v6034_v20 }
 0x6a0   :  { %3140 = vperm.xlu1 %3692, %v2906_v8   ;;  %v3021_v44 = vmax.f32 %v3005_v31, 0.0 }
 0x6a1   :  { %v3025_v20 = vmax.f32 %v3009_v9, 0.0 }
 0x6a2   :  { %v3037_v23 = vmul.f32 -0.020202707, %v3021_v44 }
 0x6a3   :  { %v3041_v13 = vmul.f32 -0.020202707, %v3025_v20 }
 0x6a4   :  { %v3057_v48 = vmul.f32 1.442695, %v3037_v23 }
 0x6a5   :  { %v6036_v24 = vpop.permute.xlu1 %2950  ;;  %v2907_v2 = vld [vmem:[#allocation3 + $0x30] sm:$0xff] }
 0x6a6   :  { %v2842_v19 = vpop.permute.xlu2 %2841  ;;  %3145 = vperm.xlu0 %3693, %v2907_v2   ;;  %3800 = vpow2.f32 %v3057_v48 }
 0x6a7   :  { %2879 = vst.msk [vmem:[#allocation3 + $0x50] sm:$0xff] %vm2788_vm0, %v2842_v19  ;;  %v3022_v19 = vmax.f32 %v3006_v11, 0.0 }
 0x6ac   :  { %v3801_v49 = vpop.eup %3800 }
 0x6ad   :  { %v2838_v30 = vpop.permute.xlu1 %2837  ;;  %v2956_v1 = vpop.permute.xlu0 %2955  ;;  %v3593_v45 = vadd.f32 -1.0, %v3801_v49 }
 0x6ae   :  { %2877 = vst.msk [vmem:[#allocation3 + $0x40] sm:$0xff] %vm2788_vm0, %v2838_v30  ;;  %v2911_v18 = vld [vmem:[#allocation3 + $0x50] sm:$0xff]  ;;  %v3008_v21 = vmul.f32 %v6050_v7, %v2956_v1  ;;  %v3053_v30 = vmul.f32 1.442695, %v3035_v29 }
 0x6af   :  { %3165 = vperm.xlu2 %3691, %v2911_v18   ;;  %v3101_v51 = vmul.f32 1.0204082, %v3593_v45 }
 0x6b0   :  { %v3024_v16 = vmax.f32 %v3008_v21, 0.0 }
 0x6b2   :  { %v3040_v35 = vmul.f32 -0.020202707, %v3024_v16 }
 0x6b4   :  { %v3063_v12 = vmul.f32 1.442695, %v3040_v35 }
 0x6b5   :  { %v2840_v50 = vpop.permute.xlu0 %2839  ;;  %v6040_v5 = vpop.permute.xlu2 %2975  ;;  %v2909_v63 = vld [vmem:[#allocation3 + $0x40] sm:$0xff] }
 0x6b6   :  { %2878 = vst.msk [vmem:[#allocation3 + $0x48] sm:$0xff] %vm2788_vm0, %v2840_v50  ;;  %3155 = vperm.xlu1 %3692, %v2909_v63   ;;  %3802 = vpow2.f32 %v3063_v12 }
 0x6b7   :  { %3804 = vpow2.f32 %v3049_v43 }
 0x6b8   :  { %3806 = vpow2.f32 %v3055_v4 }
 0x6bc   :  { %v3803_v37 = vpop.eup %3802 }
 0x6bd   :  { %v6043_v60 = vpop.permute.xlu1 %2965  ;;  %v2848_v52 = vpop.permute.xlu2 %2847  ;;  %v2910_v57 = vld [vmem:[#allocation3 + $0x48] sm:$0xff]  ;;  %v3596_v8 = vadd.f32 -1.0, %v3803_v37 }
 0x6be   :  { %2882 = vst.msk [vmem:[#allocation3 + $0x68] sm:$0xff] %vm2788_vm0, %v2848_v52  ;;  %3160 = vperm.xlu0 %3693, %v2910_v57   ;;  %v3805_v18 = vpop.eup %3804  ;;  %v3007_v57 = vmul.f32 %v6050_v7, %v6036_v24 }
 0x6bf   :  { %v3104_v1 = vmul.f32 1.0204082, %v3596_v8  ;;  %v3807_v6 = vpop.eup %3806 }
 0x6c0   :  { %v3592_v48 = vadd.f32 -1.0, %v3807_v6 }
 0x6c2   :  { %v3100_v58 = vmul.f32 1.0204082, %v3592_v48 }
 0x6c5   :  { %v2844_v59 = vpop.permute.xlu1 %2843  ;;  %v2971_v62 = vpop.permute.xlu0 %2970  ;;  %v2914_v32 = vld [vmem:[#allocation3 + $0x68] sm:$0xff] }
 0x6c6   :  { %2880 = vst.msk [vmem:[#allocation3 + $0x58] sm:$0xff] %vm2788_vm0, %v2844_v59  ;;  %3180 = vperm.xlu2 %3691, %v2914_v32   ;;  %v3011_v47 = vmul.f32 %v6050_v7, %v2971_v62  ;;  %v3038_v59 = vmul.f32 -0.020202707, %v3022_v19  ;;  %v3589_v62 = vadd.f32 -1.0, %v3805_v18  ;;  %v3023_v32 = vmax.f32 %v3007_v57, 0.0 }
 0x6c7   :  { %v3012_v18 = vmul.f32 %v6050_v7, %v6040_v5 }
 0x6c8   :  { %v3027_v26 = vmax.f32 %v3011_v47, 0.0 }
 0x6ca   :  { %v3043_v54 = vmul.f32 -0.020202707, %v3027_v26 }
 0x6cc   :  { %v3069_v2 = vmul.f32 1.442695, %v3043_v54 }
 0x6cd   :  { %v2846_v3 = vpop.permute.xlu0 %2845  ;;  %v2912_v46 = vld [vmem:[#allocation3 + $0x58] sm:$0xff] }
 0x6ce   :  { %2881 = vst.msk [vmem:[#allocation3 + $0x60] sm:$0xff] %vm2788_vm0, %v2846_v3  ;;  %3170 = vperm.xlu1 %3692, %v2912_v46   ;;  %3808 = vpow2.f32 %v3069_v2  ;;  %v3059_v3 = vmul.f32 1.442695, %v3038_v59  ;;  %v3097_v46 = vmul.f32 1.0204082, %v3589_v62 }
 0x6cf   :  { %3810 = vpow2.f32 %v3053_v30 }
 0x6d0   :  { %3812 = vpow2.f32 %v3059_v3 }
 0x6d4   :  { %v3809_v55 = vpop.eup %3808 }
 0x6d5   :  { %v2913_v39 = vld [vmem:[#allocation3 + $0x60] sm:$0xff]  ;;  %v6060_v38 = vpop.permute.xlu1 %2980  ;;  %v3811_v24 = vpop.eup %3810  ;;  %v3599_v21 = vadd.f32 -1.0, %v3809_v55 }
 0x6d6   :  { %3175 = vperm.xlu0 %3693, %v2913_v39   ;;  %v3039_v39 = vmul.f32 -0.020202707, %v3023_v32  ;;  %v3591_v16 = vadd.f32 -1.0, %v3811_v24  ;;  %v3013_v32 = vmul.f32 %v6050_v7, %v6060_v38 }
 0x6d7   :  { %v3107_v35 = vmul.f32 1.0204082, %v3599_v21 }
 0x6d8   :  { %v3061_v56 = vmul.f32 1.442695, %v3039_v39  ;;  %v3099_v49 = vmul.f32 1.0204082, %v3591_v16  ;;  %v3029_v3 = vmax.f32 %v3013_v32, 0.0 }
 0x6da   :  { %3814 = vpow2.f32 %v3061_v56 }
 0x6dd   :  { %v2986_v28 = vpop.permute.xlu0 %2985 }
 0x6de   :  { %v3014_v25 = vmul.f32 %v6050_v7, %v2986_v28  ;;  %v3010_v28 = vmul.f32 %v6050_v7, %v6043_v60 }
 0x6e0   :  { %v3030_v40 = vmax.f32 %v3014_v25, 0.0  ;;  %v3026_v42 = vmax.f32 %v3010_v28, 0.0 }
 0x6e1   :  { %v6056_v61 = vpop.permute.xlu2 %2990 }
 0x6e2   :  { %v3046_v14 = vmul.f32 -0.020202707, %v3030_v40  ;;  %v3042_v8 = vmul.f32 -0.020202707, %v3026_v42 }
 0x6e4   :  { %v3075_v17 = vmul.f32 1.442695, %v3046_v14  ;;  %v3067_v4 = vmul.f32 1.442695, %v3042_v8 }
 0x6e6   :  { %3816 = vpow2.f32 %v3075_v17 }
 0x6e9   :  { %v3121_v10 = vpop.permute.xlu2 %3120 }
 0x6ea   :  { %v3194_v33 = vadd.f32 %v3121_v10, %v3098_v15  ;;  %v3813_v10 = vpop.eup %3812 }
 0x6eb   :  { %v3594_v45 = vadd.f32 -1.0, %v3813_v10  ;;  %v3815_v43 = vpop.eup %3814 }
 0x6ec   :  { %3210 = vst [vmem:[%s6152_s16 + $0x8] sm:$0xff] %v3194_v33  ;;  %v3817_v54 = vpop.eup %3816 }
 0x6ed   :  { %v3102_v26 = vmul.f32 1.0204082, %v3594_v45  ;;  %v3602_v60 = vadd.f32 -1.0, %v3817_v54 }
 0x6ef   :  { %v3110_v2 = vmul.f32 1.0204082, %v3602_v60 }
 0x6f1   :  { %v3136_v27 = vpop.permute.xlu2 %3135  ;;  %v2850_v34 = vpop.permute.xlu1 %2849 }
 0x6f2   :  { %v3197_v53 = vadd.f32 %v3136_v27, %v3101_v51  ;;  %2883 = vst.msk [vmem:[#allocation3 + $0x70] sm:$0xff] %vm2788_vm0, %v2850_v34  ;;  %v3595_v27 = vadd.f32 -1.0, %v3815_v43  ;;  %v3065_v34 = vmul.f32 1.442695, %v3041_v13 }
 0x6f4   :  { %3213 = vst [vmem:[%s6152_s16 + $0x20] sm:$0xff] %v3197_v53  ;;  %v3103_v53 = vmul.f32 1.0204082, %v3595_v27  ;;  %3818 = vpow2.f32 %v3065_v34 }
 0x6f5   :  { %3820 = vpow2.f32 %v3067_v4 }
 0x6f9   :  { %v3151_v50 = vpop.permute.xlu2 %3150  ;;  %v2852_v63 = vpop.permute.xlu0 %2851  ;;  %v2915_v52 = vld [vmem:[#allocation3 + $0x70] sm:$0xff] }
 0x6fa   :  { %v3200_v41 = vadd.f32 %v3151_v50, %v3104_v1  ;;  %2884 = vst.msk [vmem:[#allocation3 + $0x78] sm:$0xff] %vm2788_vm0, %v2852_v63  ;;  %3185 = vperm.xlu1 %3692, %v2915_v52   ;;  %v3819_v19 = vpop.eup %3818  ;;  %v3028_v63 = vmax.f32 %v3012_v18, 0.0 }
 0x6fb   :  { %v3597_v50 = vadd.f32 -1.0, %v3819_v19  ;;  %v3821_v57 = vpop.eup %3820 }
 0x6fc   :  { %3216 = vst [vmem:[%s6152_s16 + $0x38] sm:$0xff] %v3200_v41  ;;  %v3044_v62 = vmul.f32 -0.020202707, %v3028_v63  ;;  %v3598_v5 = vadd.f32 -1.0, %v3821_v57 }
 0x6fd   :  { %v3105_v52 = vmul.f32 1.0204082, %v3597_v50 }
 0x6fe   :  { %v3071_v6 = vmul.f32 1.442695, %v3044_v62 }
 0x700   :  { %3822 = vpow2.f32 %v3071_v6 }
 0x701   :  { %v3116_v22 = vpop.permute.xlu0 %3115  ;;  %v2916_v31 = vld [vmem:[#allocation3 + $0x78] sm:$0xff] }
 0x702   :  { %v3193_v44 = vadd.f32 %v3116_v22, %v3097_v46  ;;  %v6083_v23 = vpop.permute.xlu1 %2995  ;;  %3190 = vperm.xlu0 %3693, %v2916_v31   ;;  %v3106_v46 = vmul.f32 1.0204082, %v3598_v5  ;;  %v3045_v31 = vmul.f32 -0.020202707, %v3029_v3 }
 0x704   :  { %3209 = vst [vmem:[%s6152_s16] sm:$0xff] %v3193_v44  ;;  %v3073_v24 = vmul.f32 1.442695, %v3045_v31 }
 0x706   :  { %v3823_v39 = vpop.eup %3822  ;;  %3824 = vpow2.f32 %v3073_v24 }
 0x707   :  { %v3600_v38 = vadd.f32 -1.0, %v3823_v39 }
 0x709   :  { %v3166_v12 = vpop.permute.xlu2 %3165  ;;  %v3131_v15 = vpop.permute.xlu0 %3130  ;;  %v3108_v25 = vmul.f32 1.0204082, %v3600_v38 }
 0x70a   :  { %v3203_v33 = vadd.f32 %v3166_v12, %v3107_v35  ;;  %v3196_v36 = vadd.f32 %v3131_v15, %v3100_v58  ;;  %v3126_v47 = vpop.permute.xlu1 %3125  ;;  %v3015_v58 = vmul.f32 %v6050_v7, %v6056_v61  ;;  %v3016_v15 = vmul.f32 %v6050_v7, %v6083_v23 }
 0x70b   :  { %v3195_v0 = vadd.f32 %v3126_v47, %v3099_v49 }
 0x70c   :  { %3219 = vst [vmem:[%s6152_s16 + $0x50] sm:$0xff] %v3203_v33  ;;  %v3825_v44 = vpop.eup %3824  ;;  %v3031_v9 = vmax.f32 %v3015_v58, 0.0  ;;  %v3032_v10 = vmax.f32 %v3016_v15, 0.0 }
 0x70d   :  { %3212 = vst [vmem:[%s6152_s16 + $0x18] sm:$0xff] %v3196_v36  ;;  %v3601_v16 = vadd.f32 -1.0, %v3825_v44 }
 0x70e   :  { %3211 = vst [vmem:[%s6152_s16 + $0x10] sm:$0xff] %v3195_v0  ;;  %v3047_v12 = vmul.f32 -0.020202707, %v3031_v9  ;;  %v3048_v14 = vmul.f32 -0.020202707, %v3032_v10 }
 0x70f   :  { %v3109_v56 = vmul.f32 1.0204082, %v3601_v16 }
 0x710   :  { %v3077_v49 = vmul.f32 1.442695, %v3047_v12  ;;  %v3079_v33 = vmul.f32 1.442695, %v3048_v14 }
 0x712   :  { %v3141_v51 = vpop.permute.xlu1 %3140  ;;  %3826 = vpow2.f32 %v3077_v49 }
 0x713   :  { %v3198_v37 = vadd.f32 %v3141_v51, %v3102_v26  ;;  %3828 = vpow2.f32 %v3079_v33 }
 0x715   :  { %3214 = vst [vmem:[%s6152_s16 + $0x28] sm:$0xff] %v3198_v37 }
 0x718   :  { %v3146_v11 = vpop.permute.xlu0 %3145  ;;  %v3827_v36 = vpop.eup %3826 }
 0x719   :  { %v3199_v29 = vadd.f32 %v3146_v11, %v3103_v53  ;;  %v3603_v47 = vadd.f32 -1.0, %v3827_v36  ;;  %v3829_v45 = vpop.eup %3828 }
 0x71a   :  { %v3604_v61 = vadd.f32 -1.0, %v3829_v45 }
 0x71b   :  { %3215 = vst [vmem:[%s6152_s16 + $0x30] sm:$0xff] %v3199_v29  ;;  %v3111_v0 = vmul.f32 1.0204082, %v3603_v47 }
 0x71c   :  { %v3112_v43 = vmul.f32 1.0204082, %v3604_v61 }
 0x720   :  { %v3181_v30 = vpop.permute.xlu2 %3180 }
 0x721   :  { %v3206_v1 = vadd.f32 %v3181_v30, %v3110_v2 }
 0x723   :  { %3222 = vst [vmem:[%s6152_s16 + $0x68] sm:$0xff] %v3206_v1 }
 0x728   :  { %v3156_v41 = vpop.permute.xlu1 %3155 }
 0x729   :  { %v3201_v59 = vadd.f32 %v3156_v41, %v3105_v52 }
 0x72b   :  { %3217 = vst [vmem:[%s6152_s16 + $0x40] sm:$0xff] %v3201_v59 }
 0x730   :  { %v3161_v55 = vpop.permute.xlu0 %3160 }
 0x731   :  { %v3202_v22 = vadd.f32 %v3161_v55, %v3106_v46 }
 0x733   :  { %3218 = vst [vmem:[%s6152_s16 + $0x48] sm:$0xff] %v3202_v22 }
 0x740   :  { %v3171_v21 = vpop.permute.xlu1 %3170 }
 0x741   :  { %v3204_v48 = vadd.f32 %v3171_v21, %v3108_v25 }
 0x743   :  { %3220 = vst [vmem:[%s6152_s16 + $0x58] sm:$0xff] %v3204_v48 }
 0x748   :  { %v3176_v40 = vpop.permute.xlu0 %3175 }
 0x749   :  { %v3205_v35 = vadd.f32 %v3176_v40, %v3109_v56 }
 0x74b   :  { %3221 = vst [vmem:[%s6152_s16 + $0x60] sm:$0xff] %v3205_v35 }
 0x76c   :  { %v3186_v20 = vpop.permute.xlu1 %3185 }
 0x76d   :  { %v3207_v17 = vadd.f32 %v3186_v20, %v3111_v0 }
 0x76f   :  { %3223 = vst [vmem:[%s6152_s16 + $0x70] sm:$0xff] %v3207_v17 }
 0x774   :  { %v3191_v26 = vpop.permute.xlu0 %3190 }
 0x775   :  { %v3208_v7 = vadd.f32 %v3191_v26, %v3112_v43 }
 0x777   :  { %3224 = vst [vmem:[%s6152_s16 + $0x78] sm:$0xff] %v3208_v7 }

</bundles_post_ra>
